<compile_context>
chip_gen: v7x
topology: tpu7x:2x2x1
jax: 0.10.0
libtpu: 0.0.40
codegen_flags: <defaults>
</compile_context>

<pallas_src>
import functools

import jax
import jax.numpy as jnp
import numpy as np
from jax.experimental import pallas as pl
from jax.experimental.pallas import tpu as pltpu

LANES = 128


def _round_up(x, m):
    return (x + m - 1) // m * m


def _pick_tile(m):
    """Largest M-tile (multiple of 8) that divides m and still gives >= 2 blocks."""
    for t in (128, 64, 32, 16, 8):
        if m % t == 0 and m // t >= 2:
            return t
    return m


# ----------------------------------------------------------------------------- kernels

def _conv_kernel(p_ref, w_ref, s_ref, b_ref, o_ref, *, relu):
    # bf16 (tm, Kp) @ bf16 (Kp, 128) on the MXU with f32 accumulation,
    # then folded-BN affine (+ ReLU) in f32 on the VPU.
    acc = jnp.dot(p_ref[...], w_ref[...], preferred_element_type=jnp.float32)
    y = acc * s_ref[...] + b_ref[...]
    if relu:
        y = jnp.maximum(y, 0.0)
    o_ref[...] = y.astype(o_ref.dtype)


def _conv_res_kernel(p_ref, w_ref, s_ref, b_ref, r_ref, o_ref, *, relu):
    # Same, plus residual add before the final ReLU (BasicBlock tail).
    acc = jnp.dot(p_ref[...], w_ref[...], preferred_element_type=jnp.float32)
    y = acc * s_ref[...] + b_ref[...] + r_ref[...]
    if relu:
        y = jnp.maximum(y, 0.0)
    o_ref[...] = y.astype(o_ref.dtype)


def _conv_ds_kernel(p_ref, w_ref, s_ref, b_ref,
                    pd_ref, wd_ref, sd_ref, bd_ref,
                    o_ref, od_ref):
    # Fused: 3x3 stride-2 conv (+BN+ReLU) and 1x1 stride-2 downsample conv (+BN).
    acc = jnp.dot(p_ref[...], w_ref[...], preferred_element_type=jnp.float32)
    o_ref[...] = jnp.maximum(acc * s_ref[...] + b_ref[...], 0.0).astype(o_ref.dtype)
    accd = jnp.dot(pd_ref[...], wd_ref[...], preferred_element_type=jnp.float32)
    od_ref[...] = (accd * sd_ref[...] + bd_ref[...]).astype(od_ref.dtype)


def _maxpool_kernel(t_ref, o_ref, *, ntaps):
    # t_ref: (ntaps, tm, 128) stacked window taps -> unrolled elementwise max
    # (pure VPU, no cross-lane reduction).
    m = t_ref[0]
    for i in range(1, ntaps):
        m = jnp.maximum(m, t_ref[i])
    o_ref[...] = m


# ----------------------------------------------------------------------------- wrapper glue

def _im2col_bf16(x, kh, kw, stride, pad, k_pad):
    """x: (N, H, W, C) f32 (real channels only) -> (N*OH*OW, k_pad) bf16 patches."""
    n, h, w, c = x.shape
    xb = x.astype(jnp.bfloat16)                      # bf16 before slicing: half the bytes
    xp = jnp.pad(xb, ((0, 0), (pad, pad), (pad, pad), (0, 0)))
    oh = (h + 2 * pad - kh) // stride + 1
    ow = (w + 2 * pad - kw) // stride + 1
    cols = []
    for i in range(kh):
        for j in range(kw):
            cols.append(xp[:, i:i + stride * oh:stride, j:j + stride * ow:stride, :])
    patches = jnp.stack(cols, axis=3).reshape(n * oh * ow, kh * kw * c)
    k = kh * kw * c
    if k_pad > k:
        patches = jnp.pad(patches, ((0, 0), (0, k_pad - k)))
    return patches, (n, oh, ow)


def conv_bn(x_real, wmat, s, b, *, kh, kw, stride, pad, residual=None, relu=True):
    """Fused conv (im2col matmul) + folded BN + optional residual + ReLU.

    x_real: (N, H, W, Cin) f32 with only the *real* input channels.
    wmat:   (Kp, 128) bf16 pre-packed weight (K and Cout zero-padded).
    s, b:   (1, 128) f32 folded BN affine (zero-padded channels -> 0).
    residual: (N, OH, OW, 128) f32 or None.
    Returns (N, OH, OW, 128) f32 (channels beyond the real Cout are zeros).
    """
    kp, cp = wmat.shape
    patches, (n, oh, ow) = _im2col_bf16(x_real, kh, kw, stride, pad, kp)
    m = patches.shape[0]
    tm = _pick_tile(m)
    assert m % tm == 0

    in_specs = [
        pl.BlockSpec((tm, kp), lambda i: (i, 0)),
        pl.BlockSpec((kp, cp), lambda i: (0, 0)),
        pl.BlockSpec((1, cp), lambda i: (0, 0)),
        pl.BlockSpec((1, cp), lambda i: (0, 0)),
    ]
    args = [patches, wmat, s, b]
    if residual is not None:
        in_specs.append(pl.BlockSpec((tm, cp), lambda i: (i, 0)))
        args.append(residual.reshape(m, cp).astype(jnp.float32))
        kernel = functools.partial(_conv_res_kernel, relu=relu)
    else:
        kernel = functools.partial(_conv_kernel, relu=relu)

    out = pl.pallas_call(
        kernel,
        out_shape=jax.ShapeDtypeStruct((m, cp), jnp.float32),
        grid=(m // tm,),
        in_specs=in_specs,
        out_specs=pl.BlockSpec((tm, cp), lambda i: (i, 0)),
        compiler_params=pltpu.CompilerParams(dimension_semantics=("parallel",)),
    )(*args)
    return out.reshape(n, oh, ow, cp)


def conv_bn_with_downsample(x_real, wmat, s, b, wd, sd, bd, *, stride):
    """layer2/block0: 3x3 stride-2 conv (+BN+ReLU) fused with the 1x1 stride-2
    downsample conv (+BN, no ReLU) in a single pallas_call with two outputs."""
    kp, cp = wmat.shape
    kdp, cdp = wd.shape
    patches, (n, oh, ow) = _im2col_bf16(x_real, 3, 3, stride, 1, kp)
    pd, _ = _im2col_bf16(x_real, 1, 1, stride, 0, kdp)
    m = patches.shape[0]
    tm = _pick_tile(m)
    assert m % tm == 0

    out, out_ds = pl.pallas_call(
        _conv_ds_kernel,
        out_shape=(jax.ShapeDtypeStruct((m, cp), jnp.float32),
                   jax.ShapeDtypeStruct((m, cdp), jnp.float32)),
        grid=(m // tm,),
        in_specs=[
            pl.BlockSpec((tm, kp), lambda i: (i, 0)),
            pl.BlockSpec((kp, cp), lambda i: (0, 0)),
            pl.BlockSpec((1, cp), lambda i: (0, 0)),
            pl.BlockSpec((1, cp), lambda i: (0, 0)),
            pl.BlockSpec((tm, kdp), lambda i: (i, 0)),
            pl.BlockSpec((kdp, cdp), lambda i: (0, 0)),
            pl.BlockSpec((1, cdp), lambda i: (0, 0)),
            pl.BlockSpec((1, cdp), lambda i: (0, 0)),
        ],
        out_specs=(pl.BlockSpec((tm, cp), lambda i: (i, 0)),
                   pl.BlockSpec((tm, cdp), lambda i: (i, 0))),
        compiler_params=pltpu.CompilerParams(dimension_semantics=("parallel",)),
    )(patches, wmat, s, b, pd, wd, sd, bd)
    return out.reshape(n, oh, ow, cp), out_ds.reshape(n, oh, ow, cdp)


def maxpool2d(x, *, k=3, stride=2, pad=1):
    """MaxPool2d(3, 2, 1) on a lane-dense NHWC tensor via a Pallas tap-max kernel.

    x is a post-ReLU activation (all values >= 0, padded channels are 0), so
    zero spatial padding is exactly equivalent to PyTorch's -inf padding.
    """
    n, h, w, c = x.shape
    xp = jnp.pad(x, ((0, 0), (pad, pad), (pad, pad), (0, 0)))
    oh = (h + 2 * pad - k) // stride + 1
    ow = (w + 2 * pad - k) // stride + 1
    taps = [xp[:, i:i + stride * oh:stride, j:j + stride * ow:stride, :].reshape(-1, c)
            for i in range(k) for j in range(k)]
    stack = jnp.stack(taps, axis=0)                  # (9, M, 128) f32
    m = n * oh * ow
    tm = _pick_tile(m)
    assert m % tm == 0
    out = pl.pallas_call(
        functools.partial(_maxpool_kernel, ntaps=k * k),
        out_shape=jax.ShapeDtypeStruct((m, c), jnp.float32),
        grid=(m // tm,),
        in_specs=[pl.BlockSpec((k * k, tm, c), lambda i: (0, i, 0))],
        out_specs=pl.BlockSpec((tm, c), lambda i: (i, 0)),
        compiler_params=pltpu.CompilerParams(dimension_semantics=("parallel",)),
    )(stack)
    return out.reshape(n, oh, ow, c)


# ----------------------------------------------------------------------------- model

def net_forward(x_nchw, p):
    x = jnp.transpose(x_nchw, (0, 2, 3, 1)).astype(jnp.float32)        # NCHW -> NHWC
    # conv0 (7x7 s2 p3) + bn1 + relu; Cout padded 64 -> 128 for lane-dense stores
    x = conv_bn(x, p['conv0_w'], p['bn1_s'], p['bn1_b'], kh=7, kw=7, stride=2, pad=3)
    # maxpool 3x3 s2 p1 (operates on the padded 128-channel tensor; pad lanes stay 0)
    x = maxpool2d(x)                                                    # (N, 8, 8, 128)
    # layer1: two BasicBlocks (64 -> 64); channels kept zero-padded to 128 between kernels
    for blk in ('l1b0', 'l1b1'):
        idn = x
        y = conv_bn(x[..., :64], p[f'{blk}_conv1_w'], p[f'{blk}_bn1_s'], p[f'{blk}_bn1_b'],
                    kh=3, kw=3, stride=1, pad=1)
        x = conv_bn(y[..., :64], p[f'{blk}_conv2_w'], p[f'{blk}_bn2_s'], p[f'{blk}_bn2_b'],
                    kh=3, kw=3, stride=1, pad=1, residual=idn)
    # layer2 block0: 64 -> 128 stride 2, with the 1x1 downsample fused into conv1's kernel
    y, idn = conv_bn_with_downsample(x[..., :64],
                                     p['l2b0_conv1_w'], p['l2b0_bn1_s'], p['l2b0_bn1_b'],
                                     p['l2b0_ds_w'], p['l2b0_ds_s'], p['l2b0_ds_b'],
                                     stride=2)
    x = conv_bn(y, p['l2b0_conv2_w'], p['l2b0_bn2_s'], p['l2b0_bn2_b'],
                kh=3, kw=3, stride=1, pad=1, residual=idn)
    # layer2 block1: 128 -> 128
    idn = x
    y = conv_bn(x, p['l2b1_conv1_w'], p['l2b1_bn1_s'], p['l2b1_bn1_b'],
                kh=3, kw=3, stride=1, pad=1)
    x = conv_bn(y, p['l2b1_conv2_w'], p['l2b1_bn2_s'], p['l2b1_bn2_b'],
                kh=3, kw=3, stride=1, pad=1, residual=idn)
    return jnp.transpose(x, (0, 3, 1, 2))                               # back to NCHW


# ----------------------------------------------------------------------------- params

def _conv_init(key, cout, cin, kh, kw):
    fan_in = cin * kh * kw
    return (jax.random.normal(key, (cout, cin, kh, kw), jnp.float32)
            * (1.0 / np.sqrt(fan_in)))


def _bn_init(key, c, eps=1e-5):
    k1, k2, k3, k4 = jax.random.split(key, 4)
    gamma = 1.0 + 0.1 * jax.random.normal(k1, (c,), jnp.float32)
    beta = 0.1 * jax.random.normal(k2, (c,), jnp.float32)
    mean = 0.1 * jax.random.normal(k3, (c,), jnp.float32)
    var = 1.0 + 0.1 * jnp.abs(jax.random.normal(k4, (c,), jnp.float32))
    scale = gamma / jnp.sqrt(var + eps)     # eval-mode BN folded into an affine
    bias = beta - mean * scale
    return scale, bias


def init_params(key):
    """Raw params: PyTorch-layout conv weights + folded BN (scale, bias) vectors."""
    keys = iter(jax.random.split(key, 64))
    p = {}
    p['conv0_w'] = _conv_init(next(keys), 64, 1, 7, 7)
    p['bn1_s'], p['bn1_b'] = _bn_init(next(keys), 64)
    for b in range(2):                                   # layer1: two 64->64 blocks
        pre = f'l1b{b}'
        p[f'{pre}_conv1_w'] = _conv_init(next(keys), 64, 64, 3, 3)
        p[f'{pre}_bn1_s'], p[f'{pre}_bn1_b'] = _bn_init(next(keys), 64)
        p[f'{pre}_conv2_w'] = _conv_init(next(keys), 64, 64, 3, 3)
        p[f'{pre}_bn2_s'], p[f'{pre}_bn2_b'] = _bn_init(next(keys), 64)
    p['l2b0_conv1_w'] = _conv_init(next(keys), 128, 64, 3, 3)
    p['l2b0_bn1_s'], p['l2b0_bn1_b'] = _bn_init(next(keys), 128)
    p['l2b0_conv2_w'] = _conv_init(next(keys), 128, 128, 3, 3)
    p['l2b0_bn2_s'], p['l2b0_bn2_b'] = _bn_init(next(keys), 128)
    p['l2b0_ds_w'] = _conv_init(next(keys), 128, 64, 1, 1)
    p['l2b0_ds_s'], p['l2b0_ds_b'] = _bn_init(next(keys), 128)
    p['l2b1_conv1_w'] = _conv_init(next(keys), 128, 128, 3, 3)
    p['l2b1_bn1_s'], p['l2b1_bn1_b'] = _bn_init(next(keys), 128)
    p['l2b1_conv2_w'] = _conv_init(next(keys), 128, 128, 3, 3)
    p['l2b1_bn2_s'], p['l2b1_bn2_b'] = _bn_init(next(keys), 128)
    return p


def _pack_conv(w, scale, bias, cout_pad=LANES):
    """(Cout,Cin,KH,KW) torch weight -> (Kp, cout_pad) bf16 matmul weight;
    BN scale/bias -> (1, cout_pad) f32, zero-padded channels."""
    cout, cin, kh, kw = w.shape
    k = kh * kw * cin
    kp = _round_up(k, LANES)
    wm = jnp.transpose(w, (2, 3, 1, 0)).reshape(k, cout)
    wm = jnp.pad(wm, ((0, kp - k), (0, cout_pad - cout))).astype(jnp.bfloat16)
    s = jnp.pad(scale, (0, cout_pad - cout)).reshape(1, cout_pad).astype(jnp.float32)
    b = jnp.pad(bias, (0, cout_pad - cout)).reshape(1, cout_pad).astype(jnp.float32)
    return wm, s, b


def pack_params(raw):
    """Pre-pack all weights once, outside jit (bf16, K/Cout padded to 128)."""
    p = {}
    p['conv0_w'], p['bn1_s'], p['bn1_b'] = _pack_conv(raw['conv0_w'], raw['bn1_s'], raw['bn1_b'])
    for blk in ('l1b0', 'l1b1', 'l2b0', 'l2b1'):
        p[f'{blk}_conv1_w'], p[f'{blk}_bn1_s'], p[f'{blk}_bn1_b'] = _pack_conv(
            raw[f'{blk}_conv1_w'], raw[f'{blk}_bn1_s'], raw[f'{blk}_bn1_b'])
        p[f'{blk}_conv2_w'], p[f'{blk}_bn2_s'], p[f'{blk}_bn2_b'] = _pack_conv(
            raw[f'{blk}_conv2_w'], raw[f'{blk}_bn2_s'], raw[f'{blk}_bn2_b'])
    p['l2b0_ds_w'], p['l2b0_ds_s'], p['l2b0_ds_b'] = _pack_conv(
        raw['l2b0_ds_w'], raw['l2b0_ds_s'], raw['l2b0_ds_b'])
    return p


# ----------------------------------------------------------------------------- pure-JAX f32 reference

def ref_forward(x_nchw, raw):
    def conv(x, w, stride, pad):
        return jax.lax.conv_general_dilated(
            x, w, window_strides=(stride, stride), padding=((pad, pad), (pad, pad)),
            dimension_numbers=('NCHW', 'OIHW', 'NCHW'))

    def bn(x, s, b):
        return x * s.reshape(1, -1, 1, 1) + b.reshape(1, -1, 1, 1)

    x = jax.nn.relu(bn(conv(x_nchw, raw['conv0_w'], 2, 3), raw['bn1_s'], raw['bn1_b']))
    x = jax.lax.reduce_window(x, -jnp.inf, jax.lax.max, (1, 1, 3, 3), (1, 1, 2, 2),
                              padding=((0, 0), (0, 0), (1, 1), (1, 1)))

    def block(x, pre, stride, downsample):
        idn = x
        y = jax.nn.relu(bn(conv(x, raw[f'{pre}_conv1_w'], stride, 1),
                           raw[f'{pre}_bn1_s'], raw[f'{pre}_bn1_b']))
        y = bn(conv(y, raw[f'{pre}_conv2_w'], 1, 1),
               raw[f'{pre}_bn2_s'], raw[f'{pre}_bn2_b'])
        if downsample:
            idn = bn(conv(x, raw[f'{pre}_ds_w'], stride, 0),
                     raw[f'{pre}_ds_s'], raw[f'{pre}_ds_b'])
        return jax.nn.relu(y + idn)

    x = block(x, 'l1b0', 1, False)
    x = block(x, 'l1b1', 1, False)
    x = block(x, 'l2b0', 2, True)
    x = block(x, 'l2b1', 1, False)
    return x


# ----------------------------------------------------------------------------- main

if __name__ == "__main__":
    key = jax.random.PRNGKey(0)
    kx, kparam = jax.random.split(key)
    # Net.conv0 takes single-channel NCHW input.
    x = jax.random.normal(kx, (2, 1, 32, 32), jnp.float32)
    raw = init_params(kparam)
    params = pack_params(raw)

    fwd = jax.jit(net_forward)
    out = jax.block_until_ready(fwd(x, params))

    assert out.shape == (2, 128, 4, 4), out.shape
    assert bool(jnp.all(jnp.isfinite(out)))

    # Tolerance check vs a pure-JAX f32 reference (bf16 MXU operands -> ~1% rel err).
    ref = jax.block_until_ready(jax.jit(ref_forward)(x, raw))
    max_abs = float(jnp.max(jnp.abs(ref)))
    max_err = float(jnp.max(jnp.abs(out - ref)))
    assert max_err <= 5e-2 * max(max_abs, 1.0), (max_err, max_abs)

    print("KERNEL_OK")
</pallas_src>

<mosaic_0001>
module attributes {stable_mosaic.version = 11 : i64} {
  func.func @_conv_kernel(%arg0: i32, %arg1: memref<128x128xbf16, #tpu.memory_space<vmem>>, %arg2: memref<128x128xbf16, #tpu.memory_space<vmem>>, %arg3: memref<1x128xf32, #tpu.memory_space<vmem>>, %arg4: memref<1x128xf32, #tpu.memory_space<vmem>>, %arg5: memref<128x128xf32, #tpu.memory_space<vmem>>) attributes {dimension_semantics = [#tpu.dimension_semantics<parallel>], iteration_bounds = array<i64: 4>, scalar_prefetch = 0 : i64, scratch_operands = 0 : i64, tpu.core_type = #tpu.core_type<tc>, window_params = [{transform_indices = @transform_0, window_bounds = array<i64: 128, 128>}, {pipeline_mode = #tpu.pipeline_mode<synchronous>, transform_indices = @transform_1, window_bounds = array<i64: 128, 128>}, {pipeline_mode = #tpu.pipeline_mode<synchronous>, transform_indices = @transform_2, window_bounds = array<i64: 1, 128>}, {pipeline_mode = #tpu.pipeline_mode<synchronous>, transform_indices = @transform_3, window_bounds = array<i64: 1, 128>}, {transform_indices = @transform_4, window_bounds = array<i64: 128, 128>}]} {
    %c0 = arith.constant 0 : index
    %c0_0 = arith.constant 0 : index
    %0 = vector.load %arg1[%c0, %c0_0] : memref<128x128xbf16, #tpu.memory_space<vmem>>, vector<128x128xbf16>
    %c0_1 = arith.constant 0 : index
    %c0_2 = arith.constant 0 : index
    %1 = vector.load %arg2[%c0_1, %c0_2] : memref<128x128xbf16, #tpu.memory_space<vmem>>, vector<128x128xbf16>
    %cst = arith.constant dense<0.000000e+00> : vector<128x128xf32>
    %2 = tpu.matmul %0, %1, %cst {dimension_numbers = #tpu.dot_dimension_numbers<[1], [0], [0], [1], [0, 0, 1, 1], [], []>} : vector<128x128xbf16>, vector<128x128xbf16>, vector<128x128xf32> -> vector<128x128xf32>
    %c0_3 = arith.constant 0 : index
    %c0_4 = arith.constant 0 : index
    %3 = vector.load %arg3[%c0_3, %c0_4] : memref<1x128xf32, #tpu.memory_space<vmem>>, vector<1x128xf32>
    %4 = vector.broadcast %3 : vector<1x128xf32> to vector<128x128xf32>
    %5 = arith.mulf %2, %4 : vector<128x128xf32>
    %c0_5 = arith.constant 0 : index
    %c0_6 = arith.constant 0 : index
    %6 = vector.load %arg4[%c0_5, %c0_6] : memref<1x128xf32, #tpu.memory_space<vmem>>, vector<1x128xf32>
    %7 = vector.broadcast %6 : vector<1x128xf32> to vector<128x128xf32>
    %8 = arith.addf %5, %7 : vector<128x128xf32>
    %cst_7 = arith.constant 0.000000e+00 : f32
    %9 = vector.broadcast %cst_7 : f32 to vector<128x128xf32>
    %10 = arith.maximumf %8, %9 : vector<128x128xf32>
    %c0_8 = arith.constant 0 : index
    %c0_9 = arith.constant 0 : index
    %11 = vector.load %arg5[%c0_8, %c0_9] : memref<128x128xf32, #tpu.memory_space<vmem>>, vector<128x128xf32>
    tpu.vector_store %arg5[%c0_8, %c0_9], %10 {strides = array<i32>} : memref<128x128xf32, #tpu.memory_space<vmem>>, vector<128x128xf32>,
    return
  }
  func.func @transform_0(%arg0: i32) -> (i32, i32) {
    %c0_i32 = arith.constant 0 : i32
    %c0_i32_0 = arith.constant 0 : i32
    return %arg0, %c0_i32 : i32, i32
  }
  func.func @transform_1(%arg0: i32) -> (i32, i32) {
    %c0_i32 = arith.constant 0 : i32
    %c0_i32_0 = arith.constant 0 : i32
    %c0_i32_1 = arith.constant 0 : i32
    return %c0_i32, %c0_i32_0 : i32, i32
  }
  func.func @transform_2(%arg0: i32) -> (i32, i32) {
    %c0_i32 = arith.constant 0 : i32
    %c0_i32_0 = arith.constant 0 : i32
    %c0_i32_1 = arith.constant 0 : i32
    return %c0_i32, %c0_i32_0 : i32, i32
  }
  func.func @transform_3(%arg0: i32) -> (i32, i32) {
    %c0_i32 = arith.constant 0 : i32
    %c0_i32_0 = arith.constant 0 : i32
    %c0_i32_1 = arith.constant 0 : i32
    return %c0_i32, %c0_i32_0 : i32, i32
  }
  func.func @transform_4(%arg0: i32) -> (i32, i32) {
    %c0_i32 = arith.constant 0 : i32
    %c0_i32_0 = arith.constant 0 : i32
    return %arg0, %c0_i32 : i32, i32
  }
}

module attributes {stable_mosaic.version = 11 : i64} {
  func.func @_maxpool_kernel(%arg0: i32, %arg1: memref<9x64x128xf32, #tpu.memory_space<vmem>>, %arg2: memref<64x128xf32, #tpu.memory_space<vmem>>) attributes {dimension_semantics = [#tpu.dimension_semantics<parallel>], iteration_bounds = array<i64: 2>, scalar_prefetch = 0 : i64, scratch_operands = 0 : i64, tpu.core_type = #tpu.core_type<tc>, window_params = [{transform_indices = @transform_0, window_bounds = array<i64: 9, 64, 128>}, {transform_indices = @transform_1, window_bounds = array<i64: 64, 128>}]} {
    %c0 = arith.constant 0 : index
    %c0_0 = arith.constant 0 : index
    %c0_1 = arith.constant 0 : index
    %0 = vector.load %arg1[%c0, %c0_0, %c0_1] : memref<9x64x128xf32, #tpu.memory_space<vmem>>, vector<1x64x128xf32>
    %1 = vector.shape_cast %0 : vector<1x64x128xf32> to vector<64x128xf32>
    %c1 = arith.constant 1 : index
    %c0_2 = arith.constant 0 : index
    %c0_3 = arith.constant 0 : index
    %2 = vector.load %arg1[%c1, %c0_2, %c0_3] : memref<9x64x128xf32, #tpu.memory_space<vmem>>, vector<1x64x128xf32>
    %3 = vector.shape_cast %2 : vector<1x64x128xf32> to vector<64x128xf32>
    %4 = arith.maximumf %1, %3 : vector<64x128xf32>
    %c2 = arith.constant 2 : index
    %c0_4 = arith.constant 0 : index
    %c0_5 = arith.constant 0 : index
    %5 = vector.load %arg1[%c2, %c0_4, %c0_5] : memref<9x64x128xf32, #tpu.memory_space<vmem>>, vector<1x64x128xf32>
    %6 = vector.shape_cast %5 : vector<1x64x128xf32> to vector<64x128xf32>
    %7 = arith.maximumf %4, %6 : vector<64x128xf32>
    %c3 = arith.constant 3 : index
    %c0_6 = arith.constant 0 : index
    %c0_7 = arith.constant 0 : index
    %8 = vector.load %arg1[%c3, %c0_6, %c0_7] : memref<9x64x128xf32, #tpu.memory_space<vmem>>, vector<1x64x128xf32>
    %9 = vector.shape_cast %8 : vector<1x64x128xf32> to vector<64x128xf32>
    %10 = arith.maximumf %7, %9 : vector<64x128xf32>
    %c4 = arith.constant 4 : index
    %c0_8 = arith.constant 0 : index
    %c0_9 = arith.constant 0 : index
    %11 = vector.load %arg1[%c4, %c0_8, %c0_9] : memref<9x64x128xf32, #tpu.memory_space<vmem>>, vector<1x64x128xf32>
    %12 = vector.shape_cast %11 : vector<1x64x128xf32> to vector<64x128xf32>
    %13 = arith.maximumf %10, %12 : vector<64x128xf32>
    %c5 = arith.constant 5 : index
    %c0_10 = arith.constant 0 : index
    %c0_11 = arith.constant 0 : index
    %14 = vector.load %arg1[%c5, %c0_10, %c0_11] : memref<9x64x128xf32, #tpu.memory_space<vmem>>, vector<1x64x128xf32>
    %15 = vector.shape_cast %14 : vector<1x64x128xf32> to vector<64x128xf32>
    %16 = arith.maximumf %13, %15 : vector<64x128xf32>
    %c6 = arith.constant 6 : index
    %c0_12 = arith.constant 0 : index
    %c0_13 = arith.constant 0 : index
    %17 = vector.load %arg1[%c6, %c0_12, %c0_13] : memref<9x64x128xf32, #tpu.memory_space<vmem>>, vector<1x64x128xf32>
    %18 = vector.shape_cast %17 : vector<1x64x128xf32> to vector<64x128xf32>
    %19 = arith.maximumf %16, %18 : vector<64x128xf32>
    %c7 = arith.constant 7 : index
    %c0_14 = arith.constant 0 : index
    %c0_15 = arith.constant 0 : index
    %20 = vector.load %arg1[%c7, %c0_14, %c0_15] : memref<9x64x128xf32, #tpu.memory_space<vmem>>, vector<1x64x128xf32>
    %21 = vector.shape_cast %20 : vector<1x64x128xf32> to vector<64x128xf32>
    %22 = arith.maximumf %19, %21 : vector<64x128xf32>
    %c8 = arith.constant 8 : index
    %c0_16 = arith.constant 0 : index
    %c0_17 = arith.constant 0 : index
    %23 = vector.load %arg1[%c8, %c0_16, %c0_17] : memref<9x64x128xf32, #tpu.memory_space<vmem>>, vector<1x64x128xf32>
    %24 = vector.shape_cast %23 : vector<1x64x128xf32> to vector<64x128xf32>
    %25 = arith.maximumf %22, %24 : vector<64x128xf32>
    %c0_18 = arith.constant 0 : index
    %c0_19 = arith.constant 0 : index
    %26 = vector.load %arg2[%c0_18, %c0_19] : memref<64x128xf32, #tpu.memory_space<vmem>>, vector<64x128xf32>
    tpu.vector_store %arg2[%c0_18, %c0_19], %25 {strides = array<i32>} : memref<64x128xf32, #tpu.memory_space<vmem>>, vector<64x128xf32>,
    return
  }
  func.func @transform_0(%arg0: i32) -> (i32, i32, i32) {
    %c0_i32 = arith.constant 0 : i32
    %c0_i32_0 = arith.constant 0 : i32
    %c0_i32_1 = arith.constant 0 : i32
    return %c0_i32, %arg0, %c0_i32_0 : i32, i32, i32
  }
  func.func @transform_1(%arg0: i32) -> (i32, i32) {
    %c0_i32 = arith.constant 0 : i32
    %c0_i32_0 = arith.constant 0 : i32
    return %arg0, %c0_i32 : i32, i32
  }
}

module attributes {stable_mosaic.version = 11 : i64} {
  func.func @_conv_kernel(%arg0: i32, %arg1: memref<64x640xbf16, #tpu.memory_space<vmem>>, %arg2: memref<640x128xbf16, #tpu.memory_space<vmem>>, %arg3: memref<1x128xf32, #tpu.memory_space<vmem>>, %arg4: memref<1x128xf32, #tpu.memory_space<vmem>>, %arg5: memref<64x128xf32, #tpu.memory_space<vmem>>) attributes {dimension_semantics = [#tpu.dimension_semantics<parallel>], iteration_bounds = array<i64: 2>, scalar_prefetch = 0 : i64, scratch_operands = 0 : i64, tpu.core_type = #tpu.core_type<tc>, window_params = [{transform_indices = @transform_0, window_bounds = array<i64: 64, 640>}, {pipeline_mode = #tpu.pipeline_mode<synchronous>, transform_indices = @transform_1, window_bounds = array<i64: 640, 128>}, {pipeline_mode = #tpu.pipeline_mode<synchronous>, transform_indices = @transform_2, window_bounds = array<i64: 1, 128>}, {pipeline_mode = #tpu.pipeline_mode<synchronous>, transform_indices = @transform_3, window_bounds = array<i64: 1, 128>}, {transform_indices = @transform_4, window_bounds = array<i64: 64, 128>}]} {
    %c0 = arith.constant 0 : index
    %c0_0 = arith.constant 0 : index
    %0 = vector.load %arg1[%c0, %c0_0] : memref<64x640xbf16, #tpu.memory_space<vmem>>, vector<64x640xbf16>
    %c0_1 = arith.constant 0 : index
    %c0_2 = arith.constant 0 : index
    %1 = vector.load %arg2[%c0_1, %c0_2] : memref<640x128xbf16, #tpu.memory_space<vmem>>, vector<640x128xbf16>
    %cst = arith.constant dense<0.000000e+00> : vector<64x128xf32>
    %2 = tpu.matmul %0, %1, %cst {dimension_numbers = #tpu.dot_dimension_numbers<[1], [0], [0], [1], [0, 0, 1, 1], [], []>} : vector<64x640xbf16>, vector<640x128xbf16>, vector<64x128xf32> -> vector<64x128xf32>
    %c0_3 = arith.constant 0 : index
    %c0_4 = arith.constant 0 : index
    %3 = vector.load %arg3[%c0_3, %c0_4] : memref<1x128xf32, #tpu.memory_space<vmem>>, vector<1x128xf32>
    %4 = vector.broadcast %3 : vector<1x128xf32> to vector<64x128xf32>
    %5 = arith.mulf %2, %4 : vector<64x128xf32>
    %c0_5 = arith.constant 0 : index
    %c0_6 = arith.constant 0 : index
    %6 = vector.load %arg4[%c0_5, %c0_6] : memref<1x128xf32, #tpu.memory_space<vmem>>, vector<1x128xf32>
    %7 = vector.broadcast %6 : vector<1x128xf32> to vector<64x128xf32>
    %8 = arith.addf %5, %7 : vector<64x128xf32>
    %cst_7 = arith.constant 0.000000e+00 : f32
    %9 = vector.broadcast %cst_7 : f32 to vector<64x128xf32>
    %10 = arith.maximumf %8, %9 : vector<64x128xf32>
    %c0_8 = arith.constant 0 : index
    %c0_9 = arith.constant 0 : index
    %11 = vector.load %arg5[%c0_8, %c0_9] : memref<64x128xf32, #tpu.memory_space<vmem>>, vector<64x128xf32>
    tpu.vector_store %arg5[%c0_8, %c0_9], %10 {strides = array<i32>} : memref<64x128xf32, #tpu.memory_space<vmem>>, vector<64x128xf32>,
    return
  }
  func.func @transform_0(%arg0: i32) -> (i32, i32) {
    %c0_i32 = arith.constant 0 : i32
    %c0_i32_0 = arith.constant 0 : i32
    return %arg0, %c0_i32 : i32, i32
  }
  func.func @transform_1(%arg0: i32) -> (i32, i32) {
    %c0_i32 = arith.constant 0 : i32
    %c0_i32_0 = arith.constant 0 : i32
    %c0_i32_1 = arith.constant 0 : i32
    return %c0_i32, %c0_i32_0 : i32, i32
  }
  func.func @transform_2(%arg0: i32) -> (i32, i32) {
    %c0_i32 = arith.constant 0 : i32
    %c0_i32_0 = arith.constant 0 : i32
    %c0_i32_1 = arith.constant 0 : i32
    return %c0_i32, %c0_i32_0 : i32, i32
  }
  func.func @transform_3(%arg0: i32) -> (i32, i32) {
    %c0_i32 = arith.constant 0 : i32
    %c0_i32_0 = arith.constant 0 : i32
    %c0_i32_1 = arith.constant 0 : i32
    return %c0_i32, %c0_i32_0 : i32, i32
  }
  func.func @transform_4(%arg0: i32) -> (i32, i32) {
    %c0_i32 = arith.constant 0 : i32
    %c0_i32_0 = arith.constant 0 : i32
    return %arg0, %c0_i32 : i32, i32
  }
}

module attributes {stable_mosaic.version = 11 : i64} {
  func.func @_conv_res_kernel(%arg0: i32, %arg1: memref<64x640xbf16, #tpu.memory_space<vmem>>, %arg2: memref<640x128xbf16, #tpu.memory_space<vmem>>, %arg3: memref<1x128xf32, #tpu.memory_space<vmem>>, %arg4: memref<1x128xf32, #tpu.memory_space<vmem>>, %arg5: memref<64x128xf32, #tpu.memory_space<vmem>>, %arg6: memref<64x128xf32, #tpu.memory_space<vmem>>) attributes {dimension_semantics = [#tpu.dimension_semantics<parallel>], iteration_bounds = array<i64: 2>, scalar_prefetch = 0 : i64, scratch_operands = 0 : i64, tpu.core_type = #tpu.core_type<tc>, window_params = [{transform_indices = @transform_0, window_bounds = array<i64: 64, 640>}, {pipeline_mode = #tpu.pipeline_mode<synchronous>, transform_indices = @transform_1, window_bounds = array<i64: 640, 128>}, {pipeline_mode = #tpu.pipeline_mode<synchronous>, transform_indices = @transform_2, window_bounds = array<i64: 1, 128>}, {pipeline_mode = #tpu.pipeline_mode<synchronous>, transform_indices = @transform_3, window_bounds = array<i64: 1, 128>}, {transform_indices = @transform_4, window_bounds = array<i64: 64, 128>}, {transform_indices = @transform_5, window_bounds = array<i64: 64, 128>}]} {
    %c0 = arith.constant 0 : index
    %c0_0 = arith.constant 0 : index
    %0 = vector.load %arg1[%c0, %c0_0] : memref<64x640xbf16, #tpu.memory_space<vmem>>, vector<64x640xbf16>
    %c0_1 = arith.constant 0 : index
    %c0_2 = arith.constant 0 : index
    %1 = vector.load %arg2[%c0_1, %c0_2] : memref<640x128xbf16, #tpu.memory_space<vmem>>, vector<640x128xbf16>
    %cst = arith.constant dense<0.000000e+00> : vector<64x128xf32>
    %2 = tpu.matmul %0, %1, %cst {dimension_numbers = #tpu.dot_dimension_numbers<[1], [0], [0], [1], [0, 0, 1, 1], [], []>} : vector<64x640xbf16>, vector<640x128xbf16>, vector<64x128xf32> -> vector<64x128xf32>
    %c0_3 = arith.constant 0 : index
    %c0_4 = arith.constant 0 : index
    %3 = vector.load %arg3[%c0_3, %c0_4] : memref<1x128xf32, #tpu.memory_space<vmem>>, vector<1x128xf32>
    %4 = vector.broadcast %3 : vector<1x128xf32> to vector<64x128xf32>
    %5 = arith.mulf %2, %4 : vector<64x128xf32>
    %c0_5 = arith.constant 0 : index
    %c0_6 = arith.constant 0 : index
    %6 = vector.load %arg4[%c0_5, %c0_6] : memref<1x128xf32, #tpu.memory_space<vmem>>, vector<1x128xf32>
    %7 = vector.broadcast %6 : vector<1x128xf32> to vector<64x128xf32>
    %8 = arith.addf %5, %7 : vector<64x128xf32>
    %c0_7 = arith.constant 0 : index
    %c0_8 = arith.constant 0 : index
    %9 = vector.load %arg5[%c0_7, %c0_8] : memref<64x128xf32, #tpu.memory_space<vmem>>, vector<64x128xf32>
    %10 = arith.addf %8, %9 : vector<64x128xf32>
    %cst_9 = arith.constant 0.000000e+00 : f32
    %11 = vector.broadcast %cst_9 : f32 to vector<64x128xf32>
    %12 = arith.maximumf %10, %11 : vector<64x128xf32>
    %c0_10 = arith.constant 0 : index
    %c0_11 = arith.constant 0 : index
    %13 = vector.load %arg6[%c0_10, %c0_11] : memref<64x128xf32, #tpu.memory_space<vmem>>, vector<64x128xf32>
    tpu.vector_store %arg6[%c0_10, %c0_11], %12 {strides = array<i32>} : memref<64x128xf32, #tpu.memory_space<vmem>>, vector<64x128xf32>,
    return
  }
  func.func @transform_0(%arg0: i32) -> (i32, i32) {
    %c0_i32 = arith.constant 0 : i32
    %c0_i32_0 = arith.constant 0 : i32
    return %arg0, %c0_i32 : i32, i32
  }
  func.func @transform_1(%arg0: i32) -> (i32, i32) {
    %c0_i32 = arith.constant 0 : i32
    %c0_i32_0 = arith.constant 0 : i32
    %c0_i32_1 = arith.constant 0 : i32
    return %c0_i32, %c0_i32_0 : i32, i32
  }
  func.func @transform_2(%arg0: i32) -> (i32, i32) {
    %c0_i32 = arith.constant 0 : i32
    %c0_i32_0 = arith.constant 0 : i32
    %c0_i32_1 = arith.constant 0 : i32
    return %c0_i32, %c0_i32_0 : i32, i32
  }
  func.func @transform_3(%arg0: i32) -> (i32, i32) {
    %c0_i32 = arith.constant 0 : i32
    %c0_i32_0 = arith.constant 0 : i32
    %c0_i32_1 = arith.constant 0 : i32
    return %c0_i32, %c0_i32_0 : i32, i32
  }
  func.func @transform_4(%arg0: i32) -> (i32, i32) {
    %c0_i32 = arith.constant 0 : i32
    %c0_i32_0 = arith.constant 0 : i32
    return %arg0, %c0_i32 : i32, i32
  }
  func.func @transform_5(%arg0: i32) -> (i32, i32) {
    %c0_i32 = arith.constant 0 : i32
    %c0_i32_0 = arith.constant 0 : i32
    return %arg0, %c0_i32 : i32, i32
  }
}

module attributes {stable_mosaic.version = 11 : i64} {
  func.func @_conv_ds_kernel(%arg0: i32, %arg1: memref<16x640xbf16, #tpu.memory_space<vmem>>, %arg2: memref<640x128xbf16, #tpu.memory_space<vmem>>, %arg3: memref<1x128xf32, #tpu.memory_space<vmem>>, %arg4: memref<1x128xf32, #tpu.memory_space<vmem>>, %arg5: memref<16x128xbf16, #tpu.memory_space<vmem>>, %arg6: memref<128x128xbf16, #tpu.memory_space<vmem>>, %arg7: memref<1x128xf32, #tpu.memory_space<vmem>>, %arg8: memref<1x128xf32, #tpu.memory_space<vmem>>, %arg9: memref<16x128xf32, #tpu.memory_space<vmem>>, %arg10: memref<16x128xf32, #tpu.memory_space<vmem>>) attributes {dimension_semantics = [#tpu.dimension_semantics<parallel>], iteration_bounds = array<i64: 2>, scalar_prefetch = 0 : i64, scratch_operands = 0 : i64, tpu.core_type = #tpu.core_type<tc>, window_params = [{transform_indices = @transform_0, window_bounds = array<i64: 16, 640>}, {pipeline_mode = #tpu.pipeline_mode<synchronous>, transform_indices = @transform_1, window_bounds = array<i64: 640, 128>}, {pipeline_mode = #tpu.pipeline_mode<synchronous>, transform_indices = @transform_2, window_bounds = array<i64: 1, 128>}, {pipeline_mode = #tpu.pipeline_mode<synchronous>, transform_indices = @transform_3, window_bounds = array<i64: 1, 128>}, {transform_indices = @transform_4, window_bounds = array<i64: 16, 128>}, {pipeline_mode = #tpu.pipeline_mode<synchronous>, transform_indices = @transform_5, window_bounds = array<i64: 128, 128>}, {pipeline_mode = #tpu.pipeline_mode<synchronous>, transform_indices = @transform_6, window_bounds = array<i64: 1, 128>}, {pipeline_mode = #tpu.pipeline_mode<synchronous>, transform_indices = @transform_7, window_bounds = array<i64: 1, 128>}, {transform_indices = @transform_8, window_bounds = array<i64: 16, 128>}, {transform_indices = @transform_9, window_bounds = array<i64: 16, 128>}]} {
    %c0 = arith.constant 0 : index
    %c0_0 = arith.constant 0 : index
    %0 = vector.load %arg1[%c0, %c0_0] : memref<16x640xbf16, #tpu.memory_space<vmem>>, vector<16x640xbf16>
    %c0_1 = arith.constant 0 : index
    %c0_2 = arith.constant 0 : index
    %1 = vector.load %arg2[%c0_1, %c0_2] : memref<640x128xbf16, #tpu.memory_space<vmem>>, vector<640x128xbf16>
    %cst = arith.constant dense<0.000000e+00> : vector<16x128xf32>
    %2 = tpu.matmul %0, %1, %cst {dimension_numbers = #tpu.dot_dimension_numbers<[1], [0], [0], [1], [0, 0, 1, 1], [], []>} : vector<16x640xbf16>, vector<640x128xbf16>, vector<16x128xf32> -> vector<16x128xf32>
    %c0_3 = arith.constant 0 : index
    %c0_4 = arith.constant 0 : index
    %3 = vector.load %arg3[%c0_3, %c0_4] : memref<1x128xf32, #tpu.memory_space<vmem>>, vector<1x128xf32>
    %4 = vector.broadcast %3 : vector<1x128xf32> to vector<16x128xf32>
    %5 = arith.mulf %2, %4 : vector<16x128xf32>
    %c0_5 = arith.constant 0 : index
    %c0_6 = arith.constant 0 : index
    %6 = vector.load %arg4[%c0_5, %c0_6] : memref<1x128xf32, #tpu.memory_space<vmem>>, vector<1x128xf32>
    %7 = vector.broadcast %6 : vector<1x128xf32> to vector<16x128xf32>
    %8 = arith.addf %5, %7 : vector<16x128xf32>
    %cst_7 = arith.constant 0.000000e+00 : f32
    %9 = vector.broadcast %cst_7 : f32 to vector<16x128xf32>
    %10 = arith.maximumf %8, %9 : vector<16x128xf32>
    %c0_8 = arith.constant 0 : index
    %c0_9 = arith.constant 0 : index
    %11 = vector.load %arg9[%c0_8, %c0_9] : memref<16x128xf32, #tpu.memory_space<vmem>>, vector<16x128xf32>
    tpu.vector_store %arg9[%c0_8, %c0_9], %10 {strides = array<i32>} : memref<16x128xf32, #tpu.memory_space<vmem>>, vector<16x128xf32>,
    %c0_10 = arith.constant 0 : index
    %c0_11 = arith.constant 0 : index
    %12 = vector.load %arg5[%c0_10, %c0_11] : memref<16x128xbf16, #tpu.memory_space<vmem>>, vector<16x128xbf16>
    %c0_12 = arith.constant 0 : index
    %c0_13 = arith.constant 0 : index
    %13 = vector.load %arg6[%c0_12, %c0_13] : memref<128x128xbf16, #tpu.memory_space<vmem>>, vector<128x128xbf16>
    %cst_14 = arith.constant dense<0.000000e+00> : vector<16x128xf32>
    %14 = tpu.matmul %12, %13, %cst_14 {dimension_numbers = #tpu.dot_dimension_numbers<[1], [0], [0], [1], [0, 0, 1, 1], [], []>} : vector<16x128xbf16>, vector<128x128xbf16>, vector<16x128xf32> -> vector<16x128xf32>
    %c0_15 = arith.constant 0 : index
    %c0_16 = arith.constant 0 : index
    %15 = vector.load %arg7[%c0_15, %c0_16] : memref<1x128xf32, #tpu.memory_space<vmem>>, vector<1x128xf32>
    %16 = vector.broadcast %15 : vector<1x128xf32> to vector<16x128xf32>
    %17 = arith.mulf %14, %16 : vector<16x128xf32>
    %c0_17 = arith.constant 0 : index
    %c0_18 = arith.constant 0 : index
    %18 = vector.load %arg8[%c0_17, %c0_18] : memref<1x128xf32, #tpu.memory_space<vmem>>, vector<1x128xf32>
    %19 = vector.broadcast %18 : vector<1x128xf32> to vector<16x128xf32>
    %20 = arith.addf %17, %19 : vector<16x128xf32>
    %c0_19 = arith.constant 0 : index
    %c0_20 = arith.constant 0 : index
    %21 = vector.load %arg10[%c0_19, %c0_20] : memref<16x128xf32, #tpu.memory_space<vmem>>, vector<16x128xf32>
    tpu.vector_store %arg10[%c0_19, %c0_20], %20 {strides = array<i32>} : memref<16x128xf32, #tpu.memory_space<vmem>>, vector<16x128xf32>,
    return
  }
  func.func @transform_0(%arg0: i32) -> (i32, i32) {
    %c0_i32 = arith.constant 0 : i32
    %c0_i32_0 = arith.constant 0 : i32
    return %arg0, %c0_i32 : i32, i32
  }
  func.func @transform_1(%arg0: i32) -> (i32, i32) {
    %c0_i32 = arith.constant 0 : i32
    %c0_i32_0 = arith.constant 0 : i32
    %c0_i32_1 = arith.constant 0 : i32
    return %c0_i32, %c0_i32_0 : i32, i32
  }
  func.func @transform_2(%arg0: i32) -> (i32, i32) {
    %c0_i32 = arith.constant 0 : i32
    %c0_i32_0 = arith.constant 0 : i32
    %c0_i32_1 = arith.constant 0 : i32
    return %c0_i32, %c0_i32_0 : i32, i32
  }
  func.func @transform_3(%arg0: i32) -> (i32, i32) {
    %c0_i32 = arith.constant 0 : i32
    %c0_i32_0 = arith.constant 0 : i32
    %c0_i32_1 = arith.constant 0 : i32
    return %c0_i32, %c0_i32_0 : i32, i32
  }
  func.func @transform_4(%arg0: i32) -> (i32, i32) {
    %c0_i32 = arith.constant 0 : i32
    %c0_i32_0 = arith.constant 0 : i32
    return %arg0, %c0_i32 : i32, i32
  }
  func.func @transform_5(%arg0: i32) -> (i32, i32) {
    %c0_i32 = arith.constant 0 : i32
    %c0_i32_0 = arith.constant 0 : i32
    %c0_i32_1 = arith.constant 0 : i32
    return %c0_i32, %c0_i32_0 : i32, i32
  }
  func.func @transform_6(%arg0: i32) -> (i32, i32) {
    %c0_i32 = arith.constant 0 : i32
    %c0_i32_0 = arith.constant 0 : i32
    %c0_i32_1 = arith.constant 0 : i32
    return %c0_i32, %c0_i32_0 : i32, i32
  }
  func.func @transform_7(%arg0: i32) -> (i32, i32) {
    %c0_i32 = arith.constant 0 : i32
    %c0_i32_0 = arith.constant 0 : i32
    %c0_i32_1 = arith.constant 0 : i32
    return %c0_i32, %c0_i32_0 : i32, i32
  }
  func.func @transform_8(%arg0: i32) -> (i32, i32) {
    %c0_i32 = arith.constant 0 : i32
    %c0_i32_0 = arith.constant 0 : i32
    return %arg0, %c0_i32 : i32, i32
  }
  func.func @transform_9(%arg0: i32) -> (i32, i32) {
    %c0_i32 = arith.constant 0 : i32
    %c0_i32_0 = arith.constant 0 : i32
    return %arg0, %c0_i32 : i32, i32
  }
}

module attributes {stable_mosaic.version = 11 : i64} {
  func.func @_conv_kernel(%arg0: i32, %arg1: memref<16x1152xbf16, #tpu.memory_space<vmem>>, %arg2: memref<1152x128xbf16, #tpu.memory_space<vmem>>, %arg3: memref<1x128xf32, #tpu.memory_space<vmem>>, %arg4: memref<1x128xf32, #tpu.memory_space<vmem>>, %arg5: memref<16x128xf32, #tpu.memory_space<vmem>>) attributes {dimension_semantics = [#tpu.dimension_semantics<parallel>], iteration_bounds = array<i64: 2>, scalar_prefetch = 0 : i64, scratch_operands = 0 : i64, tpu.core_type = #tpu.core_type<tc>, window_params = [{transform_indices = @transform_0, window_bounds = array<i64: 16, 1152>}, {pipeline_mode = #tpu.pipeline_mode<synchronous>, transform_indices = @transform_1, window_bounds = array<i64: 1152, 128>}, {pipeline_mode = #tpu.pipeline_mode<synchronous>, transform_indices = @transform_2, window_bounds = array<i64: 1, 128>}, {pipeline_mode = #tpu.pipeline_mode<synchronous>, transform_indices = @transform_3, window_bounds = array<i64: 1, 128>}, {transform_indices = @transform_4, window_bounds = array<i64: 16, 128>}]} {
    %c0 = arith.constant 0 : index
    %c0_0 = arith.constant 0 : index
    %0 = vector.load %arg1[%c0, %c0_0] : memref<16x1152xbf16, #tpu.memory_space<vmem>>, vector<16x1152xbf16>
    %c0_1 = arith.constant 0 : index
    %c0_2 = arith.constant 0 : index
    %1 = vector.load %arg2[%c0_1, %c0_2] : memref<1152x128xbf16, #tpu.memory_space<vmem>>, vector<1152x128xbf16>
    %cst = arith.constant dense<0.000000e+00> : vector<16x128xf32>
    %2 = tpu.matmul %0, %1, %cst {dimension_numbers = #tpu.dot_dimension_numbers<[1], [0], [0], [1], [0, 0, 1, 1], [], []>} : vector<16x1152xbf16>, vector<1152x128xbf16>, vector<16x128xf32> -> vector<16x128xf32>
    %c0_3 = arith.constant 0 : index
    %c0_4 = arith.constant 0 : index
    %3 = vector.load %arg3[%c0_3, %c0_4] : memref<1x128xf32, #tpu.memory_space<vmem>>, vector<1x128xf32>
    %4 = vector.broadcast %3 : vector<1x128xf32> to vector<16x128xf32>
    %5 = arith.mulf %2, %4 : vector<16x128xf32>
    %c0_5 = arith.constant 0 : index
    %c0_6 = arith.constant 0 : index
    %6 = vector.load %arg4[%c0_5, %c0_6] : memref<1x128xf32, #tpu.memory_space<vmem>>, vector<1x128xf32>
    %7 = vector.broadcast %6 : vector<1x128xf32> to vector<16x128xf32>
    %8 = arith.addf %5, %7 : vector<16x128xf32>
    %cst_7 = arith.constant 0.000000e+00 : f32
    %9 = vector.broadcast %cst_7 : f32 to vector<16x128xf32>
    %10 = arith.maximumf %8, %9 : vector<16x128xf32>
    %c0_8 = arith.constant 0 : index
    %c0_9 = arith.constant 0 : index
    %11 = vector.load %arg5[%c0_8, %c0_9] : memref<16x128xf32, #tpu.memory_space<vmem>>, vector<16x128xf32>
    tpu.vector_store %arg5[%c0_8, %c0_9], %10 {strides = array<i32>} : memref<16x128xf32, #tpu.memory_space<vmem>>, vector<16x128xf32>,
    return
  }
  func.func @transform_0(%arg0: i32) -> (i32, i32) {
    %c0_i32 = arith.constant 0 : i32
    %c0_i32_0 = arith.constant 0 : i32
    return %arg0, %c0_i32 : i32, i32
  }
  func.func @transform_1(%arg0: i32) -> (i32, i32) {
    %c0_i32 = arith.constant 0 : i32
    %c0_i32_0 = arith.constant 0 : i32
    %c0_i32_1 = arith.constant 0 : i32
    return %c0_i32, %c0_i32_0 : i32, i32
  }
  func.func @transform_2(%arg0: i32) -> (i32, i32) {
    %c0_i32 = arith.constant 0 : i32
    %c0_i32_0 = arith.constant 0 : i32
    %c0_i32_1 = arith.constant 0 : i32
    return %c0_i32, %c0_i32_0 : i32, i32
  }
  func.func @transform_3(%arg0: i32) -> (i32, i32) {
    %c0_i32 = arith.constant 0 : i32
    %c0_i32_0 = arith.constant 0 : i32
    %c0_i32_1 = arith.constant 0 : i32
    return %c0_i32, %c0_i32_0 : i32, i32
  }
  func.func @transform_4(%arg0: i32) -> (i32, i32) {
    %c0_i32 = arith.constant 0 : i32
    %c0_i32_0 = arith.constant 0 : i32
    return %arg0, %c0_i32 : i32, i32
  }
}

module attributes {stable_mosaic.version = 11 : i64} {
  func.func @_conv_res_kernel(%arg0: i32, %arg1: memref<16x1152xbf16, #tpu.memory_space<vmem>>, %arg2: memref<1152x128xbf16, #tpu.memory_space<vmem>>, %arg3: memref<1x128xf32, #tpu.memory_space<vmem>>, %arg4: memref<1x128xf32, #tpu.memory_space<vmem>>, %arg5: memref<16x128xf32, #tpu.memory_space<vmem>>, %arg6: memref<16x128xf32, #tpu.memory_space<vmem>>) attributes {dimension_semantics = [#tpu.dimension_semantics<parallel>], iteration_bounds = array<i64: 2>, scalar_prefetch = 0 : i64, scratch_operands = 0 : i64, tpu.core_type = #tpu.core_type<tc>, window_params = [{transform_indices = @transform_0, window_bounds = array<i64: 16, 1152>}, {pipeline_mode = #tpu.pipeline_mode<synchronous>, transform_indices = @transform_1, window_bounds = array<i64: 1152, 128>}, {pipeline_mode = #tpu.pipeline_mode<synchronous>, transform_indices = @transform_2, window_bounds = array<i64: 1, 128>}, {pipeline_mode = #tpu.pipeline_mode<synchronous>, transform_indices = @transform_3, window_bounds = array<i64: 1, 128>}, {transform_indices = @transform_4, window_bounds = array<i64: 16, 128>}, {transform_indices = @transform_5, window_bounds = array<i64: 16, 128>}]} {
    %c0 = arith.constant 0 : index
    %c0_0 = arith.constant 0 : index
    %0 = vector.load %arg1[%c0, %c0_0] : memref<16x1152xbf16, #tpu.memory_space<vmem>>, vector<16x1152xbf16>
    %c0_1 = arith.constant 0 : index
    %c0_2 = arith.constant 0 : index
    %1 = vector.load %arg2[%c0_1, %c0_2] : memref<1152x128xbf16, #tpu.memory_space<vmem>>, vector<1152x128xbf16>
    %cst = arith.constant dense<0.000000e+00> : vector<16x128xf32>
    %2 = tpu.matmul %0, %1, %cst {dimension_numbers = #tpu.dot_dimension_numbers<[1], [0], [0], [1], [0, 0, 1, 1], [], []>} : vector<16x1152xbf16>, vector<1152x128xbf16>, vector<16x128xf32> -> vector<16x128xf32>
    %c0_3 = arith.constant 0 : index
    %c0_4 = arith.constant 0 : index
    %3 = vector.load %arg3[%c0_3, %c0_4] : memref<1x128xf32, #tpu.memory_space<vmem>>, vector<1x128xf32>
    %4 = vector.broadcast %3 : vector<1x128xf32> to vector<16x128xf32>
    %5 = arith.mulf %2, %4 : vector<16x128xf32>
    %c0_5 = arith.constant 0 : index
    %c0_6 = arith.constant 0 : index
    %6 = vector.load %arg4[%c0_5, %c0_6] : memref<1x128xf32, #tpu.memory_space<vmem>>, vector<1x128xf32>
    %7 = vector.broadcast %6 : vector<1x128xf32> to vector<16x128xf32>
    %8 = arith.addf %5, %7 : vector<16x128xf32>
    %c0_7 = arith.constant 0 : index
    %c0_8 = arith.constant 0 : index
    %9 = vector.load %arg5[%c0_7, %c0_8] : memref<16x128xf32, #tpu.memory_space<vmem>>, vector<16x128xf32>
    %10 = arith.addf %8, %9 : vector<16x128xf32>
    %cst_9 = arith.constant 0.000000e+00 : f32
    %11 = vector.broadcast %cst_9 : f32 to vector<16x128xf32>
    %12 = arith.maximumf %10, %11 : vector<16x128xf32>
    %c0_10 = arith.constant 0 : index
    %c0_11 = arith.constant 0 : index
    %13 = vector.load %arg6[%c0_10, %c0_11] : memref<16x128xf32, #tpu.memory_space<vmem>>, vector<16x128xf32>
    tpu.vector_store %arg6[%c0_10, %c0_11], %12 {strides = array<i32>} : memref<16x128xf32, #tpu.memory_space<vmem>>, vector<16x128xf32>,
    return
  }
  func.func @transform_0(%arg0: i32) -> (i32, i32) {
    %c0_i32 = arith.constant 0 : i32
    %c0_i32_0 = arith.constant 0 : i32
    return %arg0, %c0_i32 : i32, i32
  }
  func.func @transform_1(%arg0: i32) -> (i32, i32) {
    %c0_i32 = arith.constant 0 : i32
    %c0_i32_0 = arith.constant 0 : i32
    %c0_i32_1 = arith.constant 0 : i32
    return %c0_i32, %c0_i32_0 : i32, i32
  }
  func.func @transform_2(%arg0: i32) -> (i32, i32) {
    %c0_i32 = arith.constant 0 : i32
    %c0_i32_0 = arith.constant 0 : i32
    %c0_i32_1 = arith.constant 0 : i32
    return %c0_i32, %c0_i32_0 : i32, i32
  }
  func.func @transform_3(%arg0: i32) -> (i32, i32) {
    %c0_i32 = arith.constant 0 : i32
    %c0_i32_0 = arith.constant 0 : i32
    %c0_i32_1 = arith.constant 0 : i32
    return %c0_i32, %c0_i32_0 : i32, i32
  }
  func.func @transform_4(%arg0: i32) -> (i32, i32) {
    %c0_i32 = arith.constant 0 : i32
    %c0_i32_0 = arith.constant 0 : i32
    return %arg0, %c0_i32 : i32, i32
  }
  func.func @transform_5(%arg0: i32) -> (i32, i32) {
    %c0_i32 = arith.constant 0 : i32
    %c0_i32_0 = arith.constant 0 : i32
    return %arg0, %c0_i32 : i32, i32
  }
}

module attributes {stable_mosaic.version = 11 : i64} {
  func.func @_conv_res_kernel(%arg0: i32, %arg1: memref<16x1152xbf16, #tpu.memory_space<vmem>>, %arg2: memref<1152x128xbf16, #tpu.memory_space<vmem>>, %arg3: memref<1x128xf32, #tpu.memory_space<vmem>>, %arg4: memref<1x128xf32, #tpu.memory_space<vmem>>, %arg5: memref<16x128xf32, #tpu.memory_space<vmem>>, %arg6: memref<16x128xf32, #tpu.memory_space<vmem>>) attributes {dimension_semantics = [#tpu.dimension_semantics<parallel>], iteration_bounds = array<i64: 2>, scalar_prefetch = 0 : i64, scratch_operands = 0 : i64, tpu.core_type = #tpu.core_type<tc>, window_params = [{transform_indices = @transform_0, window_bounds = array<i64: 16, 1152>}, {pipeline_mode = #tpu.pipeline_mode<synchronous>, transform_indices = @transform_1, window_bounds = array<i64: 1152, 128>}, {pipeline_mode = #tpu.pipeline_mode<synchronous>, transform_indices = @transform_2, window_bounds = array<i64: 1, 128>}, {pipeline_mode = #tpu.pipeline_mode<synchronous>, transform_indices = @transform_3, window_bounds = array<i64: 1, 128>}, {transform_indices = @transform_4, window_bounds = array<i64: 16, 128>}, {transform_indices = @transform_5, window_bounds = array<i64: 16, 128>}]} {
    %c0 = arith.constant 0 : index
    %c0_0 = arith.constant 0 : index
    %0 = vector.load %arg1[%c0, %c0_0] : memref<16x1152xbf16, #tpu.memory_space<vmem>>, vector<16x1152xbf16>
    %c0_1 = arith.constant 0 : index
    %c0_2 = arith.constant 0 : index
    %1 = vector.load %arg2[%c0_1, %c0_2] : memref<1152x128xbf16, #tpu.memory_space<vmem>>, vector<1152x128xbf16>
    %cst = arith.constant dense<0.000000e+00> : vector<16x128xf32>
    %2 = tpu.matmul %0, %1, %cst {dimension_numbers = #tpu.dot_dimension_numbers<[1], [0], [0], [1], [0, 0, 1, 1], [], []>} : vector<16x1152xbf16>, vector<1152x128xbf16>, vector<16x128xf32> -> vector<16x128xf32>
    %c0_3 = arith.constant 0 : index
    %c0_4 = arith.constant 0 : index
    %3 = vector.load %arg3[%c0_3, %c0_4] : memref<1x128xf32, #tpu.memory_space<vmem>>, vector<1x128xf32>
    %4 = vector.broadcast %3 : vector<1x128xf32> to vector<16x128xf32>
    %5 = arith.mulf %2, %4 : vector<16x128xf32>
    %c0_5 = arith.constant 0 : index
    %c0_6 = arith.constant 0 : index
    %6 = vector.load %arg4[%c0_5, %c0_6] : memref<1x128xf32, #tpu.memory_space<vmem>>, vector<1x128xf32>
    %7 = vector.broadcast %6 : vector<1x128xf32> to vector<16x128xf32>
    %8 = arith.addf %5, %7 : vector<16x128xf32>
    %c0_7 = arith.constant 0 : index
    %c0_8 = arith.constant 0 : index
    %9 = vector.load %arg5[%c0_7, %c0_8] : memref<16x128xf32, #tpu.memory_space<vmem>>, vector<16x128xf32>
    %10 = arith.addf %8, %9 : vector<16x128xf32>
    %cst_9 = arith.constant 0.000000e+00 : f32
    %11 = vector.broadcast %cst_9 : f32 to vector<16x128xf32>
    %12 = arith.maximumf %10, %11 : vector<16x128xf32>
    %c0_10 = arith.constant 0 : index
    %c0_11 = arith.constant 0 : index
    %13 = vector.load %arg6[%c0_10, %c0_11] : memref<16x128xf32, #tpu.memory_space<vmem>>, vector<16x128xf32>
    tpu.vector_store %arg6[%c0_10, %c0_11], %12 {strides = array<i32>} : memref<16x128xf32, #tpu.memory_space<vmem>>, vector<16x128xf32>,
    return
  }
  func.func @transform_0(%arg0: i32) -> (i32, i32) {
    %c0_i32 = arith.constant 0 : i32
    %c0_i32_0 = arith.constant 0 : i32
    return %arg0, %c0_i32 : i32, i32
  }
  func.func @transform_1(%arg0: i32) -> (i32, i32) {
    %c0_i32 = arith.constant 0 : i32
    %c0_i32_0 = arith.constant 0 : i32
    %c0_i32_1 = arith.constant 0 : i32
    return %c0_i32, %c0_i32_0 : i32, i32
  }
  func.func @transform_2(%arg0: i32) -> (i32, i32) {
    %c0_i32 = arith.constant 0 : i32
    %c0_i32_0 = arith.constant 0 : i32
    %c0_i32_1 = arith.constant 0 : i32
    return %c0_i32, %c0_i32_0 : i32, i32
  }
  func.func @transform_3(%arg0: i32) -> (i32, i32) {
    %c0_i32 = arith.constant 0 : i32
    %c0_i32_0 = arith.constant 0 : i32
    %c0_i32_1 = arith.constant 0 : i32
    return %c0_i32, %c0_i32_0 : i32, i32
  }
  func.func @transform_4(%arg0: i32) -> (i32, i32) {
    %c0_i32 = arith.constant 0 : i32
    %c0_i32_0 = arith.constant 0 : i32
    return %arg0, %c0_i32 : i32, i32
  }
  func.func @transform_5(%arg0: i32) -> (i32, i32) {
    %c0_i32 = arith.constant 0 : i32
    %c0_i32_0 = arith.constant 0 : i32
    return %arg0, %c0_i32 : i32, i32
  }
}

</mosaic_0001>

<bundles_post_ra>
// kernel: net_forward.11
= control target key start
LH: loop header
LB: loop body
LE: loop exit
PB: predicated region body
PF: predicated region fallthrough
CT: control target
= control target key end

     0   :  { %s788_s6 = smov 0   ;;  %s790_s7 = smov 0   ;;  %s1076_s0 = inlined_call_operand.vmem [shape: f32[9,128,128], index: 0, kind: input, shape index: {}]   ;;  %s1077_s1 = inlined_call_operand.vmem [shape: f32[128,128], index: 1, kind: output, shape index: {}]  }
   0x1   :  { %s792_s8 = smov 0  }
   0x2 LB: > { %s652_s9 = sadd.s32 4294967295, %s776_s8   ;;  %s805_s10 = sadd.s32 1, %s776_s8   ;;  %s776_s8 = sphi %s792_s8, %s1080_s8   ;;  %s772_s7 = sphi %s790_s7, %s1079_s7   ;;  %s768_s6 = sphi %s788_s6, %s1078_s6  }
   0x3   : > { %s15_s11 = ssub.s32 %s776_s8, %s805_s10  ;;  %s18_s12 = sadd.s32 1, %s772_s7 }
   0x4   : > { %p16_p0 = scmp.eq.s32.totalorder %s15_s11, 0  ;;  %p25_p1 = scmp.ne.s32.totalorder %s772_s7, %s768_s6 }
   0x5   : > { %p26_p2 = scmp.eq.s32.totalorder %s776_s8, 0  ;;  %p655_p4 = scmp.ge.s32.totalorder %s776_s8, 2 }
   0x6   : > { %s814_s13 = scalar_select %p16_p0, %s772_s7, %s18_s12  }
   0x7   : > { %p27_p3 = por %p26_p2, %p25_p1  ;;  %77 = sbr.rel (%p655_p4) target bundleno = 55 (0x37), region = 16 }
   0xe   : > { %80 = sbr.rel (!%p27_p3) target bundleno = 55 (0x37), region = 20  ;;  %s82_s14 = sand.u32 (%p27_p3), 1, %s772_s7  }
   0xf   : > { %s727_s15 = sshll.u32 (%p27_p3), %s776_s8, 6  ;;  %s728_s16 = smul.u32 (%p27_p3), 576, %s82_s14 }
  0x10   : > { %s822_s19 = scalar_lea.vmem (%p27_p3), %s1076_s0, %s727_s15 }
  0x11   : > { %v257_v0 = vld [vmem:[%s822_s19] sm:$0xff] (%p27_p3)  ;;  %v259_v1 = vld [vmem:[%s822_s19 + $0x8] sm:$0xff] (%p27_p3)  ;;  %v261_v2 = vld [vmem:[%s822_s19 + $0x10] sm:$0xff] (%p27_p3)  ;;  %s830_s20 = scalar_lea.vmem (%p27_p3), [#allocation2], %s728_s16 }
  0x12   : > { %v263_v3 = vld [vmem:[%s822_s19 + $0x18] sm:$0xff] (%p27_p3)  ;;  %v265_v4 = vld [vmem:[%s822_s19 + $0x20] sm:$0xff] (%p27_p3)  ;;  %v267_v5 = vld [vmem:[%s822_s19 + $0x28] sm:$0xff] (%p27_p3)  ;;  %258 = vst [vmem:[%s830_s20] sm:$0xff] (%p27_p3), %v257_v0 }
  0x13   : > { %260 = vst [vmem:[%s830_s20 + $0x8] sm:$0xff] (%p27_p3), %v259_v1  ;;  %262 = vst [vmem:[%s830_s20 + $0x10] sm:$0xff] (%p27_p3), %v261_v2  ;;  %v269_v6 = vld [vmem:[%s822_s19 + $0x30] sm:$0xff] (%p27_p3)  ;;  %v271_v7 = vld [vmem:[%s822_s19 + $0x38] sm:$0xff] (%p27_p3) }
  0x14   : > { %264 = vst [vmem:[%s830_s20 + $0x18] sm:$0xff] (%p27_p3), %v263_v3  ;;  %266 = vst [vmem:[%s830_s20 + $0x20] sm:$0xff] (%p27_p3), %v265_v4  ;;  %v273_v8 = vld [vmem:[%s822_s19 + $0x80] sm:$0xff] (%p27_p3)  ;;  %v275_v9 = vld [vmem:[%s822_s19 + $0x88] sm:$0xff] (%p27_p3) }
  0x15   : > { %268 = vst [vmem:[%s830_s20 + $0x28] sm:$0xff] %v267_v5  ;;  %270 = vst [vmem:[%s830_s20 + $0x30] sm:$0xff] %v269_v6  ;;  %v277_v10 = vld [vmem:[%s822_s19 + $0x90] sm:$0xff]  ;;  %v279_v11 = vld [vmem:[%s822_s19 + $0x98] sm:$0xff] }
  0x16   : > { %272 = vst [vmem:[%s830_s20 + $0x38] sm:$0xff] %v271_v7  ;;  %274 = vst [vmem:[%s830_s20 + $0x40] sm:$0xff] %v273_v8  ;;  %v281_v12 = vld [vmem:[%s822_s19 + $0xa0] sm:$0xff]  ;;  %v283_v13 = vld [vmem:[%s822_s19 + $0xa8] sm:$0xff] }
  0x17   : > { %276 = vst [vmem:[%s830_s20 + $0x48] sm:$0xff] %v275_v9  ;;  %278 = vst [vmem:[%s830_s20 + $0x50] sm:$0xff] %v277_v10  ;;  %v285_v14 = vld [vmem:[%s822_s19 + $0xb0] sm:$0xff]  ;;  %v287_v15 = vld [vmem:[%s822_s19 + $0xb8] sm:$0xff] }
  0x18   : > { %280 = vst [vmem:[%s830_s20 + $0x58] sm:$0xff] %v279_v11  ;;  %282 = vst [vmem:[%s830_s20 + $0x60] sm:$0xff] %v281_v12  ;;  %v289_v16 = vld [vmem:[%s822_s19 + $0x100] sm:$0xff]  ;;  %v291_v17 = vld [vmem:[%s822_s19 + $0x108] sm:$0xff] }
  0x19   : > { %284 = vst [vmem:[%s830_s20 + $0x68] sm:$0xff] %v283_v13  ;;  %286 = vst [vmem:[%s830_s20 + $0x70] sm:$0xff] %v285_v14  ;;  %v293_v18 = vld [vmem:[%s822_s19 + $0x110] sm:$0xff]  ;;  %v295_v19 = vld [vmem:[%s822_s19 + $0x118] sm:$0xff] }
  0x1a   : > { %288 = vst [vmem:[%s830_s20 + $0x78] sm:$0xff] %v287_v15  ;;  %290 = vst [vmem:[%s830_s20 + $0x80] sm:$0xff] %v289_v16  ;;  %v297_v20 = vld [vmem:[%s822_s19 + $0x120] sm:$0xff]  ;;  %v299_v21 = vld [vmem:[%s822_s19 + $0x128] sm:$0xff] }
  0x1b   : > { %292 = vst [vmem:[%s830_s20 + $0x88] sm:$0xff] %v291_v17  ;;  %294 = vst [vmem:[%s830_s20 + $0x90] sm:$0xff] %v293_v18  ;;  %v301_v22 = vld [vmem:[%s822_s19 + $0x130] sm:$0xff]  ;;  %v303_v23 = vld [vmem:[%s822_s19 + $0x138] sm:$0xff] }
  0x1c   : > { %296 = vst [vmem:[%s830_s20 + $0x98] sm:$0xff] %v295_v19  ;;  %298 = vst [vmem:[%s830_s20 + $0xa0] sm:$0xff] %v297_v20  ;;  %v305_v24 = vld [vmem:[%s822_s19 + $0x180] sm:$0xff]  ;;  %v307_v25 = vld [vmem:[%s822_s19 + $0x188] sm:$0xff] }
  0x1d   : > { %300 = vst [vmem:[%s830_s20 + $0xa8] sm:$0xff] %v299_v21  ;;  %302 = vst [vmem:[%s830_s20 + $0xb0] sm:$0xff] %v301_v22  ;;  %v309_v26 = vld [vmem:[%s822_s19 + $0x190] sm:$0xff]  ;;  %v311_v27 = vld [vmem:[%s822_s19 + $0x198] sm:$0xff] }
  0x1e   : > { %304 = vst [vmem:[%s830_s20 + $0xb8] sm:$0xff] %v303_v23  ;;  %306 = vst [vmem:[%s830_s20 + $0xc0] sm:$0xff] %v305_v24  ;;  %v313_v28 = vld [vmem:[%s822_s19 + $0x1a0] sm:$0xff]  ;;  %v315_v29 = vld [vmem:[%s822_s19 + $0x1a8] sm:$0xff] }
  0x1f   : > { %308 = vst [vmem:[%s830_s20 + $0xc8] sm:$0xff] %v307_v25  ;;  %310 = vst [vmem:[%s830_s20 + $0xd0] sm:$0xff] %v309_v26  ;;  %v317_v30 = vld [vmem:[%s822_s19 + $0x1b0] sm:$0xff]  ;;  %v319_v31 = vld [vmem:[%s822_s19 + $0x1b8] sm:$0xff] }
  0x20   : > { %312 = vst [vmem:[%s830_s20 + $0xd8] sm:$0xff] %v311_v27  ;;  %314 = vst [vmem:[%s830_s20 + $0xe0] sm:$0xff] %v313_v28  ;;  %v321_v32 = vld [vmem:[%s822_s19 + $0x200] sm:$0xff]  ;;  %v323_v33 = vld [vmem:[%s822_s19 + $0x208] sm:$0xff] }
  0x21   : > { %316 = vst [vmem:[%s830_s20 + $0xe8] sm:$0xff] %v315_v29  ;;  %318 = vst [vmem:[%s830_s20 + $0xf0] sm:$0xff] %v317_v30  ;;  %v325_v34 = vld [vmem:[%s822_s19 + $0x210] sm:$0xff]  ;;  %v327_v35 = vld [vmem:[%s822_s19 + $0x218] sm:$0xff] }
  0x22   : > { %320 = vst [vmem:[%s830_s20 + $0xf8] sm:$0xff] %v319_v31  ;;  %322 = vst [vmem:[%s830_s20 + $0x100] sm:$0xff] %v321_v32  ;;  %v329_v36 = vld [vmem:[%s822_s19 + $0x220] sm:$0xff]  ;;  %v331_v37 = vld [vmem:[%s822_s19 + $0x228] sm:$0xff] }
  0x23   : > { %324 = vst [vmem:[%s830_s20 + $0x108] sm:$0xff] %v323_v33  ;;  %326 = vst [vmem:[%s830_s20 + $0x110] sm:$0xff] %v325_v34  ;;  %v333_v38 = vld [vmem:[%s822_s19 + $0x230] sm:$0xff]  ;;  %v335_v39 = vld [vmem:[%s822_s19 + $0x238] sm:$0xff] }
  0x24   : > { %328 = vst [vmem:[%s830_s20 + $0x118] sm:$0xff] %v327_v35  ;;  %330 = vst [vmem:[%s830_s20 + $0x120] sm:$0xff] %v329_v36  ;;  %v337_v40 = vld [vmem:[%s822_s19 + $0x280] sm:$0xff]  ;;  %v339_v41 = vld [vmem:[%s822_s19 + $0x288] sm:$0xff] }
  0x25   : > { %332 = vst [vmem:[%s830_s20 + $0x128] sm:$0xff] %v331_v37  ;;  %334 = vst [vmem:[%s830_s20 + $0x130] sm:$0xff] %v333_v38  ;;  %v341_v42 = vld [vmem:[%s822_s19 + $0x290] sm:$0xff]  ;;  %v343_v43 = vld [vmem:[%s822_s19 + $0x298] sm:$0xff] }
  0x26   : > { %336 = vst [vmem:[%s830_s20 + $0x138] sm:$0xff] %v335_v39  ;;  %338 = vst [vmem:[%s830_s20 + $0x140] sm:$0xff] %v337_v40  ;;  %v345_v44 = vld [vmem:[%s822_s19 + $0x2a0] sm:$0xff]  ;;  %v347_v45 = vld [vmem:[%s822_s19 + $0x2a8] sm:$0xff] }
  0x27   : > { %340 = vst [vmem:[%s830_s20 + $0x148] sm:$0xff] %v339_v41  ;;  %342 = vst [vmem:[%s830_s20 + $0x150] sm:$0xff] %v341_v42  ;;  %v349_v46 = vld [vmem:[%s822_s19 + $0x2b0] sm:$0xff]  ;;  %v351_v47 = vld [vmem:[%s822_s19 + $0x2b8] sm:$0xff] }
  0x28   : > { %344 = vst [vmem:[%s830_s20 + $0x158] sm:$0xff] %v343_v43  ;;  %346 = vst [vmem:[%s830_s20 + $0x160] sm:$0xff] %v345_v44  ;;  %v353_v48 = vld [vmem:[%s822_s19 + $0x300] sm:$0xff]  ;;  %v355_v49 = vld [vmem:[%s822_s19 + $0x308] sm:$0xff] }
  0x29   : > { %348 = vst [vmem:[%s830_s20 + $0x168] sm:$0xff] %v347_v45  ;;  %350 = vst [vmem:[%s830_s20 + $0x170] sm:$0xff] %v349_v46  ;;  %v357_v50 = vld [vmem:[%s822_s19 + $0x310] sm:$0xff]  ;;  %v359_v51 = vld [vmem:[%s822_s19 + $0x318] sm:$0xff] }
  0x2a   : > { %352 = vst [vmem:[%s830_s20 + $0x178] sm:$0xff] %v351_v47  ;;  %354 = vst [vmem:[%s830_s20 + $0x180] sm:$0xff] %v353_v48  ;;  %v361_v52 = vld [vmem:[%s822_s19 + $0x320] sm:$0xff]  ;;  %v363_v53 = vld [vmem:[%s822_s19 + $0x328] sm:$0xff] }
  0x2b   : > { %356 = vst [vmem:[%s830_s20 + $0x188] sm:$0xff] %v355_v49  ;;  %358 = vst [vmem:[%s830_s20 + $0x190] sm:$0xff] %v357_v50  ;;  %v365_v54 = vld [vmem:[%s822_s19 + $0x330] sm:$0xff]  ;;  %v367_v55 = vld [vmem:[%s822_s19 + $0x338] sm:$0xff] }
  0x2c   : > { %360 = vst [vmem:[%s830_s20 + $0x198] sm:$0xff] %v359_v51  ;;  %362 = vst [vmem:[%s830_s20 + $0x1a0] sm:$0xff] %v361_v52  ;;  %v369_v56 = vld [vmem:[%s822_s19 + $0x380] sm:$0xff]  ;;  %v371_v57 = vld [vmem:[%s822_s19 + $0x388] sm:$0xff] }
  0x2d   : > { %364 = vst [vmem:[%s830_s20 + $0x1a8] sm:$0xff] %v363_v53  ;;  %366 = vst [vmem:[%s830_s20 + $0x1b0] sm:$0xff] %v365_v54  ;;  %v373_v58 = vld [vmem:[%s822_s19 + $0x390] sm:$0xff]  ;;  %v375_v59 = vld [vmem:[%s822_s19 + $0x398] sm:$0xff] }
  0x2e   : > { %368 = vst [vmem:[%s830_s20 + $0x1b8] sm:$0xff] %v367_v55  ;;  %370 = vst [vmem:[%s830_s20 + $0x1c0] sm:$0xff] %v369_v56  ;;  %v377_v60 = vld [vmem:[%s822_s19 + $0x3a0] sm:$0xff]  ;;  %v379_v61 = vld [vmem:[%s822_s19 + $0x3a8] sm:$0xff] }
  0x2f   : > { %372 = vst [vmem:[%s830_s20 + $0x1c8] sm:$0xff] %v371_v57  ;;  %374 = vst [vmem:[%s830_s20 + $0x1d0] sm:$0xff] %v373_v58  ;;  %v381_v62 = vld [vmem:[%s822_s19 + $0x3b0] sm:$0xff]  ;;  %v383_v63 = vld [vmem:[%s822_s19 + $0x3b8] sm:$0xff] }
  0x30   : > { %376 = vst [vmem:[%s830_s20 + $0x1d8] sm:$0xff] %v375_v59  ;;  %378 = vst [vmem:[%s830_s20 + $0x1e0] sm:$0xff] %v377_v60  ;;  %v385_v0 = vld [vmem:[%s822_s19 + $0x400] sm:$0xff]  ;;  %v387_v1 = vld [vmem:[%s822_s19 + $0x408] sm:$0xff] }
  0x31   : > { %380 = vst [vmem:[%s830_s20 + $0x1e8] sm:$0xff] %v379_v61  ;;  %382 = vst [vmem:[%s830_s20 + $0x1f0] sm:$0xff] %v381_v62  ;;  %v389_v2 = vld [vmem:[%s822_s19 + $0x410] sm:$0xff]  ;;  %v391_v3 = vld [vmem:[%s822_s19 + $0x418] sm:$0xff] }
  0x32   : > { %384 = vst [vmem:[%s830_s20 + $0x1f8] sm:$0xff] %v383_v63  ;;  %386 = vst [vmem:[%s830_s20 + $0x200] sm:$0xff] %v385_v0  ;;  %v393_v4 = vld [vmem:[%s822_s19 + $0x420] sm:$0xff]  ;;  %v395_v5 = vld [vmem:[%s822_s19 + $0x428] sm:$0xff] }
  0x33   : > { %388 = vst [vmem:[%s830_s20 + $0x208] sm:$0xff] %v387_v1  ;;  %390 = vst [vmem:[%s830_s20 + $0x210] sm:$0xff] %v389_v2  ;;  %v397_v6 = vld [vmem:[%s822_s19 + $0x430] sm:$0xff]  ;;  %v399_v7 = vld [vmem:[%s822_s19 + $0x438] sm:$0xff] }
  0x34   : > { %392 = vst [vmem:[%s830_s20 + $0x218] sm:$0xff] %v391_v3  ;;  %394 = vst [vmem:[%s830_s20 + $0x220] sm:$0xff] %v393_v4 }
  0x35   : > { %396 = vst [vmem:[%s830_s20 + $0x228] sm:$0xff] %v395_v5  ;;  %398 = vst [vmem:[%s830_s20 + $0x230] sm:$0xff] %v397_v6 }
  0x36   : > { %400 = vst [vmem:[%s830_s20 + $0x238] sm:$0xff] %v399_v7 }
  0x37 PF: > { %p658_p5 = scmp.ge.s32.totalorder %s776_s8, 1  ;;  %p405_p6 = scmp.lt.s32.totalorder %s776_s8, 3 }
  0x39   : > { %p406_p7 = pnand %p658_p5, %p405_p6 }
  0x3a   : > { %s412_s21 = sand.u32 (!%p406_p7), 1, %s768_s6   ;;  %s659_s23 = sshll.u32 (!%p406_p7), %s652_s9, 3 }
  0x3b   : > { %409 = sbr.rel (%p406_p7) target bundleno = 99 (0x63), region = 58  ;;  %p433_p8 = scmp.lt.s32.totalorder (!%p406_p7), %s659_s23, 15 }
  0x3c   : > { %s729_s22 = smul.u32 (!%p406_p7), 576, %s412_s21 }
  0x3e   : > { %s975_s24 = scalar_lea.vmem (!%p406_p7), [#allocation2], %s729_s22 }
  0x3f   : > { %v438_v8 = vld [vmem:[%s975_s24] sm:$0xff] (!%p406_p7)  ;;  %v439_v14 = vld [vmem:[%s975_s24 + $0x8] sm:$0xff] (!%p406_p7)  ;;  %v440_v23 = vld [vmem:[%s975_s24 + $0x10] sm:$0xff] (!%p406_p7) }
  0x40   : > { %v661_v9 = vld [vmem:[%s975_s24 + $0x40] sm:$0xff] (!%p406_p7)  ;;  %v662_v15 = vld [vmem:[%s975_s24 + $0x48] sm:$0xff] (!%p406_p7)  ;;  %v663_v24 = vld [vmem:[%s975_s24 + $0x50] sm:$0xff] (!%p406_p7) }
  0x41   : > { %v669_v10 = vld [vmem:[%s975_s24 + $0x80] sm:$0xff] (!%p406_p7)  ;;  %v455_v11 = vmax.f32 (!%p406_p7), %v438_v8, %v661_v9  ;;  %v670_v16 = vld [vmem:[%s975_s24 + $0x88] sm:$0xff] (!%p406_p7)  ;;  %v456_v18 = vmax.f32 (!%p406_p7), %v439_v14, %v662_v15  ;;  %v671_v25 = vld [vmem:[%s975_s24 + $0x90] sm:$0xff] (!%p406_p7)  ;;  %v457_v28 = vmax.f32 (!%p406_p7), %v440_v23, %v663_v24 }
  0x42   : > { %v677_v12 = vld [vmem:[%s975_s24 + $0xc0] sm:$0xff]  ;;  %v678_v21 = vld [vmem:[%s975_s24 + $0xc8] sm:$0xff]  ;;  %s1082_s23 = smov (!%p433_p8, %s659_s23), 15  ;;  %v679_v32 = vld [vmem:[%s975_s24 + $0xd0] sm:$0xff] }
  0x43   : > { %v472_v13 = vmax.f32 %v455_v11, %v669_v10  ;;  %v685_v17 = vld [vmem:[%s975_s24 + $0x100] sm:$0xff]  ;;  %v473_v22 = vmax.f32 %v456_v18, %v670_v16  ;;  %v686_v27 = vld [vmem:[%s975_s24 + $0x108] sm:$0xff]  ;;  %v474_v34 = vmax.f32 %v457_v28, %v671_v25  ;;  %v441_v35 = vld [vmem:[%s975_s24 + $0x18] sm:$0xff]  ;;  %s660_s25 = sshll.u32 %s1082_s23, 3 }
  0x44   : > { %v693_v20 = vld [vmem:[%s975_s24 + $0x140] sm:$0xff]  ;;  %v694_v31 = vld [vmem:[%s975_s24 + $0x148] sm:$0xff]  ;;  %v664_v36 = vld [vmem:[%s975_s24 + $0x58] sm:$0xff]  ;;  %s1016_s28 = scalar_lea.vmem %s1077_s1, %s660_s25 }
  0x45   : > { %v489_v19 = vmax.f32 %v472_v13, %v677_v12  ;;  %v701_v29 = vld [vmem:[%s975_s24 + $0x180] sm:$0xff]  ;;  %v490_v30 = vmax.f32 %v473_v22, %v678_v21  ;;  %v672_v37 = vld [vmem:[%s975_s24 + $0x98] sm:$0xff]  ;;  %v687_v41 = vld [vmem:[%s975_s24 + $0x110] sm:$0xff]  ;;  %v458_v42 = vmax.f32 %v441_v35, %v664_v36  ;;  %v491_v45 = vmax.f32 %v474_v34, %v679_v32 }
  0x46   : > { %v709_v38 = vld [vmem:[%s975_s24 + $0x1c0] sm:$0xff]  ;;  %v702_v44 = vld [vmem:[%s975_s24 + $0x188] sm:$0xff]  ;;  %v695_v46 = vld [vmem:[%s975_s24 + $0x150] sm:$0xff] }
  0x47   : > { %v506_v26 = vmax.f32 %v489_v19, %v685_v17  ;;  %v717_v39 = vld [vmem:[%s975_s24 + $0x200] sm:$0xff]  ;;  %v507_v40 = vmax.f32 %v490_v30, %v686_v27  ;;  %v680_v47 = vld [vmem:[%s975_s24 + $0xd8] sm:$0xff]  ;;  %v475_v49 = vmax.f32 %v458_v42, %v672_v37  ;;  %v710_v54 = vld [vmem:[%s975_s24 + $0x1c8] sm:$0xff]  ;;  %v508_v56 = vmax.f32 %v491_v45, %v687_v41 }
  0x48   : > { %v442_v50 = vld [vmem:[%s975_s24 + $0x20] sm:$0xff]  ;;  %v718_v55 = vld [vmem:[%s975_s24 + $0x208] sm:$0xff]  ;;  %v688_v57 = vld [vmem:[%s975_s24 + $0x118] sm:$0xff] }
  0x49   : > { %v523_v33 = vmax.f32 %v506_v26, %v693_v20  ;;  %v524_v48 = vmax.f32 %v507_v40, %v694_v31  ;;  %v665_v51 = vld [vmem:[%s975_s24 + $0x60] sm:$0xff]  ;;  %v703_v60 = vld [vmem:[%s975_s24 + $0x190] sm:$0xff]  ;;  %v492_v61 = vmax.f32 %v475_v49, %v680_v47  ;;  %v696_v62 = vld [vmem:[%s975_s24 + $0x158] sm:$0xff]  ;;  %v525_v1 = vmax.f32 %v508_v56, %v695_v46 }
  0x4a   : > { %v673_v52 = vld [vmem:[%s975_s24 + $0xa0] sm:$0xff]  ;;  %v459_v58 = vmax.f32 %v442_v50, %v665_v51  ;;  %v443_v3 = vld [vmem:[%s975_s24 + $0x28] sm:$0xff]  ;;  %v711_v7 = vld [vmem:[%s975_s24 + $0x1d0] sm:$0xff] }
  0x4b   : > { %v540_v43 = vmax.f32 %v523_v33, %v701_v29  ;;  %v541_v59 = vmax.f32 %v524_v48, %v702_v44  ;;  %v681_v63 = vld [vmem:[%s975_s24 + $0xe0] sm:$0xff]  ;;  %v666_v4 = vld [vmem:[%s975_s24 + $0x68] sm:$0xff]  ;;  %v719_v8 = vld [vmem:[%s975_s24 + $0x210] sm:$0xff]  ;;  %v509_v9 = vmax.f32 %v492_v61, %v688_v57  ;;  %v542_v12 = vmax.f32 %v525_v1, %v703_v60 }
  0x4c   : > { %v476_v2 = vmax.f32 %v459_v58, %v673_v52  ;;  %v674_v5 = vld [vmem:[%s975_s24 + $0xa8] sm:$0xff]  ;;  %v689_v10 = vld [vmem:[%s975_s24 + $0x120] sm:$0xff]  ;;  %v460_v11 = vmax.f32 %v443_v3, %v666_v4  ;;  %v704_v13 = vld [vmem:[%s975_s24 + $0x198] sm:$0xff] }
  0x4d   : > { %v557_v53 = vmax.f32 %v540_v43, %v709_v38  ;;  %v558_v6 = vmax.f32 %v541_v59, %v710_v54  ;;  %v697_v15 = vld [vmem:[%s975_s24 + $0x160] sm:$0xff]  ;;  %v682_v16 = vld [vmem:[%s975_s24 + $0xe8] sm:$0xff]  ;;  %v526_v18 = vmax.f32 %v509_v9, %v696_v62  ;;  %v444_v20 = vld [vmem:[%s975_s24 + $0x30] sm:$0xff]  ;;  %v559_v23 = vmax.f32 %v542_v12, %v711_v7 }
  0x4e   : > { %v493_v14 = vmax.f32 %v476_v2, %v681_v63  ;;  %v477_v19 = vmax.f32 %v460_v11, %v674_v5  ;;  %v667_v21 = vld [vmem:[%s975_s24 + $0x70] sm:$0xff]  ;;  %v712_v24 = vld [vmem:[%s975_s24 + $0x1d8] sm:$0xff]  ;;  %v690_v27 = vld [vmem:[%s975_s24 + $0x128] sm:$0xff] }
  0x4f   : > { %v574_v0 = vmax.f32 %v557_v53, %v717_v39  ;;  %v575_v17 = vmax.f32 %v558_v6, %v718_v55  ;;  %v675_v22 = vld [vmem:[%s975_s24 + $0xb0] sm:$0xff]  ;;  %v720_v25 = vld [vmem:[%s975_s24 + $0x218] sm:$0xff]  ;;  %v461_v28 = vmax.f32 %v444_v20, %v667_v21  ;;  %v543_v29 = vmax.f32 %v526_v18, %v704_v13  ;;  %v705_v30 = vld [vmem:[%s975_s24 + $0x1a0] sm:$0xff] }
  0x50   : > { %v510_v26 = vmax.f32 %v493_v14, %v689_v10  ;;  %v494_v31 = vmax.f32 %v477_v19, %v682_v16  ;;  %v698_v32 = vld [vmem:[%s975_s24 + $0x168] sm:$0xff]  ;;  %v683_v33 = vld [vmem:[%s975_s24 + $0xf0] sm:$0xff]  ;;  %v576_v34 = vmax.f32 %v559_v23, %v719_v8  ;;  %v445_v37 = vld [vmem:[%s975_s24 + $0x38] sm:$0xff] }
  0x51   : > { %582 = vst [vmem:[%s1016_s28] sm:$0xff] %v574_v0  ;;  %583 = vst [vmem:[%s1016_s28 + $0x8] sm:$0xff] %v575_v17  ;;  %v478_v36 = vmax.f32 %v461_v28, %v675_v22  ;;  %v668_v38 = vld [vmem:[%s975_s24 + $0x78] sm:$0xff]  ;;  %v560_v40 = vmax.f32 %v543_v29, %v712_v24  ;;  %v713_v41 = vld [vmem:[%s975_s24 + $0x1e0] sm:$0xff] }
  0x52   : > { %v527_v35 = vmax.f32 %v510_v26, %v697_v15  ;;  %v676_v39 = vld [vmem:[%s975_s24 + $0xb8] sm:$0xff]  ;;  %v511_v42 = vmax.f32 %v494_v31, %v690_v27  ;;  %v691_v43 = vld [vmem:[%s975_s24 + $0x130] sm:$0xff]  ;;  %v462_v44 = vmax.f32 %v445_v37, %v668_v38  ;;  %584 = vst [vmem:[%s1016_s28 + $0x10] sm:$0xff] %v576_v34  ;;  %v706_v46 = vld [vmem:[%s975_s24 + $0x1a8] sm:$0xff] }
  0x53   : > { %v495_v47 = vmax.f32 %v478_v36, %v683_v33  ;;  %v684_v48 = vld [vmem:[%s975_s24 + $0xf8] sm:$0xff]  ;;  %v577_v49 = vmax.f32 %v560_v40, %v720_v25  ;;  %v721_v50 = vld [vmem:[%s975_s24 + $0x220] sm:$0xff]  ;;  %v699_v52 = vld [vmem:[%s975_s24 + $0x170] sm:$0xff] }
  0x54   : > { %v544_v45 = vmax.f32 %v527_v35, %v705_v30  ;;  %v528_v51 = vmax.f32 %v511_v42, %v698_v32  ;;  %v479_v53 = vmax.f32 %v462_v44, %v676_v39  ;;  %v714_v55 = vld [vmem:[%s975_s24 + $0x1e8] sm:$0xff]  ;;  %v692_v57 = vld [vmem:[%s975_s24 + $0x138] sm:$0xff]  ;;  %v707_v59 = vld [vmem:[%s975_s24 + $0x1b0] sm:$0xff] }
  0x55   : > { %v512_v56 = vmax.f32 %v495_v47, %v691_v43  ;;  %585 = vst [vmem:[%s1016_s28 + $0x18] sm:$0xff] %v577_v49  ;;  %v722_v62 = vld [vmem:[%s975_s24 + $0x228] sm:$0xff]  ;;  %v700_v0 = vld [vmem:[%s975_s24 + $0x178] sm:$0xff]  ;;  %v715_v2 = vld [vmem:[%s975_s24 + $0x1f0] sm:$0xff] }
  0x56   : > { %v561_v54 = vmax.f32 %v544_v45, %v713_v41  ;;  %v545_v58 = vmax.f32 %v528_v51, %v706_v46  ;;  %v496_v60 = vmax.f32 %v479_v53, %v684_v48  ;;  %v708_v5 = vld [vmem:[%s975_s24 + $0x1b8] sm:$0xff]  ;;  %v723_v7 = vld [vmem:[%s975_s24 + $0x230] sm:$0xff] }
  0x57   : > { %v529_v63 = vmax.f32 %v512_v56, %v699_v52  ;;  %v716_v10 = vld [vmem:[%s975_s24 + $0x1f8] sm:$0xff] }
  0x58   : > { %v578_v61 = vmax.f32 %v561_v54, %v721_v50  ;;  %v562_v1 = vmax.f32 %v545_v58, %v714_v55  ;;  %v513_v3 = vmax.f32 %v496_v60, %v692_v57  ;;  %v724_v13 = vld [vmem:[%s975_s24 + $0x238] sm:$0xff] }
  0x59   : > { %v546_v4 = vmax.f32 %v529_v63, %v707_v59 }
  0x5a   : > { %586 = vst [vmem:[%s1016_s28 + $0x20] sm:$0xff] %v578_v61  ;;  %v579_v6 = vmax.f32 %v562_v1, %v722_v62  ;;  %v530_v8 = vmax.f32 %v513_v3, %v700_v0 }
  0x5b   : > { %v563_v9 = vmax.f32 %v546_v4, %v715_v2 }
  0x5c   : > { %587 = vst [vmem:[%s1016_s28 + $0x28] sm:$0xff] %v579_v6  ;;  %v547_v11 = vmax.f32 %v530_v8, %v708_v5 }
  0x5d   : > { %v580_v12 = vmax.f32 %v563_v9, %v723_v7 }
  0x5e   : > { %v564_v14 = vmax.f32 %v547_v11, %v716_v10 }
  0x5f   : > { %588 = vst [vmem:[%s1016_s28 + $0x30] sm:$0xff] %v580_v12 }
  0x60   : > { %v581_v15 = vmax.f32 %v564_v14, %v724_v13 }
  0x62   : > { %589 = vst [vmem:[%s1016_s28 + $0x38] sm:$0xff] %v581_v15 }
  0x63 PF: > { %p8_p9 = scmp.ge.s32.totalorder %s805_s10, 4   ;;  %s1078_s6 = smov %s772_s7 }
  0x64   : > { %s1079_s7 = smov %s814_s13  ;;  %s1080_s8 = smov %s805_s10 }
  0x65   :  { %10 = sbr.rel (!%p8_p9) target bundleno = 2 (0x2), region = 105 }

// kernel: net_forward.10
= control target key start
LH: loop header
LB: loop body
LE: loop exit
PB: predicated region body
PF: predicated region fallthrough
CT: control target
= control target key end

     0   :  { %s711_s15 = smov 0   ;;  %s826_s0 = inlined_call_operand.vmem [shape: bf16[512,128], index: 0, kind: input, shape index: {}]   ;;  %s827_s1 = inlined_call_operand.vmem [shape: bf16[128,128], index: 1, kind: input, shape index: {}]   ;;  %s828_s2 = inlined_call_operand.vmem [shape: f32[1,128], index: 2, kind: input, shape index: {}]   ;;  %s829_s3 = inlined_call_operand.vmem [shape: f32[1,128], index: 3, kind: input, shape index: {}]   ;;  %s830_s4 = inlined_call_operand.vmem [shape: f32[512,128], index: 4, kind: output, shape index: {}]  }
   0x1 LB: > { %s561_s16 = sadd.s32 4294967295, %s684_s15   ;;  %p565_p0 = scmp.ge.s32.totalorder %s684_s15, 1  ;;  %s684_s15 = sphi %s711_s15, %s14_s15  }
   0x2   : > { %p163_p1 = scmp.lt.s32.totalorder %s684_s15, 5 }
   0x4   : > { %p164_p2 = pnand %p565_p0, %p163_p1 }
   0x5   : > { %v662_v0 = vld [vmem:[%s827_s1] sm:$0xff] (!%p164_p2)   ;;  %s566_s19 = sshll.u32 (!%p164_p2), %s561_s16, 4  ;;  %v663_v1 = vld [vmem:[%s827_s1 + $0x8] sm:$0xff] (!%p164_p2)   ;;  %v664_v2 = vld [vmem:[%s827_s1 + $0x10] sm:$0xff] (!%p164_p2)  }
   0x6   : > { %167 = sbr.rel (%p164_p2) target bundleno = 268 (0x10c), region = 36  ;;  %p190_p3 = scmp.lt.s32.totalorder (!%p164_p2), %s566_s19, 63  ;;  %606 = vmatprep.subr.bf16.mxu0 (!%p164_p2), %v662_v0  ;;  %638 = vmatprep.subr.bf16.mxu1 (!%p164_p2), %v662_v0  ;;  %v665_v3 = vld [vmem:[%s827_s1 + $0x18] sm:$0xff] (!%p164_p2)   ;;  %v666_v6 = vld [vmem:[%s827_s1 + $0x20] sm:$0xff] (!%p164_p2)   ;;  %v667_v7 = vld [vmem:[%s827_s1 + $0x28] sm:$0xff] (!%p164_p2)  }
   0x7   : > { %607 = vmatpush3.bf16.msra.mxu0 (!%p164_p2), %v662_v0  ;;  %646 = vmatpush3.bf16.msra.mxu1 (!%p164_p2), %v662_v0  ;;  %v668_v8 = vld [vmem:[%s827_s1 + $0x30] sm:$0xff] (!%p164_p2)   ;;  %v669_v9 = vld [vmem:[%s827_s1 + $0x38] sm:$0xff] (!%p164_p2)   ;;  %v762_v16 = vld [vmem:[%s828_s2] ss:$0 sm:$0xff] (!%p164_p2) }
   0x8   : > { %608 = vmatprep.subr.bf16.mxu0 (!%p164_p2), %v663_v1  ;;  %639 = vmatprep.subr.bf16.mxu1 (!%p164_p2), %v663_v1  ;;  %v767_v18 = vld [vmem:[%s829_s3] ss:$0 sm:$0xff] (!%p164_p2) }
   0xb   : > { %609 = vmatpush3.bf16.msra.mxu0 (!%p164_p2), %v663_v1  ;;  %647 = vmatpush3.bf16.msra.mxu1 (!%p164_p2), %v663_v1 }
   0xc   : > { %610 = vmatprep.subr.bf16.mxu0 (!%p164_p2), %v664_v2  ;;  %640 = vmatprep.subr.bf16.mxu1 (!%p164_p2), %v664_v2 }
   0xd   : > { %s832_s19 = smov (!%p190_p3, %s566_s19), 63 }
   0xe   : > { %s567_s24 = sshll.u32 %s832_s19, 2  ;;  %s569_s17 = sshll.u32 %s832_s19, 3 }
   0xf   : > { %s734_s27 = scalar_lea.vmem %s826_s0, %s567_s24  ;;  %611 = vmatpush3.bf16.msra.mxu0 %v664_v2  ;;  %648 = vmatpush3.bf16.msra.mxu1 %v664_v2  ;;  %s781_s20 = scalar_lea.vmem %s830_s4, %s569_s17 }
  0x10   : > { %v670_v4 = vld [vmem:[%s734_s27] sm:$0xff]   ;;  %612 = vmatprep.subr.bf16.mxu0 %v665_v3  ;;  %641 = vmatprep.subr.bf16.mxu1 %v665_v3  ;;  %v672_v10 = vld [vmem:[%s734_s27 + $0x8] sm:$0xff]   ;;  %v674_v12 = vld [vmem:[%s734_s27 + $0x10] sm:$0xff]  }
  0x11   : > { %v671_v5 = vld [vmem:[%s734_s27 + $0x20] sm:$0xff]   ;;  %622 = vmatprep.mubr.bf16.mxu0 %v670_v4  ;;  %v673_v11 = vld [vmem:[%s734_s27 + $0x28] sm:$0xff]   ;;  %v675_v13 = vld [vmem:[%s734_s27 + $0x30] sm:$0xff]  }
  0x12   : > { %630 = vmatprep.mubr.bf16.mxu1 %v671_v5  ;;  %v676_v14 = vld [vmem:[%s734_s27 + $0x18] sm:$0xff]  }
  0x13   : > { %613 = vmatpush3.bf16.msra.mxu0 %v665_v3  ;;  %649 = vmatpush3.bf16.msra.mxu1 %v665_v3  ;;  %v677_v15 = vld [vmem:[%s734_s27 + $0x38] sm:$0xff]  }
  0x14   : > { %614 = vmatprep.subr.bf16.mxu0 %v666_v6  ;;  %642 = vmatprep.subr.bf16.mxu1 %v666_v6 }
  0x17   : > { %615 = vmatpush3.bf16.msra.mxu0 %v666_v6  ;;  %650 = vmatpush3.bf16.msra.mxu1 %v666_v6 }
  0x18   : > { %616 = vmatprep.subr.bf16.mxu0 %v667_v7  ;;  %643 = vmatprep.subr.bf16.mxu1 %v667_v7 }
  0x1b   : > { %617 = vmatpush3.bf16.msra.mxu0 %v667_v7  ;;  %651 = vmatpush3.bf16.msra.mxu1 %v667_v7 }
  0x1c   : > { %618 = vmatprep.subr.bf16.mxu0 %v668_v8  ;;  %644 = vmatprep.subr.bf16.mxu1 %v668_v8 }
  0x1f   : > { %619 = vmatpush3.bf16.msra.mxu0 %v668_v8  ;;  %652 = vmatpush3.bf16.msra.mxu1 %v668_v8 }
  0x20   : > { %620 = vmatprep.subr.bf16.mxu0 %v669_v9  ;;  %645 = vmatprep.subr.bf16.mxu1 %v669_v9 }
  0x23   : > { %621 = vmatpush3.bf16.msra.mxu0 %v669_v9  ;;  %653 = vmatpush3.bf16.msra.mxu1 %v669_v9 }
  0x26   : > { %623 = vmatmul.mubr.bf16.vlgmr.msra.gmra.mrb[0].mxu0 %v672_v10  ;;  %631 = vmatmul.mubr.bf16.vlgmr.msra.gmra.mrb[0].mxu1 %v673_v11 }
  0x27   : > { %626 = vmatprep.mubr.bf16.mxu0 %v674_v12  ;;  %634 = vmatprep.mubr.bf16.mxu1 %v675_v13 }
  0x2e   : > { %627 = vmatmul.mubr.bf16.gmra.mrb[4].mxu0 %v676_v14  ;;  %635 = vmatmul.mubr.bf16.gmra.mrb[4].mxu1 %v677_v15 }
  0xf9   : > { %v624_v17 = vpop.f32.mrb[0].mxu0  ;;  %v632_v19 = vpop.f32.mrb[0].mxu1 }
  0xfa   : > { %v436_v20 = vmul.f32 %v624_v17, %v762_v16  ;;  %v444_v21 = vmul.f32 %v632_v19, %v762_v16  ;;  %v364_v22 = vpop.f32.mrb[1].mxu0  ;;  %v396_v23 = vpop.f32.mrb[1].mxu1 }
  0xfb   : > { %v434_v24 = vmul.f32 %v762_v16, %v364_v22  ;;  %v442_v25 = vmul.f32 %v762_v16, %v396_v23  ;;  %v625_v26 = vpop.f32.mrb[2].mxu0  ;;  %v633_v27 = vpop.f32.mrb[2].mxu1 }
  0xfc   : > { %v459_v28 = vadd.f32 %v767_v18, %v436_v20  ;;  %v467_v29 = vadd.f32 %v767_v18, %v444_v21  ;;  %v437_v30 = vmul.f32 %v625_v26, %v762_v16  ;;  %v445_v31 = vmul.f32 %v633_v27, %v762_v16  ;;  %v367_v32 = vpop.f32.mrb[3].mxu0  ;;  %v399_v33 = vpop.f32.mrb[3].mxu1 }
  0xfd   : > { %v457_v34 = vadd.f32 %v767_v18, %v434_v24  ;;  %v465_v35 = vadd.f32 %v767_v18, %v442_v25  ;;  %v435_v36 = vmul.f32 %v762_v16, %v367_v32  ;;  %v443_v37 = vmul.f32 %v762_v16, %v399_v33 }
  0xfe   : > { %v475_v38 = vmax.f32 %v459_v28, 0.0  ;;  %v483_v39 = vmax.f32 %v467_v29, 0.0  ;;  %v460_v40 = vadd.f32 %v767_v18, %v437_v30  ;;  %v468_v41 = vadd.f32 %v767_v18, %v445_v31 }
  0xff   : > { %v473_v42 = vmax.f32 %v457_v34, 0.0  ;;  %v481_v43 = vmax.f32 %v465_v35, 0.0  ;;  %v458_v44 = vadd.f32 %v767_v18, %v435_v36  ;;  %v466_v45 = vadd.f32 %v767_v18, %v443_v37 }
 0x100   : > { %491 = vst [vmem:[%s781_s20 + $0x10] sm:$0xff] %v475_v38  ;;  %499 = vst [vmem:[%s781_s20 + $0x50] sm:$0xff] %v483_v39  ;;  %v476_v46 = vmax.f32 %v460_v40, 0.0  ;;  %v484_v47 = vmax.f32 %v468_v41, 0.0 }
 0x101   : > { %489 = vst [vmem:[%s781_s20] sm:$0xff] %v473_v42  ;;  %497 = vst [vmem:[%s781_s20 + $0x40] sm:$0xff] %v481_v43  ;;  %v474_v48 = vmax.f32 %v458_v44, 0.0  ;;  %v482_v49 = vmax.f32 %v466_v45, 0.0  ;;  %v628_v50 = vpop.f32.mrb[4].mxu0  ;;  %v636_v51 = vpop.f32.mrb[4].mxu1 }
 0x102   : > { %492 = vst [vmem:[%s781_s20 + $0x18] sm:$0xff] %v476_v46  ;;  %500 = vst [vmem:[%s781_s20 + $0x58] sm:$0xff] %v484_v47  ;;  %v440_v52 = vmul.f32 %v628_v50, %v762_v16  ;;  %v448_v53 = vmul.f32 %v636_v51, %v762_v16  ;;  %v380_v54 = vpop.f32.mrb[5].mxu0  ;;  %v412_v55 = vpop.f32.mrb[5].mxu1 }
 0x103   : > { %490 = vst [vmem:[%s781_s20 + $0x8] sm:$0xff] %v474_v48  ;;  %498 = vst [vmem:[%s781_s20 + $0x48] sm:$0xff] %v482_v49  ;;  %v438_v56 = vmul.f32 %v762_v16, %v380_v54  ;;  %v446_v57 = vmul.f32 %v762_v16, %v412_v55  ;;  %v629_v58 = vpop.f32.mrb[6].mxu0  ;;  %v637_v59 = vpop.f32.mrb[6].mxu1 }
 0x104   : > { %v463_v60 = vadd.f32 %v767_v18, %v440_v52  ;;  %v471_v61 = vadd.f32 %v767_v18, %v448_v53  ;;  %v441_v62 = vmul.f32 %v629_v58, %v762_v16  ;;  %v449_v63 = vmul.f32 %v637_v59, %v762_v16  ;;  %v383_v0 = vpop.f32.mrb[7].mxu0  ;;  %v415_v1 = vpop.f32.mrb[7].mxu1 }
 0x105   : > { %v461_v2 = vadd.f32 %v767_v18, %v438_v56  ;;  %v469_v3 = vadd.f32 %v767_v18, %v446_v57  ;;  %v439_v4 = vmul.f32 %v762_v16, %v383_v0  ;;  %v447_v5 = vmul.f32 %v762_v16, %v415_v1 }
 0x106   : > { %v479_v6 = vmax.f32 %v463_v60, 0.0  ;;  %v487_v7 = vmax.f32 %v471_v61, 0.0  ;;  %v464_v8 = vadd.f32 %v767_v18, %v441_v62  ;;  %v472_v9 = vadd.f32 %v767_v18, %v449_v63 }
 0x107   : > { %v477_v10 = vmax.f32 %v461_v2, 0.0  ;;  %v485_v11 = vmax.f32 %v469_v3, 0.0  ;;  %v462_v12 = vadd.f32 %v767_v18, %v439_v4  ;;  %v470_v13 = vadd.f32 %v767_v18, %v447_v5 }
 0x108   : > { %495 = vst [vmem:[%s781_s20 + $0x30] sm:$0xff] %v479_v6  ;;  %503 = vst [vmem:[%s781_s20 + $0x70] sm:$0xff] %v487_v7  ;;  %v480_v14 = vmax.f32 %v464_v8, 0.0  ;;  %v488_v15 = vmax.f32 %v472_v9, 0.0 }
 0x109   : > { %493 = vst [vmem:[%s781_s20 + $0x20] sm:$0xff] %v477_v10  ;;  %501 = vst [vmem:[%s781_s20 + $0x60] sm:$0xff] %v485_v11  ;;  %v478_v16 = vmax.f32 %v462_v12, 0.0  ;;  %v486_v17 = vmax.f32 %v470_v13, 0.0 }
 0x10a   : > { %496 = vst [vmem:[%s781_s20 + $0x38] sm:$0xff] %v480_v14  ;;  %504 = vst [vmem:[%s781_s20 + $0x78] sm:$0xff] %v488_v15 }
 0x10b   : > { %494 = vst [vmem:[%s781_s20 + $0x28] sm:$0xff] %v478_v16  ;;  %502 = vst [vmem:[%s781_s20 + $0x68] sm:$0xff] %v486_v17 }
 0x10c PF: > { %s14_s15 = sadd.s32 1, %s684_s15  }
 0x10d   : > { %p11_p4 = scmp.ge.s32.totalorder %s14_s15, 6  }
 0x10f   :  { %13 = sbr.rel (!%p11_p4) target bundleno = 1 (0x1), region = 66 }

// kernel: net_forward.12
= control target key start
LH: loop header
LB: loop body
LE: loop exit
PB: predicated region body
PF: predicated region fallthrough
CT: control target
= control target key end

     0   :  { %s1265_s15 = smov 0   ;;  %s1436_s0 = inlined_call_operand.vmem [shape: bf16[128,640], index: 0, kind: input, shape index: {}]   ;;  %s1437_s1 = inlined_call_operand.vmem [shape: bf16[640,128], index: 1, kind: input, shape index: {}]   ;;  %s1438_s2 = inlined_call_operand.vmem [shape: f32[1,128], index: 2, kind: input, shape index: {}]   ;;  %s1439_s3 = inlined_call_operand.vmem [shape: f32[1,128], index: 3, kind: input, shape index: {}]   ;;  %s1440_s4 = inlined_call_operand.vmem [shape: f32[128,128], index: 4, kind: output, shape index: {}]  }
   0x1 LB: > { %s950_s16 = sadd.s32 4294967295, %s1238_s15   ;;  %p954_p0 = scmp.ge.s32.totalorder %s1238_s15, 1  ;;  %s1238_s15 = sphi %s1265_s15, %s14_s15  }
   0x2   : > { %p164_p1 = scmp.lt.s32.totalorder %s1238_s15, 3 }
   0x4   : > { %p165_p2 = pnand %p954_p0, %p164_p1 }
   0x5   : > { %v1164_v0 = vld [vmem:[%s1437_s1 + $0x40] sm:$0xff] (!%p165_p2)   ;;  %v1168_v4 = vld [vmem:[%s1437_s1 + $0x48] sm:$0xff] (!%p165_p2)   ;;  %v1172_v8 = vld [vmem:[%s1437_s1 + $0x50] sm:$0xff] (!%p165_p2)   ;;  %s955_s23 = sshll.u32 (!%p165_p2), %s950_s16, 3 }
   0x6   : > { %168 = sbr.rel (%p165_p2) target bundleno = 297 (0x129), region = 36  ;;  %v1165_v1 = vld [vmem:[%s1437_s1 + $0xc0] sm:$0xff] (!%p165_p2)   ;;  %1023 = vmatprep.subr.bf16.mxu0 (!%p165_p2), %v1164_v0  ;;  %v1169_v5 = vld [vmem:[%s1437_s1 + $0xc8] sm:$0xff] (!%p165_p2)   ;;  %v1173_v9 = vld [vmem:[%s1437_s1 + $0xd0] sm:$0xff] (!%p165_p2)   ;;  %p192_p3 = scmp.lt.s32.totalorder (!%p165_p2), %s955_s23, 15 }
   0x7   : > { %v1166_v2 = vld [vmem:[%s1437_s1] sm:$0xff] (!%p165_p2)   ;;  %1063 = vmatprep.subr.bf16.mxu1 (!%p165_p2), %v1165_v1  ;;  %v1170_v6 = vld [vmem:[%s1437_s1 + $0x8] sm:$0xff] (!%p165_p2)   ;;  %v1174_v10 = vld [vmem:[%s1437_s1 + $0x10] sm:$0xff] (!%p165_p2)  }
   0x8   : > { %v1167_v3 = vld [vmem:[%s1437_s1 + $0x80] sm:$0xff] (!%p165_p2)   ;;  %1024 = vmatpush3.bf16.msra.mxu0 (!%p165_p2), %v1166_v2  ;;  %v1171_v7 = vld [vmem:[%s1437_s1 + $0x88] sm:$0xff] (!%p165_p2)   ;;  %v1175_v11 = vld [vmem:[%s1437_s1 + $0x90] sm:$0xff] (!%p165_p2)  }
   0x9   : > { %1064 = vmatpush3.bf16.msra.mxu1 (!%p165_p2), %v1167_v3  ;;  %1025 = vmatprep.subr.bf16.mxu0 (!%p165_p2), %v1168_v4  ;;  %v1176_v12 = vld [vmem:[%s1437_s1 + $0x58] sm:$0xff] (!%p165_p2)   ;;  %v1180_v16 = vld [vmem:[%s1437_s1 + $0x60] sm:$0xff] (!%p165_p2)   ;;  %v1184_v20 = vld [vmem:[%s1437_s1 + $0x68] sm:$0xff] (!%p165_p2)  }
   0xa   : > { %1065 = vmatprep.subr.bf16.mxu1 (!%p165_p2), %v1169_v5  ;;  %v1177_v13 = vld [vmem:[%s1437_s1 + $0xd8] sm:$0xff] (!%p165_p2)   ;;  %v1181_v17 = vld [vmem:[%s1437_s1 + $0xe0] sm:$0xff] (!%p165_p2)   ;;  %v1185_v21 = vld [vmem:[%s1437_s1 + $0xe8] sm:$0xff] (!%p165_p2)  }
   0xb   : > { %v1178_v14 = vld [vmem:[%s1437_s1 + $0x18] sm:$0xff] (!%p165_p2)   ;;  %v1182_v18 = vld [vmem:[%s1437_s1 + $0x20] sm:$0xff] (!%p165_p2)   ;;  %v1186_v22 = vld [vmem:[%s1437_s1 + $0x28] sm:$0xff] (!%p165_p2)  }
   0xc   : > { %1026 = vmatpush3.bf16.msra.mxu0 (!%p165_p2), %v1170_v6  ;;  %v1179_v15 = vld [vmem:[%s1437_s1 + $0x98] sm:$0xff] (!%p165_p2)   ;;  %v1183_v19 = vld [vmem:[%s1437_s1 + $0xa0] sm:$0xff] (!%p165_p2)   ;;  %v1187_v23 = vld [vmem:[%s1437_s1 + $0xa8] sm:$0xff] (!%p165_p2)  }
   0xd   : > { %1066 = vmatpush3.bf16.msra.mxu1 %v1171_v7  ;;  %1027 = vmatprep.subr.bf16.mxu0 %v1172_v8  ;;  %s1442_s23 = smov (!%p192_p3, %s955_s23), 15  ;;  %v1188_v24 = vld [vmem:[%s1437_s1 + $0x70] sm:$0xff]   ;;  %v1192_v28 = vld [vmem:[%s1437_s1 + $0x78] sm:$0xff]   ;;  %v1202_v36 = vld [vmem:[%s1437_s1 + $0x100] sm:$0xff]  }
   0xe   : > { %1067 = vmatprep.subr.bf16.mxu1 %v1173_v9  ;;  %v1189_v25 = vld [vmem:[%s1437_s1 + $0xf0] sm:$0xff]   ;;  %s1155_s21 = smul.u32 20, %s1442_s23  ;;  %v1193_v29 = vld [vmem:[%s1437_s1 + $0xf8] sm:$0xff]   ;;  %v1203_v37 = vld [vmem:[%s1437_s1 + $0x108] sm:$0xff]   ;;  %s958_s7 = sshll.u32 %s1442_s23, 3 }
   0xf   : > { %v1190_v26 = vld [vmem:[%s1437_s1 + $0x30] sm:$0xff]   ;;  %v1194_v30 = vld [vmem:[%s1437_s1 + $0x38] sm:$0xff]   ;;  %v1218_v46 = vld [vmem:[%s1437_s1 + $0x120] sm:$0xff]   ;;  %s202_s10 = scalar_lea.vmem %s1440_s4, %s958_s7 }
  0x10   : > { %1028 = vmatpush3.bf16.msra.mxu0 %v1174_v10  ;;  %v1191_v27 = vld [vmem:[%s1437_s1 + $0xb0] sm:$0xff]   ;;  %s1371_s6 = scalar_lea.vmem %s1436_s0, %s1155_s21  ;;  %v1195_v31 = vld [vmem:[%s1437_s1 + $0xb8] sm:$0xff]   ;;  %v1219_v51 = vld [vmem:[%s1437_s1 + $0x128] sm:$0xff]  }
  0x11   : > { %1068 = vmatpush3.bf16.msra.mxu1 %v1175_v11  ;;  %1029 = vmatprep.subr.bf16.mxu0 %v1176_v12  ;;  %v1196_v32 = vld [vmem:[%s1371_s6] ss:$20 sps:$4 sm:$0xff]   ;;  %v1198_v33 = vld [vmem:[%s1371_s6 + $0x4] ss:$20 sps:$4 sm:$0xff]   ;;  %v1199_v34 = vld [vmem:[%s1371_s6 + $0x8] ss:$20 sps:$4 sm:$0xff]  }
  0x12   : > { %1069 = vmatprep.subr.bf16.mxu1 %v1177_v13  ;;  %v1201_v35 = vld [vmem:[%s1371_s6 + $0xc] ss:$20 sps:$4 sm:$0xff]   ;;  %685 = vmatprep.mubr.bf16.mxu0 %v1198_v33  ;;  %v1206_v39 = vld [vmem:[%s1371_s6 + $0x34] ss:$20 sps:$4 sm:$0xff]   ;;  %v1209_v42 = vld [vmem:[%s1371_s6 + $0x30] ss:$20 sps:$4 sm:$0xff]  }
  0x13   : > { %750 = vmatprep.mubr.bf16.mxu1 %v1201_v35  ;;  %v1204_v38 = vld [vmem:[%s1371_s6 + $0x2c] ss:$20 sps:$4 sm:$0xff]   ;;  %v1208_v40 = vld [vmem:[%s1371_s6 + $0x28] ss:$20 sps:$4 sm:$0xff]   ;;  %v1210_v41 = vld [vmem:[%s1437_s1 + $0x110] sm:$0xff]  }
  0x14   : > { %1030 = vmatpush3.bf16.msra.mxu0 %v1178_v14  ;;  %v1212_v43 = vld [vmem:[%s1371_s6 + $0x54] ss:$20 sps:$4 sm:$0xff]   ;;  %v1211_v44 = vld [vmem:[%s1437_s1 + $0x118] sm:$0xff]   ;;  %v1216_v47 = vld [vmem:[%s1371_s6 + $0x50] ss:$20 sps:$4 sm:$0xff]  }
  0x15   : > { %1070 = vmatpush3.bf16.msra.mxu1 %v1179_v15  ;;  %1031 = vmatprep.subr.bf16.mxu0 %v1180_v16  ;;  %v1214_v45 = vld [vmem:[%s1371_s6 + $0x5c] ss:$20 sps:$4 sm:$0xff]   ;;  %v1217_v48 = vld [vmem:[%s1371_s6 + $0x58] ss:$20 sps:$4 sm:$0xff]   ;;  %v1225_v54 = vld [vmem:[%s1371_s6 + $0x80] ss:$20 sps:$4 sm:$0xff]  }
  0x16   : > { %1071 = vmatprep.subr.bf16.mxu1 %v1181_v17  ;;  %v1220_v49 = vld [vmem:[%s1371_s6 + $0x7c] ss:$20 sps:$4 sm:$0xff]   ;;  %v1222_v50 = vld [vmem:[%s1371_s6 + $0x84] ss:$20 sps:$4 sm:$0xff]   ;;  %v1229_v56 = vld [vmem:[%s1371_s6 + $0x60] ss:$20 sps:$4 sm:$0xff]  }
  0x17   : > { %v1226_v52 = vld [vmem:[%s1437_s1 + $0x130] sm:$0xff]   ;;  %v1224_v53 = vld [vmem:[%s1371_s6 + $0x78] ss:$20 sps:$4 sm:$0xff]   ;;  %v1231_v59 = vld [vmem:[%s1371_s6 + $0x88] ss:$20 sps:$4 sm:$0xff]  }
  0x18   : > { %1032 = vmatpush3.bf16.msra.mxu0 %v1182_v18  ;;  %v1228_v55 = vld [vmem:[%s1371_s6 + $0x10] ss:$20 sps:$4 sm:$0xff]   ;;  %v1227_v57 = vld [vmem:[%s1437_s1 + $0x138] sm:$0xff]  }
  0x19   : > { %1072 = vmatpush3.bf16.msra.mxu1 %v1183_v19  ;;  %1033 = vmatprep.subr.bf16.mxu0 %v1184_v20  ;;  %v1230_v58 = vld [vmem:[%s1371_s6 + $0x38] ss:$20 sps:$4 sm:$0xff]  }
  0x1a   : > { %1073 = vmatprep.subr.bf16.mxu1 %v1185_v21 }
  0x1c   : > { %1034 = vmatpush3.bf16.msra.mxu0 %v1186_v22 }
  0x1d   : > { %1074 = vmatpush3.bf16.msra.mxu1 %v1187_v23  ;;  %1035 = vmatprep.subr.bf16.mxu0 %v1188_v24 }
  0x1e   : > { %1075 = vmatprep.subr.bf16.mxu1 %v1189_v25 }
  0x20   : > { %1036 = vmatpush3.bf16.msra.mxu0 %v1190_v26 }
  0x21   : > { %1076 = vmatpush3.bf16.msra.mxu1 %v1191_v27  ;;  %1037 = vmatprep.subr.bf16.mxu0 %v1192_v28 }
  0x22   : > { %1077 = vmatprep.subr.bf16.mxu1 %v1193_v29 }
  0x24   : > { %1038 = vmatpush3.bf16.msra.mxu0 %v1194_v30 }
  0x25   : > { %1078 = vmatpush3.bf16.msra.mxu1 %v1195_v31  ;;  %1115 = vmatprep.subr.bf16.mxu0 %v1202_v36 }
  0x26   : > { %1139 = vmatprep.subr.bf16.mxu1 %v1202_v36 }
  0x27   : > { %686 = vmatmul.mubr.bf16.vlgmr.msra.gmra.mrb[0].mxu0 %v1196_v32 }
  0x28   : > { %751 = vmatmul.mubr.bf16.vlgmr.msra.gmra.mrb[0].mxu1 %v1199_v34  ;;  %1116 = vmatpush3.bf16.msra.mxu0 %v1202_v36 }
  0x29   : > { %1147 = vmatpush3.bf16.msra.mxu1 %v1202_v36  ;;  %1117 = vmatprep.subr.bf16.mxu0 %v1203_v37 }
  0x2a   : > { %1140 = vmatprep.subr.bf16.mxu1 %v1203_v37  ;;  %693 = vmatprep.mubr.bf16.mxu0 %v1204_v38 }
  0x2b   : > { %758 = vmatprep.mubr.bf16.mxu1 %v1206_v39 }
  0x2c   : > { %1118 = vmatpush3.bf16.msra.mxu0 %v1203_v37 }
  0x2d   : > { %1148 = vmatpush3.bf16.msra.mxu1 %v1203_v37  ;;  %1119 = vmatprep.subr.bf16.mxu0 %v1210_v41 }
  0x2e   : > { %1141 = vmatprep.subr.bf16.mxu1 %v1210_v41 }
  0x2f   : > { %694 = vmatmul.mubr.bf16.gmra.mrb[4].mxu0 %v1208_v40 }
  0x30   : > { %759 = vmatmul.mubr.bf16.gmra.mrb[4].mxu1 %v1209_v42  ;;  %701 = vmatprep.mubr.bf16.mxu0 %v1212_v43 }
  0x31   : > { %1120 = vmatpush3.bf16.msra.mxu0 %v1210_v41  ;;  %766 = vmatprep.mubr.bf16.mxu1 %v1214_v45 }
  0x32   : > { %1149 = vmatpush3.bf16.msra.mxu1 %v1210_v41  ;;  %1121 = vmatprep.subr.bf16.mxu0 %v1211_v44 }
  0x33   : > { %1142 = vmatprep.subr.bf16.mxu1 %v1211_v44 }
  0x35   : > { %1122 = vmatpush3.bf16.msra.mxu0 %v1211_v44 }
  0x36   : > { %1150 = vmatpush3.bf16.msra.mxu1 %v1211_v44  ;;  %1123 = vmatprep.subr.bf16.mxu0 %v1218_v46 }
  0x37   : > { %702 = vmatmul.mubr.bf16.gmra.mrb[8].mxu0 %v1216_v47  ;;  %1143 = vmatprep.subr.bf16.mxu1 %v1218_v46 }
  0x38   : > { %767 = vmatmul.mubr.bf16.gmra.mrb[8].mxu1 %v1217_v48  ;;  %709 = vmatprep.mubr.bf16.mxu0 %v1220_v49 }
  0x39   : > { %1124 = vmatpush3.bf16.msra.mxu0 %v1218_v46  ;;  %774 = vmatprep.mubr.bf16.mxu1 %v1222_v50 }
  0x3a   : > { %1151 = vmatpush3.bf16.msra.mxu1 %v1218_v46  ;;  %1125 = vmatprep.subr.bf16.mxu0 %v1219_v51 }
  0x3b   : > { %1144 = vmatprep.subr.bf16.mxu1 %v1219_v51 }
  0x3d   : > { %1126 = vmatpush3.bf16.msra.mxu0 %v1219_v51 }
  0x3e   : > { %1152 = vmatpush3.bf16.msra.mxu1 %v1219_v51  ;;  %1127 = vmatprep.subr.bf16.mxu0 %v1226_v52 }
  0x3f   : > { %710 = vmatmul.mubr.bf16.gmra.mrb[12].mxu0 %v1224_v53  ;;  %1145 = vmatprep.subr.bf16.mxu1 %v1226_v52  ;;  %v1019_v53 = vld [vmem:[%s1438_s2] ss:$0 sm:$0xff] }
  0x40   : > { %775 = vmatmul.mubr.bf16.gmra.mrb[12].mxu1 %v1225_v54  ;;  %1131 = vmatprep.mubr.bf16.mxu0 %v1228_v55 }
  0x41   : > { %1128 = vmatpush3.bf16.msra.mxu0 %v1226_v52  ;;  %1135 = vmatprep.mubr.bf16.mxu1 %v1229_v56 }
  0x42   : > { %1153 = vmatpush3.bf16.msra.mxu1 %v1226_v52  ;;  %1129 = vmatprep.subr.bf16.mxu0 %v1227_v57 }
  0x43   : > { %1146 = vmatprep.subr.bf16.mxu1 %v1227_v57 }
  0x45   : > { %1130 = vmatpush3.bf16.msra.mxu0 %v1227_v57 }
  0x46   : > { %1154 = vmatpush3.bf16.msra.mxu1 %v1227_v57  ;;  %v1020_v57 = vld [vmem:[%s1439_s3] ss:$0 sm:$0xff] }
  0x48   : > { %1132 = vmatmul.mubr.bf16.vlgmr.msra.gmra.mrb[16].mxu0 %v1230_v58 }
  0x49   : > { %1136 = vmatmul.mubr.bf16.vlgmr.msra.gmra.mrb[16].mxu1 %v1231_v59 }
  0xfa   : > { %v1039_v60 = vpop.f32.mrb[0].mxu0 }
  0xfb   : > { %v1079_v61 = vpop.f32.mrb[0].mxu1  ;;  %v1040_v62 = vpop.f32.mrb[1].mxu0 }
  0xfc   : > { %v1041_v63 = vadd.f32 %v1040_v62, %v1039_v60  ;;  %v1080_v0 = vpop.f32.mrb[1].mxu1  ;;  %v1042_v1 = vpop.f32.mrb[2].mxu0 }
  0xfd   : > { %v1081_v2 = vadd.f32 %v1080_v0, %v1079_v61  ;;  %v1082_v3 = vpop.f32.mrb[2].mxu1  ;;  %v1043_v4 = vpop.f32.mrb[3].mxu0 }
  0xfe   : > { %v1044_v5 = vadd.f32 %v1043_v4, %v1042_v1  ;;  %v1083_v6 = vpop.f32.mrb[3].mxu1 }
  0xff   : > { %v1084_v7 = vadd.f32 %v1083_v6, %v1082_v3  ;;  %v753_v8 = vadd.f32 %v1081_v2, %v1041_v63 }
 0x101   : > { %v756_v9 = vadd.f32 %v1084_v7, %v1044_v5 }
 0x102   : > { %v1045_v10 = vpop.f32.mrb[4].mxu0 }
 0x103   : > { %v1085_v11 = vpop.f32.mrb[4].mxu1  ;;  %v1046_v12 = vpop.f32.mrb[5].mxu0 }
 0x104   : > { %v1047_v13 = vadd.f32 %v1046_v12, %v1045_v10  ;;  %v1086_v14 = vpop.f32.mrb[5].mxu1  ;;  %v1048_v15 = vpop.f32.mrb[6].mxu0 }
 0x105   : > { %v1087_v16 = vadd.f32 %v1086_v14, %v1085_v11  ;;  %v1088_v17 = vpop.f32.mrb[6].mxu1  ;;  %v1049_v18 = vpop.f32.mrb[7].mxu0 }
 0x106   : > { %v1050_v19 = vadd.f32 %v1049_v18, %v1048_v15  ;;  %v1089_v20 = vpop.f32.mrb[7].mxu1 }
 0x107   : > { %v1090_v21 = vadd.f32 %v1089_v20, %v1088_v17  ;;  %v761_v22 = vadd.f32 %v1087_v16, %v1047_v13 }
 0x109   : > { %v764_v23 = vadd.f32 %v1090_v21, %v1050_v19 }
 0x10a   : > { %v1051_v24 = vpop.f32.mrb[8].mxu0 }
 0x10b   : > { %v1091_v25 = vpop.f32.mrb[8].mxu1  ;;  %v1052_v26 = vpop.f32.mrb[9].mxu0 }
 0x10c   : > { %v1053_v27 = vadd.f32 %v1052_v26, %v1051_v24  ;;  %v1092_v28 = vpop.f32.mrb[9].mxu1  ;;  %v1054_v29 = vpop.f32.mrb[10].mxu0 }
 0x10d   : > { %v1093_v30 = vadd.f32 %v1092_v28, %v1091_v25  ;;  %v1094_v31 = vpop.f32.mrb[10].mxu1  ;;  %v1055_v32 = vpop.f32.mrb[11].mxu0 }
 0x10e   : > { %v1056_v33 = vadd.f32 %v1055_v32, %v1054_v29  ;;  %v1095_v34 = vpop.f32.mrb[11].mxu1 }
 0x10f   : > { %v1096_v35 = vadd.f32 %v1095_v34, %v1094_v31  ;;  %v769_v36 = vadd.f32 %v1093_v30, %v1053_v27 }
 0x111   : > { %v772_v37 = vadd.f32 %v1096_v35, %v1056_v33 }
 0x112   : > { %v1057_v38 = vpop.f32.mrb[12].mxu0 }
 0x113   : > { %v1097_v39 = vpop.f32.mrb[12].mxu1  ;;  %v1058_v40 = vpop.f32.mrb[13].mxu0 }
 0x114   : > { %v1059_v41 = vadd.f32 %v1058_v40, %v1057_v38  ;;  %v1098_v42 = vpop.f32.mrb[13].mxu1  ;;  %v1060_v43 = vpop.f32.mrb[14].mxu0 }
 0x115   : > { %v1099_v44 = vadd.f32 %v1098_v42, %v1097_v39  ;;  %v1100_v45 = vpop.f32.mrb[14].mxu1  ;;  %v1061_v46 = vpop.f32.mrb[15].mxu0 }
 0x116   : > { %v1062_v47 = vadd.f32 %v1061_v46, %v1060_v43  ;;  %v1101_v48 = vpop.f32.mrb[15].mxu1 }
 0x117   : > { %v1102_v49 = vadd.f32 %v1101_v48, %v1100_v45  ;;  %v777_v50 = vadd.f32 %v1099_v44, %v1059_v41 }
 0x119   : > { %v780_v51 = vadd.f32 %v1102_v49, %v1062_v47 }
 0x11b   : > { %v1133_v52 = vpop.f32.mrb[16].mxu0 }
 0x11c   : > { %v826_v54 = vadd.f32 %v1133_v52, %v761_v22  ;;  %v1137_v55 = vpop.f32.mrb[16].mxu1  ;;  %v817_v56 = vpop.f32.mrb[17].mxu0 }
 0x11d   : > { %v842_v58 = vadd.f32 %v1137_v55, %v777_v50  ;;  %v818_v59 = vadd.f32 %v817_v56, %v753_v8  ;;  %v833_v60 = vpop.f32.mrb[17].mxu1  ;;  %v1134_v61 = vpop.f32.mrb[18].mxu0 }
 0x11e   : > { %v857_v62 = vmul.f32 %v1019_v53, %v826_v54  ;;  %v834_v63 = vadd.f32 %v833_v60, %v769_v36  ;;  %v829_v0 = vadd.f32 %v1134_v61, %v764_v23  ;;  %v1138_v1 = vpop.f32.mrb[18].mxu1  ;;  %v820_v2 = vpop.f32.mrb[19].mxu0 }
 0x11f   : > { %v861_v3 = vmul.f32 %v1019_v53, %v842_v58  ;;  %v855_v4 = vmul.f32 %v1019_v53, %v818_v59  ;;  %v845_v5 = vadd.f32 %v1138_v1, %v780_v51  ;;  %v821_v6 = vadd.f32 %v820_v2, %v756_v9  ;;  %v836_v7 = vpop.f32.mrb[19].mxu1 }
 0x120   : > { %v872_v10 = vadd.f32 %v1020_v57, %v857_v62  ;;  %v859_v11 = vmul.f32 %v1019_v53, %v834_v63  ;;  %v858_v12 = vmul.f32 %v1019_v53, %v829_v0  ;;  %v837_v13 = vadd.f32 %v836_v7, %v772_v37 }
 0x121   : > { %v876_v8 = vadd.f32 %v1020_v57, %v861_v3  ;;  %v870_v14 = vadd.f32 %v1020_v57, %v855_v4  ;;  %v862_v15 = vmul.f32 %v1019_v53, %v845_v5  ;;  %v856_v16 = vmul.f32 %v1019_v53, %v821_v6 }
 0x122   : > { %v880_v17 = vmax.f32 %v872_v10, 0.0  ;;  %v874_v18 = vadd.f32 %v1020_v57, %v859_v11  ;;  %v873_v19 = vadd.f32 %v1020_v57, %v858_v12  ;;  %v860_v20 = vmul.f32 %v1019_v53, %v837_v13 }
 0x123   : > { %v884_v21 = vmax.f32 %v876_v8, 0.0  ;;  %v878_v22 = vmax.f32 %v870_v14, 0.0  ;;  %v877_v9 = vadd.f32 %v1020_v57, %v862_v15  ;;  %v871_v23 = vadd.f32 %v1020_v57, %v856_v16 }
 0x124   : > { %888 = vst [vmem:[%s202_s10 + $0x10] sm:$0xff] %v880_v17  ;;  %v882_v24 = vmax.f32 %v874_v18, 0.0  ;;  %v881_v25 = vmax.f32 %v873_v19, 0.0  ;;  %v875_v26 = vadd.f32 %v1020_v57, %v860_v20 }
 0x125   : > { %892 = vst [vmem:[%s202_s10 + $0x30] sm:$0xff] %v884_v21  ;;  %886 = vst [vmem:[%s202_s10] sm:$0xff] %v878_v22  ;;  %v885_v27 = vmax.f32 %v877_v9, 0.0  ;;  %v879_v28 = vmax.f32 %v871_v23, 0.0 }
 0x126   : > { %890 = vst [vmem:[%s202_s10 + $0x20] sm:$0xff] %v882_v24  ;;  %889 = vst [vmem:[%s202_s10 + $0x18] sm:$0xff] %v881_v25  ;;  %v883_v29 = vmax.f32 %v875_v26, 0.0 }
 0x127   : > { %893 = vst [vmem:[%s202_s10 + $0x38] sm:$0xff] %v885_v27  ;;  %887 = vst [vmem:[%s202_s10 + $0x8] sm:$0xff] %v879_v28 }
 0x128   : > { %891 = vst [vmem:[%s202_s10 + $0x28] sm:$0xff] %v883_v29 }
 0x129 PF: > { %s14_s15 = sadd.s32 1, %s1238_s15  }
 0x12a   : > { %p11_p4 = scmp.ge.s32.totalorder %s14_s15, 4  }
 0x12c   :  { %13 = sbr.rel (!%p11_p4) target bundleno = 1 (0x1), region = 66 }

// kernel: net_forward.13
= control target key start
LH: loop header
LB: loop body
LE: loop exit
PB: predicated region body
PF: predicated region fallthrough
CT: control target
= control target key end

     0   :  { %s1349_s18 = smov 0   ;;  %s1540_s0 = inlined_call_operand.vmem [shape: bf16[128,640], index: 0, kind: input, shape index: {}]   ;;  %s1541_s1 = inlined_call_operand.vmem [shape: bf16[640,128], index: 1, kind: input, shape index: {}]   ;;  %s1542_s2 = inlined_call_operand.vmem [shape: f32[1,128], index: 2, kind: input, shape index: {}]   ;;  %s1543_s3 = inlined_call_operand.vmem [shape: f32[1,128], index: 3, kind: input, shape index: {}]   ;;  %s1544_s4 = inlined_call_operand.vmem [shape: f32[128,128], index: 4, kind: input, shape index: {}]   ;;  %s1545_s5 = inlined_call_operand.vmem [shape: f32[128,128], index: 5, kind: output, shape index: {}]  }
   0x1 LB: > { %s1027_s19 = sadd.s32 4294967295, %s1317_s18   ;;  %p1031_p0 = scmp.ge.s32.totalorder %s1317_s18, 1  ;;  %s1317_s18 = sphi %s1349_s18, %s15_s18  }
   0x2   : > { %p200_p1 = scmp.lt.s32.totalorder %s1317_s18, 3 }
   0x4   : > { %p201_p2 = pnand %p1031_p0, %p200_p1 }
   0x5   : > { %v1243_v0 = vld [vmem:[%s1541_s1 + $0x40] sm:$0xff] (!%p201_p2)   ;;  %v1247_v4 = vld [vmem:[%s1541_s1 + $0x48] sm:$0xff] (!%p201_p2)   ;;  %v1251_v8 = vld [vmem:[%s1541_s1 + $0x50] sm:$0xff] (!%p201_p2)   ;;  %s1032_s27 = sshll.u32 (!%p201_p2), %s1027_s19, 3 }
   0x6   : > { %204 = sbr.rel (%p201_p2) target bundleno = 299 (0x12b), region = 40  ;;  %v1244_v1 = vld [vmem:[%s1541_s1 + $0xc0] sm:$0xff] (!%p201_p2)   ;;  %1102 = vmatprep.subr.bf16.mxu0 (!%p201_p2), %v1243_v0  ;;  %v1248_v5 = vld [vmem:[%s1541_s1 + $0xc8] sm:$0xff] (!%p201_p2)   ;;  %v1252_v9 = vld [vmem:[%s1541_s1 + $0xd0] sm:$0xff] (!%p201_p2)   ;;  %p235_p3 = scmp.lt.s32.totalorder (!%p201_p2), %s1032_s27, 15 }
   0x7   : > { %v1245_v2 = vld [vmem:[%s1541_s1] sm:$0xff] (!%p201_p2)   ;;  %1142 = vmatprep.subr.bf16.mxu1 (!%p201_p2), %v1244_v1  ;;  %v1249_v6 = vld [vmem:[%s1541_s1 + $0x8] sm:$0xff] (!%p201_p2)   ;;  %v1253_v10 = vld [vmem:[%s1541_s1 + $0x10] sm:$0xff] (!%p201_p2)  }
   0x8   : > { %v1246_v3 = vld [vmem:[%s1541_s1 + $0x80] sm:$0xff] (!%p201_p2)   ;;  %1103 = vmatpush3.bf16.msra.mxu0 (!%p201_p2), %v1245_v2  ;;  %v1250_v7 = vld [vmem:[%s1541_s1 + $0x88] sm:$0xff] (!%p201_p2)   ;;  %v1254_v11 = vld [vmem:[%s1541_s1 + $0x90] sm:$0xff] (!%p201_p2)  }
   0x9   : > { %1143 = vmatpush3.bf16.msra.mxu1 (!%p201_p2), %v1246_v3  ;;  %1104 = vmatprep.subr.bf16.mxu0 (!%p201_p2), %v1247_v4  ;;  %v1255_v12 = vld [vmem:[%s1541_s1 + $0x58] sm:$0xff] (!%p201_p2)   ;;  %v1259_v16 = vld [vmem:[%s1541_s1 + $0x60] sm:$0xff] (!%p201_p2)   ;;  %v1263_v20 = vld [vmem:[%s1541_s1 + $0x68] sm:$0xff] (!%p201_p2)  }
   0xa   : > { %1144 = vmatprep.subr.bf16.mxu1 (!%p201_p2), %v1248_v5  ;;  %v1256_v13 = vld [vmem:[%s1541_s1 + $0xd8] sm:$0xff] (!%p201_p2)   ;;  %v1260_v17 = vld [vmem:[%s1541_s1 + $0xe0] sm:$0xff] (!%p201_p2)   ;;  %v1264_v21 = vld [vmem:[%s1541_s1 + $0xe8] sm:$0xff] (!%p201_p2)  }
   0xb   : > { %v1257_v14 = vld [vmem:[%s1541_s1 + $0x18] sm:$0xff] (!%p201_p2)   ;;  %v1261_v18 = vld [vmem:[%s1541_s1 + $0x20] sm:$0xff] (!%p201_p2)   ;;  %v1265_v22 = vld [vmem:[%s1541_s1 + $0x28] sm:$0xff] (!%p201_p2)  }
   0xc   : > { %1105 = vmatpush3.bf16.msra.mxu0 (!%p201_p2), %v1249_v6  ;;  %v1258_v15 = vld [vmem:[%s1541_s1 + $0x98] sm:$0xff] (!%p201_p2)   ;;  %v1262_v19 = vld [vmem:[%s1541_s1 + $0xa0] sm:$0xff] (!%p201_p2)   ;;  %v1266_v23 = vld [vmem:[%s1541_s1 + $0xa8] sm:$0xff] (!%p201_p2)  }
   0xd   : > { %1145 = vmatpush3.bf16.msra.mxu1 %v1250_v7  ;;  %1106 = vmatprep.subr.bf16.mxu0 %v1251_v8  ;;  %s1547_s27 = smov (!%p235_p3, %s1032_s27), 15  ;;  %v1267_v24 = vld [vmem:[%s1541_s1 + $0x70] sm:$0xff]   ;;  %v1271_v28 = vld [vmem:[%s1541_s1 + $0x78] sm:$0xff]   ;;  %v1281_v36 = vld [vmem:[%s1541_s1 + $0x100] sm:$0xff]  }
   0xe   : > { %1146 = vmatprep.subr.bf16.mxu1 %v1252_v9  ;;  %v1268_v25 = vld [vmem:[%s1541_s1 + $0xf0] sm:$0xff]   ;;  %s1234_s26 = smul.u32 20, %s1547_s27  ;;  %v1272_v29 = vld [vmem:[%s1541_s1 + $0xf8] sm:$0xff]   ;;  %v1282_v37 = vld [vmem:[%s1541_s1 + $0x108] sm:$0xff]   ;;  %s1035_s19 = sshll.u32 %s1547_s27, 3 }
   0xf   : > { %v1269_v26 = vld [vmem:[%s1541_s1 + $0x30] sm:$0xff]   ;;  %v1273_v30 = vld [vmem:[%s1541_s1 + $0x38] sm:$0xff]   ;;  %v1297_v46 = vld [vmem:[%s1541_s1 + $0x120] sm:$0xff]   ;;  %s1518_s15 = scalar_lea.vmem %s1544_s4, %s1035_s19  ;;  %s251_s22 = scalar_lea.vmem %s1545_s5, %s1035_s19 }
  0x10   : > { %1107 = vmatpush3.bf16.msra.mxu0 %v1253_v10  ;;  %v1270_v27 = vld [vmem:[%s1541_s1 + $0xb0] sm:$0xff]   ;;  %s1455_s12 = scalar_lea.vmem %s1540_s0, %s1234_s26  ;;  %v1274_v31 = vld [vmem:[%s1541_s1 + $0xb8] sm:$0xff]   ;;  %v1298_v51 = vld [vmem:[%s1541_s1 + $0x128] sm:$0xff]  }
  0x11   : > { %1147 = vmatpush3.bf16.msra.mxu1 %v1254_v11  ;;  %1108 = vmatprep.subr.bf16.mxu0 %v1255_v12  ;;  %v1275_v32 = vld [vmem:[%s1455_s12] ss:$20 sps:$4 sm:$0xff]   ;;  %v1277_v33 = vld [vmem:[%s1455_s12 + $0x4] ss:$20 sps:$4 sm:$0xff]   ;;  %v1278_v34 = vld [vmem:[%s1455_s12 + $0x8] ss:$20 sps:$4 sm:$0xff]  }
  0x12   : > { %1148 = vmatprep.subr.bf16.mxu1 %v1256_v13  ;;  %v1280_v35 = vld [vmem:[%s1455_s12 + $0xc] ss:$20 sps:$4 sm:$0xff]   ;;  %734 = vmatprep.mubr.bf16.mxu0 %v1277_v33  ;;  %v1285_v39 = vld [vmem:[%s1455_s12 + $0x34] ss:$20 sps:$4 sm:$0xff]   ;;  %v1288_v42 = vld [vmem:[%s1455_s12 + $0x30] ss:$20 sps:$4 sm:$0xff]  }
  0x13   : > { %799 = vmatprep.mubr.bf16.mxu1 %v1280_v35  ;;  %v1283_v38 = vld [vmem:[%s1455_s12 + $0x2c] ss:$20 sps:$4 sm:$0xff]   ;;  %v1287_v40 = vld [vmem:[%s1455_s12 + $0x28] ss:$20 sps:$4 sm:$0xff]   ;;  %v1289_v41 = vld [vmem:[%s1541_s1 + $0x110] sm:$0xff]  }
  0x14   : > { %1109 = vmatpush3.bf16.msra.mxu0 %v1257_v14  ;;  %v1291_v43 = vld [vmem:[%s1455_s12 + $0x54] ss:$20 sps:$4 sm:$0xff]   ;;  %v1290_v44 = vld [vmem:[%s1541_s1 + $0x118] sm:$0xff]   ;;  %v1295_v47 = vld [vmem:[%s1455_s12 + $0x50] ss:$20 sps:$4 sm:$0xff]  }
  0x15   : > { %1149 = vmatpush3.bf16.msra.mxu1 %v1258_v15  ;;  %1110 = vmatprep.subr.bf16.mxu0 %v1259_v16  ;;  %v1293_v45 = vld [vmem:[%s1455_s12 + $0x5c] ss:$20 sps:$4 sm:$0xff]   ;;  %v1296_v48 = vld [vmem:[%s1455_s12 + $0x58] ss:$20 sps:$4 sm:$0xff]   ;;  %v1304_v54 = vld [vmem:[%s1455_s12 + $0x80] ss:$20 sps:$4 sm:$0xff]  }
  0x16   : > { %1150 = vmatprep.subr.bf16.mxu1 %v1260_v17  ;;  %v1299_v49 = vld [vmem:[%s1455_s12 + $0x7c] ss:$20 sps:$4 sm:$0xff]   ;;  %v1301_v50 = vld [vmem:[%s1455_s12 + $0x84] ss:$20 sps:$4 sm:$0xff]   ;;  %v1308_v56 = vld [vmem:[%s1455_s12 + $0x60] ss:$20 sps:$4 sm:$0xff]  }
  0x17   : > { %v1305_v52 = vld [vmem:[%s1541_s1 + $0x130] sm:$0xff]   ;;  %v1303_v53 = vld [vmem:[%s1455_s12 + $0x78] ss:$20 sps:$4 sm:$0xff]   ;;  %v1310_v59 = vld [vmem:[%s1455_s12 + $0x88] ss:$20 sps:$4 sm:$0xff]  }
  0x18   : > { %1111 = vmatpush3.bf16.msra.mxu0 %v1261_v18  ;;  %v1307_v55 = vld [vmem:[%s1455_s12 + $0x10] ss:$20 sps:$4 sm:$0xff]   ;;  %v1306_v57 = vld [vmem:[%s1541_s1 + $0x138] sm:$0xff]  }
  0x19   : > { %1151 = vmatpush3.bf16.msra.mxu1 %v1262_v19  ;;  %1112 = vmatprep.subr.bf16.mxu0 %v1263_v20  ;;  %v1309_v58 = vld [vmem:[%s1455_s12 + $0x38] ss:$20 sps:$4 sm:$0xff]  }
  0x1a   : > { %1152 = vmatprep.subr.bf16.mxu1 %v1264_v21 }
  0x1c   : > { %1113 = vmatpush3.bf16.msra.mxu0 %v1265_v22 }
  0x1d   : > { %1153 = vmatpush3.bf16.msra.mxu1 %v1266_v23  ;;  %1114 = vmatprep.subr.bf16.mxu0 %v1267_v24 }
  0x1e   : > { %1154 = vmatprep.subr.bf16.mxu1 %v1268_v25 }
  0x20   : > { %1115 = vmatpush3.bf16.msra.mxu0 %v1269_v26 }
  0x21   : > { %1155 = vmatpush3.bf16.msra.mxu1 %v1270_v27  ;;  %1116 = vmatprep.subr.bf16.mxu0 %v1271_v28 }
  0x22   : > { %1156 = vmatprep.subr.bf16.mxu1 %v1272_v29 }
  0x24   : > { %1117 = vmatpush3.bf16.msra.mxu0 %v1273_v30 }
  0x25   : > { %1157 = vmatpush3.bf16.msra.mxu1 %v1274_v31  ;;  %1194 = vmatprep.subr.bf16.mxu0 %v1281_v36 }
  0x26   : > { %1218 = vmatprep.subr.bf16.mxu1 %v1281_v36 }
  0x27   : > { %735 = vmatmul.mubr.bf16.vlgmr.msra.gmra.mrb[0].mxu0 %v1275_v32 }
  0x28   : > { %800 = vmatmul.mubr.bf16.vlgmr.msra.gmra.mrb[0].mxu1 %v1278_v34  ;;  %1195 = vmatpush3.bf16.msra.mxu0 %v1281_v36 }
  0x29   : > { %1226 = vmatpush3.bf16.msra.mxu1 %v1281_v36  ;;  %1196 = vmatprep.subr.bf16.mxu0 %v1282_v37 }
  0x2a   : > { %1219 = vmatprep.subr.bf16.mxu1 %v1282_v37  ;;  %742 = vmatprep.mubr.bf16.mxu0 %v1283_v38 }
  0x2b   : > { %807 = vmatprep.mubr.bf16.mxu1 %v1285_v39 }
  0x2c   : > { %1197 = vmatpush3.bf16.msra.mxu0 %v1282_v37 }
  0x2d   : > { %1227 = vmatpush3.bf16.msra.mxu1 %v1282_v37  ;;  %1198 = vmatprep.subr.bf16.mxu0 %v1289_v41 }
  0x2e   : > { %1220 = vmatprep.subr.bf16.mxu1 %v1289_v41 }
  0x2f   : > { %743 = vmatmul.mubr.bf16.gmra.mrb[4].mxu0 %v1287_v40 }
  0x30   : > { %808 = vmatmul.mubr.bf16.gmra.mrb[4].mxu1 %v1288_v42  ;;  %750 = vmatprep.mubr.bf16.mxu0 %v1291_v43 }
  0x31   : > { %1199 = vmatpush3.bf16.msra.mxu0 %v1289_v41  ;;  %815 = vmatprep.mubr.bf16.mxu1 %v1293_v45 }
  0x32   : > { %1228 = vmatpush3.bf16.msra.mxu1 %v1289_v41  ;;  %1200 = vmatprep.subr.bf16.mxu0 %v1290_v44 }
  0x33   : > { %1221 = vmatprep.subr.bf16.mxu1 %v1290_v44 }
  0x35   : > { %1201 = vmatpush3.bf16.msra.mxu0 %v1290_v44 }
  0x36   : > { %1229 = vmatpush3.bf16.msra.mxu1 %v1290_v44  ;;  %1202 = vmatprep.subr.bf16.mxu0 %v1297_v46 }
  0x37   : > { %751 = vmatmul.mubr.bf16.gmra.mrb[8].mxu0 %v1295_v47  ;;  %1222 = vmatprep.subr.bf16.mxu1 %v1297_v46 }
  0x38   : > { %816 = vmatmul.mubr.bf16.gmra.mrb[8].mxu1 %v1296_v48  ;;  %758 = vmatprep.mubr.bf16.mxu0 %v1299_v49 }
  0x39   : > { %1203 = vmatpush3.bf16.msra.mxu0 %v1297_v46  ;;  %823 = vmatprep.mubr.bf16.mxu1 %v1301_v50 }
  0x3a   : > { %1230 = vmatpush3.bf16.msra.mxu1 %v1297_v46  ;;  %1204 = vmatprep.subr.bf16.mxu0 %v1298_v51 }
  0x3b   : > { %1223 = vmatprep.subr.bf16.mxu1 %v1298_v51 }
  0x3d   : > { %1205 = vmatpush3.bf16.msra.mxu0 %v1298_v51 }
  0x3e   : > { %1231 = vmatpush3.bf16.msra.mxu1 %v1298_v51  ;;  %1206 = vmatprep.subr.bf16.mxu0 %v1305_v52 }
  0x3f   : > { %759 = vmatmul.mubr.bf16.gmra.mrb[12].mxu0 %v1303_v53  ;;  %1224 = vmatprep.subr.bf16.mxu1 %v1305_v52  ;;  %v1098_v53 = vld [vmem:[%s1542_s2] ss:$0 sm:$0xff] }
  0x40   : > { %824 = vmatmul.mubr.bf16.gmra.mrb[12].mxu1 %v1304_v54  ;;  %1210 = vmatprep.mubr.bf16.mxu0 %v1307_v55 }
  0x41   : > { %1207 = vmatpush3.bf16.msra.mxu0 %v1305_v52  ;;  %1214 = vmatprep.mubr.bf16.mxu1 %v1308_v56 }
  0x42   : > { %1232 = vmatpush3.bf16.msra.mxu1 %v1305_v52  ;;  %1208 = vmatprep.subr.bf16.mxu0 %v1306_v57 }
  0x43   : > { %1225 = vmatprep.subr.bf16.mxu1 %v1306_v57 }
  0x45   : > { %1209 = vmatpush3.bf16.msra.mxu0 %v1306_v57 }
  0x46   : > { %1233 = vmatpush3.bf16.msra.mxu1 %v1306_v57  ;;  %v1099_v57 = vld [vmem:[%s1543_s3] ss:$0 sm:$0xff] }
  0x48   : > { %1211 = vmatmul.mubr.bf16.vlgmr.msra.gmra.mrb[16].mxu0 %v1309_v58 }
  0x49   : > { %1215 = vmatmul.mubr.bf16.vlgmr.msra.gmra.mrb[16].mxu1 %v1310_v59 }
  0xfa   : > { %v1118_v60 = vpop.f32.mrb[0].mxu0 }
  0xfb   : > { %v1158_v61 = vpop.f32.mrb[0].mxu1  ;;  %v1119_v62 = vpop.f32.mrb[1].mxu0 }
  0xfc   : > { %v1120_v63 = vadd.f32 %v1119_v62, %v1118_v60  ;;  %v1159_v0 = vpop.f32.mrb[1].mxu1  ;;  %v1121_v1 = vpop.f32.mrb[2].mxu0 }
  0xfd   : > { %v1160_v2 = vadd.f32 %v1159_v0, %v1158_v61  ;;  %v1161_v3 = vpop.f32.mrb[2].mxu1  ;;  %v1122_v4 = vpop.f32.mrb[3].mxu0 }
  0xfe   : > { %v1123_v5 = vadd.f32 %v1122_v4, %v1121_v1  ;;  %v1162_v6 = vpop.f32.mrb[3].mxu1 }
  0xff   : > { %v1163_v7 = vadd.f32 %v1162_v6, %v1161_v3  ;;  %v802_v8 = vadd.f32 %v1160_v2, %v1120_v63  ;;  %v929_v3 = vld [vmem:[%s1518_s15 + $0x10] sm:$0xff] }
 0x101   : > { %v1507_v9 = vadd.f32 %v1163_v7, %v1123_v5 }
 0x102   : > { %v1124_v10 = vpop.f32.mrb[4].mxu0 }
 0x103   : > { %v1164_v11 = vpop.f32.mrb[4].mxu1  ;;  %v1125_v12 = vpop.f32.mrb[5].mxu0 }
 0x104   : > { %v1126_v13 = vadd.f32 %v1125_v12, %v1124_v10  ;;  %v1165_v14 = vpop.f32.mrb[5].mxu1  ;;  %v1127_v15 = vpop.f32.mrb[6].mxu0  ;;  %v927_v12 = vld [vmem:[%s1518_s15] sm:$0xff] }
 0x105   : > { %v1166_v16 = vadd.f32 %v1165_v14, %v1164_v11  ;;  %v1167_v17 = vpop.f32.mrb[6].mxu1  ;;  %v1128_v18 = vpop.f32.mrb[7].mxu0 }
 0x106   : > { %v1129_v19 = vadd.f32 %v1128_v18, %v1127_v15  ;;  %v1168_v20 = vpop.f32.mrb[7].mxu1  ;;  %v931_v18 = vld [vmem:[%s1518_s15 + $0x20] sm:$0xff] }
 0x107   : > { %v1169_v21 = vadd.f32 %v1168_v20, %v1167_v17  ;;  %v810_v22 = vadd.f32 %v1166_v16, %v1126_v13 }
 0x109   : > { %v813_v23 = vadd.f32 %v1169_v21, %v1129_v19  ;;  %v930_v19 = vld [vmem:[%s1518_s15 + $0x18] sm:$0xff] }
 0x10a   : > { %v1130_v24 = vpop.f32.mrb[8].mxu0 }
 0x10b   : > { %v1170_v25 = vpop.f32.mrb[8].mxu1  ;;  %v1131_v26 = vpop.f32.mrb[9].mxu0 }
 0x10c   : > { %v1132_v27 = vadd.f32 %v1131_v26, %v1130_v24  ;;  %v1171_v28 = vpop.f32.mrb[9].mxu1  ;;  %v1133_v29 = vpop.f32.mrb[10].mxu0  ;;  %v934_v24 = vld [vmem:[%s1518_s15 + $0x38] sm:$0xff] }
 0x10d   : > { %v1172_v30 = vadd.f32 %v1171_v28, %v1170_v25  ;;  %v1173_v31 = vpop.f32.mrb[10].mxu1  ;;  %v1134_v32 = vpop.f32.mrb[11].mxu0  ;;  %v928_v25 = vld [vmem:[%s1518_s15 + $0x8] sm:$0xff] }
 0x10e   : > { %v1135_v33 = vadd.f32 %v1134_v32, %v1133_v29  ;;  %v1174_v34 = vpop.f32.mrb[11].mxu1 }
 0x10f   : > { %v1175_v35 = vadd.f32 %v1174_v34, %v1173_v31  ;;  %v818_v36 = vadd.f32 %v1172_v30, %v1132_v27  ;;  %v932_v31 = vld [vmem:[%s1518_s15 + $0x28] sm:$0xff] }
 0x111   : > { %v821_v37 = vadd.f32 %v1175_v35, %v1135_v33 }
 0x112   : > { %v1136_v38 = vpop.f32.mrb[12].mxu0 }
 0x113   : > { %v1176_v39 = vpop.f32.mrb[12].mxu1  ;;  %v1137_v40 = vpop.f32.mrb[13].mxu0 }
 0x114   : > { %v1138_v41 = vadd.f32 %v1137_v40, %v1136_v38  ;;  %v1177_v42 = vpop.f32.mrb[13].mxu1  ;;  %v1139_v43 = vpop.f32.mrb[14].mxu0 }
 0x115   : > { %v1178_v44 = vadd.f32 %v1177_v42, %v1176_v39  ;;  %v1179_v45 = vpop.f32.mrb[14].mxu1  ;;  %v1140_v46 = vpop.f32.mrb[15].mxu0 }
 0x116   : > { %v1141_v47 = vadd.f32 %v1140_v46, %v1139_v43  ;;  %v1180_v48 = vpop.f32.mrb[15].mxu1 }
 0x117   : > { %v1181_v49 = vadd.f32 %v1180_v48, %v1179_v45  ;;  %v826_v50 = vadd.f32 %v1178_v44, %v1138_v41 }
 0x119   : > { %v829_v51 = vadd.f32 %v1181_v49, %v1141_v47 }
 0x11b   : > { %v1212_v52 = vpop.f32.mrb[16].mxu0 }
 0x11c   : > { %v875_v54 = vadd.f32 %v1212_v52, %v810_v22  ;;  %v1216_v55 = vpop.f32.mrb[16].mxu1  ;;  %v866_v56 = vpop.f32.mrb[17].mxu0 }
 0x11d   : > { %v891_v58 = vadd.f32 %v1216_v55, %v826_v50  ;;  %v867_v59 = vadd.f32 %v866_v56, %v802_v8  ;;  %v882_v60 = vpop.f32.mrb[17].mxu1  ;;  %v1213_v61 = vpop.f32.mrb[18].mxu0  ;;  %v933_v8 = vld [vmem:[%s1518_s15 + $0x30] sm:$0xff] }
 0x11e   : > { %v906_v62 = vmul.f32 %v1098_v53, %v875_v54  ;;  %v883_v63 = vadd.f32 %v882_v60, %v818_v36  ;;  %v878_v0 = vadd.f32 %v1213_v61, %v813_v23  ;;  %v1217_v1 = vpop.f32.mrb[18].mxu1  ;;  %v869_v2 = vpop.f32.mrb[19].mxu0 }
 0x11f   : > { %v910_v4 = vmul.f32 %v1098_v53, %v891_v58  ;;  %v904_v5 = vmul.f32 %v1098_v53, %v867_v59  ;;  %v894_v6 = vadd.f32 %v1217_v1, %v829_v51  ;;  %v870_v7 = vadd.f32 %v869_v2, %v1507_v9  ;;  %v885_v10 = vpop.f32.mrb[19].mxu1 }
 0x120   : > { %v921_v11 = vadd.f32 %v1099_v57, %v906_v62  ;;  %v908_v13 = vmul.f32 %v1098_v53, %v883_v63  ;;  %v907_v14 = vmul.f32 %v1098_v53, %v878_v0  ;;  %v886_v15 = vadd.f32 %v885_v10, %v821_v37 }
 0x121   : > { %v925_v16 = vadd.f32 %v1099_v57, %v910_v4  ;;  %v919_v17 = vadd.f32 %v1099_v57, %v904_v5  ;;  %v911_v20 = vmul.f32 %v1098_v53, %v894_v6  ;;  %v905_v21 = vmul.f32 %v1098_v53, %v870_v7 }
 0x122   : > { %v937_v22 = vadd.f32 %v929_v3, %v921_v11  ;;  %v923_v23 = vadd.f32 %v1099_v57, %v908_v13  ;;  %v922_v9 = vadd.f32 %v1099_v57, %v907_v14  ;;  %v909_v26 = vmul.f32 %v1098_v53, %v886_v15 }
 0x123   : > { %v941_v27 = vadd.f32 %v933_v8, %v925_v16  ;;  %v935_v28 = vadd.f32 %v927_v12, %v919_v17  ;;  %v926_v29 = vadd.f32 %v1099_v57, %v911_v20  ;;  %v920_v30 = vadd.f32 %v1099_v57, %v905_v21 }
 0x124   : > { %v945_v32 = vmax.f32 %v937_v22, 0.0  ;;  %v939_v33 = vadd.f32 %v931_v18, %v923_v23  ;;  %v938_v34 = vadd.f32 %v930_v19, %v922_v9  ;;  %v924_v35 = vadd.f32 %v1099_v57, %v909_v26 }
 0x125   : > { %v949_v36 = vmax.f32 %v941_v27, 0.0  ;;  %v943_v37 = vmax.f32 %v935_v28, 0.0  ;;  %v942_v38 = vadd.f32 %v934_v24, %v926_v29  ;;  %v936_v39 = vadd.f32 %v928_v25, %v920_v30 }
 0x126   : > { %953 = vst [vmem:[%s251_s22 + $0x10] sm:$0xff] %v945_v32  ;;  %v947_v40 = vmax.f32 %v939_v33, 0.0  ;;  %v946_v41 = vmax.f32 %v938_v34, 0.0  ;;  %v940_v42 = vadd.f32 %v932_v31, %v924_v35 }
 0x127   : > { %957 = vst [vmem:[%s251_s22 + $0x30] sm:$0xff] %v949_v36  ;;  %951 = vst [vmem:[%s251_s22] sm:$0xff] %v943_v37  ;;  %v950_v43 = vmax.f32 %v942_v38, 0.0  ;;  %v944_v44 = vmax.f32 %v936_v39, 0.0 }
 0x128   : > { %955 = vst [vmem:[%s251_s22 + $0x20] sm:$0xff] %v947_v40  ;;  %954 = vst [vmem:[%s251_s22 + $0x18] sm:$0xff] %v946_v41  ;;  %v948_v45 = vmax.f32 %v940_v42, 0.0 }
 0x129   : > { %958 = vst [vmem:[%s251_s22 + $0x38] sm:$0xff] %v950_v43  ;;  %952 = vst [vmem:[%s251_s22 + $0x8] sm:$0xff] %v944_v44 }
 0x12a   : > { %956 = vst [vmem:[%s251_s22 + $0x28] sm:$0xff] %v948_v45 }
 0x12b PF: > { %s15_s18 = sadd.s32 1, %s1317_s18  }
 0x12c   : > { %p12_p4 = scmp.ge.s32.totalorder %s15_s18, 4  }
 0x12e   :  { %14 = sbr.rel (!%p12_p4) target bundleno = 1 (0x1), region = 73 }

// kernel: net_forward.16
= control target key start
LH: loop header
LB: loop body
LE: loop exit
PB: predicated region body
PF: predicated region fallthrough
CT: control target
= control target key end

     0   :  { %s1410_s30 = smov 0   ;;  %s1603_s0 = inlined_call_operand.vmem [shape: bf16[32,640], index: 0, kind: input, shape index: {}]   ;;  %s1604_s1 = inlined_call_operand.vmem [shape: bf16[640,128], index: 1, kind: input, shape index: {}]   ;;  %s1605_s2 = inlined_call_operand.vmem [shape: f32[1,128], index: 2, kind: input, shape index: {}]   ;;  %s1606_s3 = inlined_call_operand.vmem [shape: f32[1,128], index: 3, kind: input, shape index: {}]   ;;  %s1607_s4 = inlined_call_operand.vmem [shape: bf16[32,128], index: 4, kind: input, shape index: {}]   ;;  %s1608_s5 = inlined_call_operand.vmem [shape: bf16[128,128], index: 5, kind: input, shape index: {}]   ;;  %s1609_s6 = inlined_call_operand.vmem [shape: f32[1,128], index: 6, kind: input, shape index: {}]   ;;  %s1610_s7 = inlined_call_operand.vmem [shape: f32[1,128], index: 7, kind: input, shape index: {}]   ;;  %s1611_s8 = inlined_call_operand.vmem [shape: f32[32,128], index: 8, kind: output, shape index: {0}]   ;;  %s1612_s9 = inlined_call_operand.vmem [shape: f32[32,128], index: 9, kind: output, shape index: {1}]  }
   0x1 LB: > { %s1108_s10 = sadd.s32 4294967295, %s1356_s30   ;;  %p1112_p0 = scmp.ge.s32.totalorder %s1356_s30, 1  ;;  %s1356_s30 = sphi %s1410_s30, %s20_s30  }
   0x2   : > { %p303_p1 = scmp.lt.s32.totalorder %s1356_s30, 3 }
   0x4   : > { %p304_p2 = pnand %p1112_p0, %p303_p1 }
   0x5   : > { %v1294_v0 = vld [vmem:[%s1604_s1 + $0x40] sm:$0xff] (!%p304_p2)   ;;  %v1298_v4 = vld [vmem:[%s1604_s1 + $0x48] sm:$0xff] (!%p304_p2)   ;;  %v1302_v8 = vld [vmem:[%s1604_s1 + $0x50] sm:$0xff] (!%p304_p2)   ;;  %s1113_s22 = sshll.u32 (!%p304_p2), %s1108_s10, 1  ;;  %v1358_v34 = vmov (!%p304_p2), 0.0   ;;  %vm1359_vm0 = vmmov (!%p304_p2), 0  }
   0x6   : > { %307 = sbr.rel (%p304_p2) target bundleno = 294 (0x126), region = 52  ;;  %v1295_v1 = vld [vmem:[%s1604_s1 + $0xc0] sm:$0xff] (!%p304_p2)   ;;  %1181 = vmatprep.subr.bf16.mxu0 (!%p304_p2), %v1294_v0  ;;  %v1299_v5 = vld [vmem:[%s1604_s1 + $0xc8] sm:$0xff] (!%p304_p2)   ;;  %v1303_v9 = vld [vmem:[%s1604_s1 + $0xd0] sm:$0xff] (!%p304_p2)   ;;  %p351_p3 = scmp.lt.s32.totalorder (!%p304_p2), %s1113_s22, 3 }
   0x7   : > { %v1296_v2 = vld [vmem:[%s1604_s1] sm:$0xff] (!%p304_p2)   ;;  %1203 = vmatprep.subr.bf16.mxu1 (!%p304_p2), %v1295_v1  ;;  %v1300_v6 = vld [vmem:[%s1604_s1 + $0x8] sm:$0xff] (!%p304_p2)   ;;  %v1304_v10 = vld [vmem:[%s1604_s1 + $0x10] sm:$0xff] (!%p304_p2)  }
   0x8   : > { %v1297_v3 = vld [vmem:[%s1604_s1 + $0x80] sm:$0xff] (!%p304_p2)   ;;  %1182 = vmatpush3.bf16.msra.mxu0 (!%p304_p2), %v1296_v2  ;;  %v1301_v7 = vld [vmem:[%s1604_s1 + $0x88] sm:$0xff] (!%p304_p2)   ;;  %v1305_v11 = vld [vmem:[%s1604_s1 + $0x90] sm:$0xff] (!%p304_p2)  }
   0x9   : > { %1204 = vmatpush3.bf16.msra.mxu1 (!%p304_p2), %v1297_v3  ;;  %1183 = vmatprep.subr.bf16.mxu0 (!%p304_p2), %v1298_v4  ;;  %v1306_v12 = vld [vmem:[%s1604_s1 + $0x58] sm:$0xff] (!%p304_p2)   ;;  %v1310_v16 = vld [vmem:[%s1604_s1 + $0x60] sm:$0xff] (!%p304_p2)   ;;  %v1314_v20 = vld [vmem:[%s1604_s1 + $0x68] sm:$0xff] (!%p304_p2)  }
   0xa   : > { %1205 = vmatprep.subr.bf16.mxu1 (!%p304_p2), %v1299_v5  ;;  %v1307_v13 = vld [vmem:[%s1604_s1 + $0xd8] sm:$0xff] (!%p304_p2)   ;;  %v1311_v17 = vld [vmem:[%s1604_s1 + $0xe0] sm:$0xff] (!%p304_p2)   ;;  %v1315_v21 = vld [vmem:[%s1604_s1 + $0xe8] sm:$0xff] (!%p304_p2)  }
   0xb   : > { %v1308_v14 = vld [vmem:[%s1604_s1 + $0x18] sm:$0xff] (!%p304_p2)   ;;  %v1312_v18 = vld [vmem:[%s1604_s1 + $0x20] sm:$0xff] (!%p304_p2)   ;;  %v1316_v22 = vld [vmem:[%s1604_s1 + $0x28] sm:$0xff] (!%p304_p2)  }
   0xc   : > { %1184 = vmatpush3.bf16.msra.mxu0 (!%p304_p2), %v1300_v6  ;;  %v1309_v15 = vld [vmem:[%s1604_s1 + $0x98] sm:$0xff] (!%p304_p2)   ;;  %v1313_v19 = vld [vmem:[%s1604_s1 + $0xa0] sm:$0xff] (!%p304_p2)   ;;  %v1317_v23 = vld [vmem:[%s1604_s1 + $0xa8] sm:$0xff] (!%p304_p2)  }
   0xd   : > { %1206 = vmatpush3.bf16.msra.mxu1 %v1301_v7  ;;  %1185 = vmatprep.subr.bf16.mxu0 %v1302_v8  ;;  %s1614_s22 = smov (!%p351_p3, %s1113_s22), 3  ;;  %v1318_v24 = vld [vmem:[%s1604_s1 + $0x70] sm:$0xff]   ;;  %v1322_v28 = vld [vmem:[%s1604_s1 + $0x78] sm:$0xff]   ;;  %v1332_v37 = vld [vmem:[%s1604_s1 + $0x100] sm:$0xff]  }
   0xe   : > { %1207 = vmatprep.subr.bf16.mxu1 %v1303_v9  ;;  %v1319_v25 = vld [vmem:[%s1604_s1 + $0xf0] sm:$0xff]   ;;  %s1283_s26 = smul.u32 20, %s1614_s22  ;;  %v1323_v29 = vld [vmem:[%s1604_s1 + $0xf8] sm:$0xff]   ;;  %v1333_v38 = vld [vmem:[%s1608_s5] sm:$0xff]   ;;  %s1116_s20 = sshll.u32 %s1614_s22, 2 }
   0xf   : > { %v1320_v26 = vld [vmem:[%s1604_s1 + $0x30] sm:$0xff]   ;;  %v1324_v30 = vld [vmem:[%s1604_s1 + $0x38] sm:$0xff]   ;;  %v1334_v39 = vld [vmem:[%s1604_s1 + $0x108] sm:$0xff]   ;;  %s361_s28 = scalar_lea.vmem %s1607_s4, %s1116_s20 }
  0x10   : > { %1186 = vmatpush3.bf16.msra.mxu0 %v1304_v10  ;;  %v1321_v27 = vld [vmem:[%s1604_s1 + $0xb0] sm:$0xff]   ;;  %s1516_s17 = scalar_lea.vmem %s1603_s0, %s1283_s26  ;;  %v1325_v31 = vld [vmem:[%s1604_s1 + $0xb8] sm:$0xff]   ;;  %v1335_v40 = vld [vmem:[%s1608_s5 + $0x8] sm:$0xff]   ;;  %s1118_s26 = sshll.u32 %s1614_s22, 3 }
  0x11   : > { %1208 = vmatpush3.bf16.msra.mxu1 %v1305_v11  ;;  %1187 = vmatprep.subr.bf16.mxu0 %v1306_v12  ;;  %v1326_v32 = vld [vmem:[%s1516_s17] ss:$20 sps:$4 sm:$0xff]   ;;  %v1328_v33 = vld [vmem:[%s1516_s17 + $0x4] ss:$20 sps:$4 sm:$0xff]   ;;  %v1329_v35 = vld [vmem:[%s1516_s17 + $0x8] ss:$20 sps:$4 sm:$0xff]   ;;  %s373_s13 = scalar_lea.vmem %s1612_s9, %s1118_s26  ;;  %s367_s15 = scalar_lea.vmem %s1611_s8, %s1118_s26 }
  0x12   : > { %1209 = vmatprep.subr.bf16.mxu1 %v1307_v13  ;;  %v1331_v36 = vld [vmem:[%s1516_s17 + $0xc] ss:$20 sps:$4 sm:$0xff]   ;;  %760 = vmatprep.mubr.bf16.mxu0 %v1328_v33  ;;  %v1336_v41 = vld [vmem:[%s1604_s1 + $0x110] sm:$0xff]   ;;  %v1338_v43 = vld [vmem:[%s1604_s1 + $0x118] sm:$0xff]  }
  0x13   : > { %801 = vmatprep.mubr.bf16.mxu1 %v1331_v36  ;;  %v1337_v42 = vld [vmem:[%s1608_s5 + $0x10] sm:$0xff]   ;;  %v1339_v44 = vld [vmem:[%s1608_s5 + $0x18] sm:$0xff]   ;;  %v1340_v45 = vld [vmem:[%s1604_s1 + $0x120] sm:$0xff]  }
  0x14   : > { %1188 = vmatpush3.bf16.msra.mxu0 %v1308_v14  ;;  %v1341_v46 = vld [vmem:[%s1608_s5 + $0x20] sm:$0xff]   ;;  %v1342_v47 = vld [vmem:[%s1604_s1 + $0x128] sm:$0xff]   ;;  %v1344_v49 = vld [vmem:[%s1604_s1 + $0x130] sm:$0xff]  }
  0x15   : > { %1210 = vmatpush3.bf16.msra.mxu1 %v1309_v15  ;;  %1189 = vmatprep.subr.bf16.mxu0 %v1310_v16  ;;  %v1343_v48 = vld [vmem:[%s1608_s5 + $0x28] sm:$0xff]   ;;  %v1345_v50 = vld [vmem:[%s1608_s5 + $0x30] sm:$0xff]   ;;  %v1346_v51 = vld [vmem:[%s1604_s1 + $0x138] sm:$0xff]  }
  0x16   : > { %1211 = vmatprep.subr.bf16.mxu1 %v1311_v17  ;;  %v1347_v52 = vld [vmem:[%s1608_s5 + $0x38] sm:$0xff]   ;;  %v1348_v53 = vld [vmem:[%s1516_s17 + $0x10] ss:$20 sps:$4 sm:$0xff]   ;;  %v1177_v5 = vld [vmem:[%s1609_s6] ss:$0 sm:$0xff] }
  0x17   : > { %v1349_v54 = vld [vmem:[%s361_s28] sm:$0xff]  }
  0x18   : > { %1190 = vmatpush3.bf16.msra.mxu0 %v1312_v18  ;;  %v1166_v7 = vld [vmem:[%s1605_s2] ss:$0 sm:$0xff] }
  0x19   : > { %1212 = vmatpush3.bf16.msra.mxu1 %v1313_v19  ;;  %1191 = vmatprep.subr.bf16.mxu0 %v1314_v20  ;;  %v1178_v11 = vld [vmem:[%s1610_s7] ss:$0 sm:$0xff] }
  0x1a   : > { %1213 = vmatprep.subr.bf16.mxu1 %v1315_v21  ;;  %v1167_v12 = vld [vmem:[%s1606_s3] ss:$0 sm:$0xff] }
  0x1c   : > { %1192 = vmatpush3.bf16.msra.mxu0 %v1316_v22 }
  0x1d   : > { %1214 = vmatpush3.bf16.msra.mxu1 %v1317_v23  ;;  %1193 = vmatprep.subr.bf16.mxu0 %v1318_v24 }
  0x1e   : > { %1215 = vmatprep.subr.bf16.mxu1 %v1319_v25 }
  0x20   : > { %1194 = vmatpush3.bf16.msra.mxu0 %v1320_v26 }
  0x21   : > { %1216 = vmatpush3.bf16.msra.mxu1 %v1321_v27  ;;  %1195 = vmatprep.subr.bf16.mxu0 %v1322_v28 }
  0x22   : > { %1217 = vmatprep.subr.bf16.mxu1 %v1323_v29 }
  0x24   : > { %1196 = vmatpush3.bf16.msra.mxu0 %v1324_v30 }
  0x25   : > { %1218 = vmatpush3.bf16.msra.mxu1 %v1325_v31  ;;  %1243 = vmatprep.subr.bf16.mxu0 %v1358_v34 }
  0x26   : > { %1263 = vmatprep.subr.bf16.mxu1 %v1358_v34 }
  0x27   : > { %761 = vmatmul.mubr.bf16.vlgmr.msra.gmra.mrb[0].mxu0 %v1326_v32 }
  0x28   : > { %802 = vmatmul.mubr.bf16.vlgmr.msra.gmra.mrb[0].mxu1 %v1329_v35  ;;  %1244 = vmatpush3.bf16.msra.mxu0 %v1332_v37 }
  0x29   : > { %1264 = vmatpush3.bf16.msra.mxu1 %v1333_v38  ;;  %1245 = vmatprep.subr.bf16.mxu0 %v1358_v34 }
  0x2a   : > { %1265 = vmatprep.subr.bf16.mxu1 %v1358_v34  ;;  %1259 = vmatprep.mubr.msk.bf16.mxu0 %vm1359_vm0, %v1358_v34 }
  0x2b   : > { %1279 = vmatprep.mubr.msk.bf16.mxu1 %vm1359_vm0, %v1358_v34 }
  0x2c   : > { %1246 = vmatpush3.bf16.msra.mxu0 %v1334_v39 }
  0x2d   : > { %1266 = vmatpush3.bf16.msra.mxu1 %v1335_v40  ;;  %1247 = vmatprep.subr.bf16.mxu0 %v1358_v34 }
  0x2e   : > { %1267 = vmatprep.subr.bf16.mxu1 %v1358_v34 }
  0x30   : > { %1248 = vmatpush3.bf16.msra.mxu0 %v1336_v41 }
  0x31   : > { %1268 = vmatpush3.bf16.msra.mxu1 %v1337_v42  ;;  %1249 = vmatprep.subr.bf16.mxu0 %v1358_v34 }
  0x32   : > { %1269 = vmatprep.subr.bf16.mxu1 %v1358_v34 }
  0x34   : > { %1250 = vmatpush3.bf16.msra.mxu0 %v1338_v43 }
  0x35   : > { %1270 = vmatpush3.bf16.msra.mxu1 %v1339_v44  ;;  %1251 = vmatprep.subr.bf16.mxu0 %v1358_v34 }
  0x36   : > { %1271 = vmatprep.subr.bf16.mxu1 %v1358_v34 }
  0x38   : > { %1252 = vmatpush3.bf16.msra.mxu0 %v1340_v45 }
  0x39   : > { %1272 = vmatpush3.bf16.msra.mxu1 %v1341_v46  ;;  %1253 = vmatprep.subr.bf16.mxu0 %v1358_v34 }
  0x3a   : > { %1273 = vmatprep.subr.bf16.mxu1 %v1358_v34 }
  0x3c   : > { %1254 = vmatpush3.bf16.msra.mxu0 %v1342_v47 }
  0x3d   : > { %1274 = vmatpush3.bf16.msra.mxu1 %v1343_v48  ;;  %1255 = vmatprep.subr.bf16.mxu0 %v1358_v34 }
  0x3e   : > { %1275 = vmatprep.subr.bf16.mxu1 %v1358_v34 }
  0x40   : > { %1256 = vmatpush3.bf16.msra.mxu0 %v1344_v49 }
  0x41   : > { %1276 = vmatpush3.bf16.msra.mxu1 %v1345_v50  ;;  %1257 = vmatprep.subr.bf16.mxu0 %v1358_v34 }
  0x42   : > { %1277 = vmatprep.subr.bf16.mxu1 %v1358_v34 }
  0x44   : > { %1258 = vmatpush3.bf16.msra.mxu0 %v1346_v51 }
  0x45   : > { %1278 = vmatpush3.bf16.msra.mxu1 %v1347_v52 }
  0x47   : > { %1260 = vmatmul.mubr.bf16.vlgmr.msra.gmra.mrb[4].mxu0 %v1348_v53 }
  0x48   : > { %1280 = vmatmul.mubr.bf16.vlgmr.msra.gmra.mrb[4].mxu1 %v1349_v54 }
  0xfa   : > { %v1197_v55 = vpop.f32.mrb[0].mxu0 }
  0xfb   : > { %v1219_v56 = vpop.f32.mrb[0].mxu1  ;;  %v1198_v57 = vpop.f32.mrb[1].mxu0 }
  0xfc   : > { %v1199_v58 = vadd.f32 %v1198_v57, %v1197_v55  ;;  %v1220_v59 = vpop.f32.mrb[1].mxu1  ;;  %v1200_v60 = vpop.f32.mrb[2].mxu0 }
  0xfd   : > { %v1221_v61 = vadd.f32 %v1220_v59, %v1219_v56  ;;  %v1222_v62 = vpop.f32.mrb[2].mxu1  ;;  %v1201_v63 = vpop.f32.mrb[3].mxu0 }
  0xfe   : > { %v1202_v0 = vadd.f32 %v1201_v63, %v1200_v60  ;;  %v1223_v1 = vpop.f32.mrb[3].mxu1 }
  0xff   : > { %v1224_v2 = vadd.f32 %v1223_v1, %v1222_v62  ;;  %v804_v3 = vadd.f32 %v1221_v61, %v1199_v58 }
 0x101   : > { %v807_v4 = vadd.f32 %v1224_v2, %v1202_v0 }
 0x11a   : > { %v844_v6 = vpop.f32.mrb[4].mxu0 }
 0x11b   : > { %v845_v8 = vadd.f32 %v844_v6, %v804_v3  ;;  %v1261_v9 = vpop.f32.mrb[5].mxu0  ;;  %v979_v10 = vpop.f32.mrb[4].mxu1 }
 0x11c   : > { %v993_v13 = vmul.f32 %v1177_v5, %v979_v10  ;;  %v847_v14 = vpop.f32.mrb[6].mxu0  ;;  %v1281_v15 = vpop.f32.mrb[5].mxu1 }
 0x11d   : > { %v858_v16 = vmul.f32 %v1166_v7, %v845_v8  ;;  %v848_v17 = vadd.f32 %v847_v14, %v807_v4  ;;  %v1262_v18 = vpop.f32.mrb[7].mxu0  ;;  %v982_v19 = vpop.f32.mrb[6].mxu1 }
 0x11e   : > { %v1002_v20 = vadd.f32 %v1178_v11, %v993_v13  ;;  %v994_v21 = vmul.f32 %v1177_v5, %v982_v19  ;;  %v1282_v22 = vpop.f32.mrb[7].mxu1 }
 0x11f   : > { %v867_v23 = vadd.f32 %v1167_v12, %v858_v16  ;;  %v859_v24 = vmul.f32 %v1166_v7, %v848_v17 }
 0x120   : > { %1004 = vst [vmem:[%s373_s13] sm:$0xff] %v1002_v20  ;;  %v1003_v25 = vadd.f32 %v1178_v11, %v994_v21 }
 0x121   : > { %v869_v26 = vmax.f32 %v867_v23, 0.0  ;;  %v868_v27 = vadd.f32 %v1167_v12, %v859_v24 }
 0x122   : > { %1005 = vst [vmem:[%s373_s13 + $0x8] sm:$0xff] %v1003_v25 }
 0x123   : > { %871 = vst [vmem:[%s367_s15] sm:$0xff] %v869_v26  ;;  %v870_v28 = vmax.f32 %v868_v27, 0.0 }
 0x125   : > { %872 = vst [vmem:[%s367_s15 + $0x8] sm:$0xff] %v870_v28 }
 0x126 PF: > { %s20_s30 = sadd.s32 1, %s1356_s30  }
 0x127   : > { %p17_p4 = scmp.ge.s32.totalorder %s20_s30, 4  }
 0x129   :  { %19 = sbr.rel (!%p17_p4) target bundleno = 1 (0x1), region = 97 }

// kernel: net_forward.18
= control target key start
LH: loop header
LB: loop body
LE: loop exit
PB: predicated region body
PF: predicated region fallthrough
CT: control target
= control target key end

     0   :  { %s1462_s15 = smov 0   ;;  %s1718_s0 = inlined_call_operand.vmem [shape: bf16[32,1152], index: 0, kind: input, shape index: {}]   ;;  %s1719_s1 = inlined_call_operand.vmem [shape: bf16[1152,128], index: 1, kind: input, shape index: {}]   ;;  %s1720_s2 = inlined_call_operand.vmem [shape: f32[1,128], index: 2, kind: input, shape index: {}]   ;;  %s1721_s3 = inlined_call_operand.vmem [shape: f32[1,128], index: 3, kind: input, shape index: {}]   ;;  %s1722_s4 = inlined_call_operand.vmem [shape: f32[32,128], index: 4, kind: output, shape index: {}]  }
   0x1 LB: > { %s1120_s16 = sadd.s32 4294967295, %s1433_s15   ;;  %p1124_p0 = scmp.ge.s32.totalorder %s1433_s15, 1  ;;  %s1433_s15 = sphi %s1462_s15, %s14_s15  }
   0x2   : > { %p164_p1 = scmp.lt.s32.totalorder %s1433_s15, 3 }
   0x4   : > { %p165_p2 = pnand %p1124_p0, %p164_p1 }
   0x5   : > { %v1342_v0 = vld [vmem:[%s1719_s1 + $0x40] sm:$0xff] (!%p165_p2)   ;;  %v1346_v4 = vld [vmem:[%s1719_s1 + $0x48] sm:$0xff] (!%p165_p2)   ;;  %v1350_v8 = vld [vmem:[%s1719_s1 + $0x50] sm:$0xff] (!%p165_p2)   ;;  %s1125_s23 = sshll.u32 (!%p165_p2), %s1120_s16, 1  ;;  %vm1436_vm0 = vmmov (!%p165_p2), 0  }
   0x6   : > { %168 = sbr.rel (%p165_p2) target bundleno = 326 (0x146), region = 36  ;;  %v1343_v1 = vld [vmem:[%s1719_s1 + $0xc0] sm:$0xff] (!%p165_p2)   ;;  %1214 = vmatprep.subr.bf16.mxu0 (!%p165_p2), %v1342_v0  ;;  %v1347_v5 = vld [vmem:[%s1719_s1 + $0xc8] sm:$0xff] (!%p165_p2)   ;;  %v1351_v9 = vld [vmem:[%s1719_s1 + $0xd0] sm:$0xff] (!%p165_p2)   ;;  %p192_p3 = scmp.lt.s32.totalorder (!%p165_p2), %s1125_s23, 3 }
   0x7   : > { %v1344_v2 = vld [vmem:[%s1719_s1] sm:$0xff] (!%p165_p2)   ;;  %1236 = vmatprep.subr.bf16.mxu1 (!%p165_p2), %v1343_v1  ;;  %v1348_v6 = vld [vmem:[%s1719_s1 + $0x8] sm:$0xff] (!%p165_p2)   ;;  %v1352_v10 = vld [vmem:[%s1719_s1 + $0x10] sm:$0xff] (!%p165_p2)  }
   0x8   : > { %v1345_v3 = vld [vmem:[%s1719_s1 + $0x80] sm:$0xff] (!%p165_p2)   ;;  %1215 = vmatpush3.bf16.msra.mxu0 (!%p165_p2), %v1344_v2  ;;  %v1349_v7 = vld [vmem:[%s1719_s1 + $0x88] sm:$0xff] (!%p165_p2)   ;;  %v1353_v11 = vld [vmem:[%s1719_s1 + $0x90] sm:$0xff] (!%p165_p2)  }
   0x9   : > { %1237 = vmatpush3.bf16.msra.mxu1 (!%p165_p2), %v1345_v3  ;;  %1216 = vmatprep.subr.bf16.mxu0 (!%p165_p2), %v1346_v4  ;;  %v1354_v12 = vld [vmem:[%s1719_s1 + $0x58] sm:$0xff] (!%p165_p2)   ;;  %v1358_v16 = vld [vmem:[%s1719_s1 + $0x60] sm:$0xff] (!%p165_p2)   ;;  %v1362_v20 = vld [vmem:[%s1719_s1 + $0x68] sm:$0xff] (!%p165_p2)  }
   0xa   : > { %1238 = vmatprep.subr.bf16.mxu1 (!%p165_p2), %v1347_v5  ;;  %v1355_v13 = vld [vmem:[%s1719_s1 + $0xd8] sm:$0xff] (!%p165_p2)   ;;  %v1359_v17 = vld [vmem:[%s1719_s1 + $0xe0] sm:$0xff] (!%p165_p2)   ;;  %v1363_v21 = vld [vmem:[%s1719_s1 + $0xe8] sm:$0xff] (!%p165_p2)  }
   0xb   : > { %v1356_v14 = vld [vmem:[%s1719_s1 + $0x18] sm:$0xff] (!%p165_p2)   ;;  %v1360_v18 = vld [vmem:[%s1719_s1 + $0x20] sm:$0xff] (!%p165_p2)   ;;  %v1364_v22 = vld [vmem:[%s1719_s1 + $0x28] sm:$0xff] (!%p165_p2)  }
   0xc   : > { %1217 = vmatpush3.bf16.msra.mxu0 (!%p165_p2), %v1348_v6  ;;  %v1357_v15 = vld [vmem:[%s1719_s1 + $0x98] sm:$0xff] (!%p165_p2)   ;;  %v1361_v19 = vld [vmem:[%s1719_s1 + $0xa0] sm:$0xff] (!%p165_p2)   ;;  %v1365_v23 = vld [vmem:[%s1719_s1 + $0xa8] sm:$0xff] (!%p165_p2)   ;;  %v1435_v6 = vmov (!%p165_p2), 0.0  }
   0xd   : > { %1239 = vmatpush3.bf16.msra.mxu1 %v1349_v7  ;;  %1218 = vmatprep.subr.bf16.mxu0 %v1350_v8  ;;  %s1724_s23 = smov (!%p192_p3, %s1125_s23), 3  ;;  %v1366_v24 = vld [vmem:[%s1719_s1 + $0x70] sm:$0xff]   ;;  %v1370_v28 = vld [vmem:[%s1719_s1 + $0x78] sm:$0xff]   ;;  %v1380_v36 = vld [vmem:[%s1719_s1 + $0x140] sm:$0xff]  }
   0xe   : > { %1240 = vmatprep.subr.bf16.mxu1 %v1351_v9  ;;  %v1367_v25 = vld [vmem:[%s1719_s1 + $0xf0] sm:$0xff]   ;;  %s1331_s21 = smul.u32 36, %s1724_s23  ;;  %v1371_v29 = vld [vmem:[%s1719_s1 + $0xf8] sm:$0xff]   ;;  %v1381_v37 = vld [vmem:[%s1719_s1 + $0x100] sm:$0xff]   ;;  %s1128_s28 = sshll.u32 %s1724_s23, 3 }
   0xf   : > { %v1368_v26 = vld [vmem:[%s1719_s1 + $0x30] sm:$0xff]   ;;  %v1372_v30 = vld [vmem:[%s1719_s1 + $0x38] sm:$0xff]   ;;  %v1382_v38 = vld [vmem:[%s1719_s1 + $0x1c0] sm:$0xff]   ;;  %s202_s5 = scalar_lea.vmem %s1722_s4, %s1128_s28 }
  0x10   : > { %1219 = vmatpush3.bf16.msra.mxu0 %v1352_v10  ;;  %v1369_v27 = vld [vmem:[%s1719_s1 + $0xb0] sm:$0xff]   ;;  %s1568_s6 = scalar_lea.vmem %s1718_s0, %s1331_s21  ;;  %v1373_v31 = vld [vmem:[%s1719_s1 + $0xb8] sm:$0xff]   ;;  %v1383_v39 = vld [vmem:[%s1719_s1 + $0x180] sm:$0xff]  }
  0x11   : > { %1241 = vmatpush3.bf16.msra.mxu1 %v1353_v11  ;;  %1220 = vmatprep.subr.bf16.mxu0 %v1354_v12  ;;  %v1374_v32 = vld [vmem:[%s1568_s6] ss:$36 sps:$4 sm:$0xff]   ;;  %v1377_v34 = vld [vmem:[%s1568_s6 + $0x8] ss:$36 sps:$4 sm:$0xff]   ;;  %v1388_v44 = vld [vmem:[%s1719_s1 + $0x150] sm:$0xff]  }
  0x12   : > { %1242 = vmatprep.subr.bf16.mxu1 %v1355_v13  ;;  %v1376_v33 = vld [vmem:[%s1568_s6 + $0x4] ss:$36 sps:$4 sm:$0xff]   ;;  %v1379_v35 = vld [vmem:[%s1568_s6 + $0xc] ss:$36 sps:$4 sm:$0xff]   ;;  %v1392_v48 = vld [vmem:[%s1719_s1 + $0x158] sm:$0xff]  }
  0x13   : > { %869 = vmatprep.mubr.bf16.mxu0 %v1376_v33  ;;  %910 = vmatprep.mubr.bf16.mxu1 %v1379_v35  ;;  %v1384_v40 = vld [vmem:[%s1719_s1 + $0x148] sm:$0xff]   ;;  %v1389_v45 = vld [vmem:[%s1719_s1 + $0x110] sm:$0xff]   ;;  %v1393_v49 = vld [vmem:[%s1719_s1 + $0x118] sm:$0xff]  }
  0x14   : > { %1221 = vmatpush3.bf16.msra.mxu0 %v1356_v14  ;;  %v1385_v41 = vld [vmem:[%s1719_s1 + $0x108] sm:$0xff]   ;;  %v1390_v46 = vld [vmem:[%s1719_s1 + $0x1d0] sm:$0xff]   ;;  %v1394_v50 = vld [vmem:[%s1719_s1 + $0x1d8] sm:$0xff]  }
  0x15   : > { %1243 = vmatpush3.bf16.msra.mxu1 %v1357_v15  ;;  %1222 = vmatprep.subr.bf16.mxu0 %v1358_v16  ;;  %v1386_v42 = vld [vmem:[%s1719_s1 + $0x1c8] sm:$0xff]   ;;  %v1391_v47 = vld [vmem:[%s1719_s1 + $0x190] sm:$0xff]   ;;  %v1395_v51 = vld [vmem:[%s1719_s1 + $0x198] sm:$0xff]  }
  0x16   : > { %1244 = vmatprep.subr.bf16.mxu1 %v1359_v17  ;;  %v1387_v43 = vld [vmem:[%s1719_s1 + $0x188] sm:$0xff]   ;;  %v1396_v52 = vld [vmem:[%s1719_s1 + $0x160] sm:$0xff]   ;;  %v1404_v60 = vld [vmem:[%s1719_s1 + $0x170] sm:$0xff]  }
  0x17   : > { %v1397_v53 = vld [vmem:[%s1719_s1 + $0x120] sm:$0xff]   ;;  %v1400_v56 = vld [vmem:[%s1719_s1 + $0x168] sm:$0xff]   ;;  %v1405_v61 = vld [vmem:[%s1719_s1 + $0x130] sm:$0xff]  }
  0x18   : > { %1223 = vmatpush3.bf16.msra.mxu0 %v1360_v18  ;;  %v1398_v54 = vld [vmem:[%s1719_s1 + $0x1e0] sm:$0xff]   ;;  %v1401_v57 = vld [vmem:[%s1719_s1 + $0x128] sm:$0xff]   ;;  %v1406_v62 = vld [vmem:[%s1719_s1 + $0x1f0] sm:$0xff]  }
  0x19   : > { %1245 = vmatpush3.bf16.msra.mxu1 %v1361_v19  ;;  %1224 = vmatprep.subr.bf16.mxu0 %v1362_v20  ;;  %v1399_v55 = vld [vmem:[%s1719_s1 + $0x1a0] sm:$0xff]   ;;  %v1402_v58 = vld [vmem:[%s1719_s1 + $0x1e8] sm:$0xff]   ;;  %v1407_v63 = vld [vmem:[%s1719_s1 + $0x1b0] sm:$0xff]  }
  0x1a   : > { %1246 = vmatprep.subr.bf16.mxu1 %v1363_v21  ;;  %v1403_v59 = vld [vmem:[%s1719_s1 + $0x1a8] sm:$0xff]   ;;  %v1408_v0 = vld [vmem:[%s1719_s1 + $0x178] sm:$0xff]   ;;  %v1411_v3 = vld [vmem:[%s1568_s6 + $0x10] ss:$36 sps:$4 sm:$0xff]  }
  0x1b   : > { %v1409_v1 = vld [vmem:[%s1719_s1 + $0x138] sm:$0xff]   ;;  %v1418_v9 = vld [vmem:[%s1719_s1 + $0x200] sm:$0xff]   ;;  %v1419_v10 = vld [vmem:[%s1719_s1 + $0x208] sm:$0xff]  }
  0x1c   : > { %1225 = vmatpush3.bf16.msra.mxu0 %v1364_v22  ;;  %v1410_v2 = vld [vmem:[%s1719_s1 + $0x1f8] sm:$0xff]   ;;  %v1420_v11 = vld [vmem:[%s1719_s1 + $0x210] sm:$0xff]   ;;  %v1422_v13 = vld [vmem:[%s1719_s1 + $0x220] sm:$0xff]  }
  0x1d   : > { %1247 = vmatpush3.bf16.msra.mxu1 %v1365_v23  ;;  %1226 = vmatprep.subr.bf16.mxu0 %v1366_v24  ;;  %v1413_v4 = vld [vmem:[%s1568_s6 + $0x14] ss:$36 sps:$4 sm:$0xff]   ;;  %v1417_v8 = vld [vmem:[%s1568_s6 + $0x1c] ss:$36 sps:$4 sm:$0xff]   ;;  %v1423_v14 = vld [vmem:[%s1719_s1 + $0x228] sm:$0xff]  }
  0x1e   : > { %1248 = vmatprep.subr.bf16.mxu1 %v1367_v25  ;;  %v1414_v5 = vld [vmem:[%s1719_s1 + $0x1b8] sm:$0xff]   ;;  %v1424_v15 = vld [vmem:[%s1719_s1 + $0x230] sm:$0xff]   ;;  %v1426_v17 = vld [vmem:[%s1568_s6 + $0x20] ss:$36 sps:$4 sm:$0xff]  }
  0x1f   : > { %v1415_v7 = vld [vmem:[%s1568_s6 + $0x18] ss:$36 sps:$4 sm:$0xff]  }
  0x20   : > { %1227 = vmatpush3.bf16.msra.mxu0 %v1368_v26  ;;  %v1421_v12 = vld [vmem:[%s1719_s1 + $0x218] sm:$0xff]  }
  0x21   : > { %1249 = vmatpush3.bf16.msra.mxu1 %v1369_v27  ;;  %1228 = vmatprep.subr.bf16.mxu0 %v1370_v28  ;;  %v1425_v16 = vld [vmem:[%s1719_s1 + $0x238] sm:$0xff]  }
  0x22   : > { %1250 = vmatprep.subr.bf16.mxu1 %v1371_v29 }
  0x24   : > { %1229 = vmatpush3.bf16.msra.mxu0 %v1372_v30 }
  0x25   : > { %1251 = vmatpush3.bf16.msra.mxu1 %v1373_v31  ;;  %1258 = vmatprep.subr.bf16.mxu0 %v1380_v36 }
  0x26   : > { %1280 = vmatprep.subr.bf16.mxu1 %v1382_v38 }
  0x27   : > { %870 = vmatmul.mubr.bf16.vlgmr.msra.gmra.mrb[0].mxu0 %v1374_v32 }
  0x28   : > { %911 = vmatmul.mubr.bf16.vlgmr.msra.gmra.mrb[0].mxu1 %v1377_v34  ;;  %1259 = vmatpush3.bf16.msra.mxu0 %v1381_v37 }
  0x29   : > { %1281 = vmatpush3.bf16.msra.mxu1 %v1383_v39  ;;  %1260 = vmatprep.subr.bf16.mxu0 %v1384_v40 }
  0x2a   : > { %1282 = vmatprep.subr.bf16.mxu1 %v1386_v42  ;;  %951 = vmatprep.mubr.bf16.mxu0 %v1413_v4 }
  0x2b   : > { %992 = vmatprep.mubr.bf16.mxu1 %v1417_v8 }
  0x2c   : > { %1261 = vmatpush3.bf16.msra.mxu0 %v1385_v41 }
  0x2d   : > { %1283 = vmatpush3.bf16.msra.mxu1 %v1387_v43  ;;  %1262 = vmatprep.subr.bf16.mxu0 %v1388_v44 }
  0x2e   : > { %1284 = vmatprep.subr.bf16.mxu1 %v1390_v46 }
  0x30   : > { %1263 = vmatpush3.bf16.msra.mxu0 %v1389_v45 }
  0x31   : > { %1285 = vmatpush3.bf16.msra.mxu1 %v1391_v47  ;;  %1264 = vmatprep.subr.bf16.mxu0 %v1392_v48 }
  0x32   : > { %1286 = vmatprep.subr.bf16.mxu1 %v1394_v50 }
  0x34   : > { %1265 = vmatpush3.bf16.msra.mxu0 %v1393_v49  ;;  %v1210_v49 = vld [vmem:[%s1720_s2] ss:$0 sm:$0xff] }
  0x35   : > { %1287 = vmatpush3.bf16.msra.mxu1 %v1395_v51  ;;  %1266 = vmatprep.subr.bf16.mxu0 %v1396_v52  ;;  %v1211_v52 = vld [vmem:[%s1721_s3] ss:$0 sm:$0xff] }
  0x36   : > { %1288 = vmatprep.subr.bf16.mxu1 %v1398_v54 }
  0x38   : > { %1267 = vmatpush3.bf16.msra.mxu0 %v1397_v53 }
  0x39   : > { %1289 = vmatpush3.bf16.msra.mxu1 %v1399_v55  ;;  %1268 = vmatprep.subr.bf16.mxu0 %v1400_v56 }
  0x3a   : > { %1290 = vmatprep.subr.bf16.mxu1 %v1402_v58 }
  0x3c   : > { %1269 = vmatpush3.bf16.msra.mxu0 %v1401_v57 }
  0x3d   : > { %1291 = vmatpush3.bf16.msra.mxu1 %v1403_v59  ;;  %1270 = vmatprep.subr.bf16.mxu0 %v1404_v60 }
  0x3e   : > { %1292 = vmatprep.subr.bf16.mxu1 %v1406_v62 }
  0x40   : > { %1271 = vmatpush3.bf16.msra.mxu0 %v1405_v61 }
  0x41   : > { %1293 = vmatpush3.bf16.msra.mxu1 %v1407_v63  ;;  %1272 = vmatprep.subr.bf16.mxu0 %v1408_v0 }
  0x42   : > { %1294 = vmatprep.subr.bf16.mxu1 %v1410_v2 }
  0x44   : > { %1273 = vmatpush3.bf16.msra.mxu0 %v1409_v1 }
  0x45   : > { %1311 = vmatprep.subr.bf16.mxu0 %v1435_v6  ;;  %1295 = vmatpush3.bf16.msra.mxu1 %v1414_v5 }
  0x47   : > { %952 = vmatmul.mubr.bf16.vlgmr.msra.gmra.mrb[4].mxu0 %v1411_v3 }
  0x48   : > { %1327 = vmatprep.mubr.msk.bf16.mxu0 %vm1436_vm0, %v1435_v6  ;;  %1312 = vmatpush3.bf16.msra.mxu0 %v1418_v9 }
  0x49   : > { %993 = vmatmul.mubr.bf16.vlgmr.msra.gmra.mrb[4].mxu1 %v1415_v7  ;;  %1313 = vmatprep.subr.bf16.mxu0 %v1435_v6 }
  0x4c   : > { %1314 = vmatpush3.bf16.msra.mxu0 %v1419_v10 }
  0x4d   : > { %1315 = vmatprep.subr.bf16.mxu0 %v1435_v6 }
  0x50   : > { %1316 = vmatpush3.bf16.msra.mxu0 %v1420_v11 }
  0x51   : > { %1317 = vmatprep.subr.bf16.mxu0 %v1435_v6 }
  0x54   : > { %1318 = vmatpush3.bf16.msra.mxu0 %v1421_v12 }
  0x55   : > { %1319 = vmatprep.subr.bf16.mxu0 %v1435_v6 }
  0x58   : > { %1320 = vmatpush3.bf16.msra.mxu0 %v1422_v13 }
  0x59   : > { %1321 = vmatprep.subr.bf16.mxu0 %v1435_v6 }
  0x5c   : > { %1322 = vmatpush3.bf16.msra.mxu0 %v1423_v14 }
  0x5d   : > { %1323 = vmatprep.subr.bf16.mxu0 %v1435_v6 }
  0x60   : > { %1324 = vmatpush3.bf16.msra.mxu0 %v1424_v15 }
  0x61   : > { %1325 = vmatprep.subr.bf16.mxu0 %v1435_v6 }
  0x64   : > { %1326 = vmatpush3.bf16.msra.mxu0 %v1425_v16 }
  0x67   : > { %1328 = vmatmul.mubr.bf16.vlgmr.msra.gmra.mrb[8].mxu0 %v1426_v17 }
  0xfa   : > { %v1230_v18 = vpop.f32.mrb[0].mxu0 }
  0xfb   : > { %v1252_v19 = vpop.f32.mrb[0].mxu1  ;;  %v1231_v20 = vpop.f32.mrb[1].mxu0 }
  0xfc   : > { %v1232_v21 = vadd.f32 %v1231_v20, %v1230_v18  ;;  %v1253_v22 = vpop.f32.mrb[1].mxu1  ;;  %v1233_v23 = vpop.f32.mrb[2].mxu0 }
  0xfd   : > { %v1254_v24 = vadd.f32 %v1253_v22, %v1252_v19  ;;  %v1255_v25 = vpop.f32.mrb[2].mxu1  ;;  %v1234_v26 = vpop.f32.mrb[3].mxu0 }
  0xfe   : > { %v1235_v27 = vadd.f32 %v1234_v26, %v1233_v23  ;;  %v1256_v28 = vpop.f32.mrb[3].mxu1 }
  0xff   : > { %v913_v29 = vadd.f32 %v1254_v24, %v1232_v21  ;;  %v1257_v30 = vadd.f32 %v1256_v28, %v1255_v25 }
 0x101   : > { %v916_v31 = vadd.f32 %v1257_v30, %v1235_v27 }
 0x11a   : > { %v1274_v32 = vpop.f32.mrb[4].mxu0 }
 0x11b   : > { %v1275_v33 = vpop.f32.mrb[5].mxu0 }
 0x11c   : > { %v1276_v34 = vadd.f32 %v1275_v33, %v1274_v32  ;;  %v1277_v35 = vpop.f32.mrb[6].mxu0  ;;  %v1296_v36 = vpop.f32.mrb[4].mxu1 }
 0x11d   : > { %v1278_v37 = vpop.f32.mrb[7].mxu0  ;;  %v1297_v40 = vpop.f32.mrb[5].mxu1 }
 0x11e   : > { %v954_v38 = vadd.f32 %v1276_v34, %v913_v29  ;;  %v1279_v39 = vadd.f32 %v1278_v37, %v1277_v35  ;;  %v1298_v41 = vadd.f32 %v1297_v40, %v1296_v36  ;;  %v1299_v42 = vpop.f32.mrb[6].mxu1 }
 0x11f   : > { %v1300_v44 = vpop.f32.mrb[7].mxu1 }
 0x120   : > { %v957_v43 = vadd.f32 %v1279_v39, %v916_v31  ;;  %v1301_v45 = vadd.f32 %v1300_v44, %v1299_v42  ;;  %v995_v46 = vadd.f32 %v1298_v41, %v954_v38 }
 0x122   : > { %v998_v47 = vadd.f32 %v1301_v45, %v957_v43 }
 0x13a   : > { %v1035_v48 = vpop.f32.mrb[8].mxu0 }
 0x13b   : > { %v1036_v50 = vadd.f32 %v1035_v48, %v995_v46  ;;  %v1329_v51 = vpop.f32.mrb[9].mxu0 }
 0x13c   : > { %v1038_v53 = vpop.f32.mrb[10].mxu0 }
 0x13d   : > { %v1049_v54 = vmul.f32 %v1210_v49, %v1036_v50  ;;  %v1039_v55 = vadd.f32 %v1038_v53, %v998_v47  ;;  %v1330_v56 = vpop.f32.mrb[11].mxu0 }
 0x13f   : > { %v1058_v57 = vadd.f32 %v1211_v52, %v1049_v54  ;;  %v1050_v58 = vmul.f32 %v1210_v49, %v1039_v55 }
 0x141   : > { %v1060_v59 = vmax.f32 %v1058_v57, 0.0  ;;  %v1059_v60 = vadd.f32 %v1211_v52, %v1050_v58 }
 0x143   : > { %1062 = vst [vmem:[%s202_s5] sm:$0xff] %v1060_v59  ;;  %v1061_v61 = vmax.f32 %v1059_v60, 0.0 }
 0x145   : > { %1063 = vst [vmem:[%s202_s5 + $0x8] sm:$0xff] %v1061_v61 }
 0x146 PF: > { %s14_s15 = sadd.s32 1, %s1433_s15  }
 0x147   : > { %p11_p4 = scmp.ge.s32.totalorder %s14_s15, 4  }
 0x149   :  { %13 = sbr.rel (!%p11_p4) target bundleno = 1 (0x1), region = 66 }

// kernel: net_forward.17
= control target key start
LH: loop header
LB: loop body
LE: loop exit
PB: predicated region body
PF: predicated region fallthrough
CT: control target
= control target key end

     0   :  { %s1534_s18 = smov 0   ;;  %s1793_s0 = inlined_call_operand.vmem [shape: bf16[32,1152], index: 0, kind: input, shape index: {}]   ;;  %s1794_s1 = inlined_call_operand.vmem [shape: bf16[1152,128], index: 1, kind: input, shape index: {}]   ;;  %s1795_s2 = inlined_call_operand.vmem [shape: f32[1,128], index: 2, kind: input, shape index: {}]   ;;  %s1796_s3 = inlined_call_operand.vmem [shape: f32[1,128], index: 3, kind: input, shape index: {}]   ;;  %s1797_s4 = inlined_call_operand.vmem [shape: f32[32,128], index: 4, kind: input, shape index: {}]   ;;  %s1798_s5 = inlined_call_operand.vmem [shape: f32[32,128], index: 5, kind: output, shape index: {}]  }
   0x1 LB: > { %s1185_s19 = sadd.s32 4294967295, %s1500_s18   ;;  %p1189_p0 = scmp.ge.s32.totalorder %s1500_s18, 1  ;;  %s1500_s18 = sphi %s1534_s18, %s15_s18  }
   0x2   : > { %p200_p1 = scmp.lt.s32.totalorder %s1500_s18, 3 }
   0x4   : > { %p201_p2 = pnand %p1189_p0, %p200_p1 }
   0x5   : > { %v1409_v0 = vld [vmem:[%s1794_s1 + $0x40] sm:$0xff] (!%p201_p2)   ;;  %v1413_v4 = vld [vmem:[%s1794_s1 + $0x48] sm:$0xff] (!%p201_p2)   ;;  %v1417_v8 = vld [vmem:[%s1794_s1 + $0x50] sm:$0xff] (!%p201_p2)   ;;  %s1190_s27 = sshll.u32 (!%p201_p2), %s1185_s19, 1  ;;  %vm1503_vm0 = vmmov (!%p201_p2), 0  }
   0x6   : > { %204 = sbr.rel (%p201_p2) target bundleno = 328 (0x148), region = 40  ;;  %v1410_v1 = vld [vmem:[%s1794_s1 + $0xc0] sm:$0xff] (!%p201_p2)   ;;  %1281 = vmatprep.subr.bf16.mxu0 (!%p201_p2), %v1409_v0  ;;  %v1414_v5 = vld [vmem:[%s1794_s1 + $0xc8] sm:$0xff] (!%p201_p2)   ;;  %v1418_v9 = vld [vmem:[%s1794_s1 + $0xd0] sm:$0xff] (!%p201_p2)   ;;  %p235_p3 = scmp.lt.s32.totalorder (!%p201_p2), %s1190_s27, 3 }
   0x7   : > { %v1411_v2 = vld [vmem:[%s1794_s1] sm:$0xff] (!%p201_p2)   ;;  %1303 = vmatprep.subr.bf16.mxu1 (!%p201_p2), %v1410_v1  ;;  %v1415_v6 = vld [vmem:[%s1794_s1 + $0x8] sm:$0xff] (!%p201_p2)   ;;  %v1419_v10 = vld [vmem:[%s1794_s1 + $0x10] sm:$0xff] (!%p201_p2)  }
   0x8   : > { %v1412_v3 = vld [vmem:[%s1794_s1 + $0x80] sm:$0xff] (!%p201_p2)   ;;  %1282 = vmatpush3.bf16.msra.mxu0 (!%p201_p2), %v1411_v2  ;;  %v1416_v7 = vld [vmem:[%s1794_s1 + $0x88] sm:$0xff] (!%p201_p2)   ;;  %v1420_v11 = vld [vmem:[%s1794_s1 + $0x90] sm:$0xff] (!%p201_p2)  }
   0x9   : > { %1304 = vmatpush3.bf16.msra.mxu1 (!%p201_p2), %v1412_v3  ;;  %1283 = vmatprep.subr.bf16.mxu0 (!%p201_p2), %v1413_v4  ;;  %v1421_v12 = vld [vmem:[%s1794_s1 + $0x58] sm:$0xff] (!%p201_p2)   ;;  %v1425_v16 = vld [vmem:[%s1794_s1 + $0x60] sm:$0xff] (!%p201_p2)   ;;  %v1429_v20 = vld [vmem:[%s1794_s1 + $0x68] sm:$0xff] (!%p201_p2)  }
   0xa   : > { %1305 = vmatprep.subr.bf16.mxu1 (!%p201_p2), %v1414_v5  ;;  %v1422_v13 = vld [vmem:[%s1794_s1 + $0xd8] sm:$0xff] (!%p201_p2)   ;;  %v1426_v17 = vld [vmem:[%s1794_s1 + $0xe0] sm:$0xff] (!%p201_p2)   ;;  %v1430_v21 = vld [vmem:[%s1794_s1 + $0xe8] sm:$0xff] (!%p201_p2)  }
   0xb   : > { %v1423_v14 = vld [vmem:[%s1794_s1 + $0x18] sm:$0xff] (!%p201_p2)   ;;  %v1427_v18 = vld [vmem:[%s1794_s1 + $0x20] sm:$0xff] (!%p201_p2)   ;;  %v1431_v22 = vld [vmem:[%s1794_s1 + $0x28] sm:$0xff] (!%p201_p2)  }
   0xc   : > { %1284 = vmatpush3.bf16.msra.mxu0 (!%p201_p2), %v1415_v6  ;;  %v1424_v15 = vld [vmem:[%s1794_s1 + $0x98] sm:$0xff] (!%p201_p2)   ;;  %v1428_v19 = vld [vmem:[%s1794_s1 + $0xa0] sm:$0xff] (!%p201_p2)   ;;  %v1432_v23 = vld [vmem:[%s1794_s1 + $0xa8] sm:$0xff] (!%p201_p2)   ;;  %v1502_v6 = vmov (!%p201_p2), 0.0  }
   0xd   : > { %1306 = vmatpush3.bf16.msra.mxu1 %v1416_v7  ;;  %1285 = vmatprep.subr.bf16.mxu0 %v1417_v8  ;;  %s1800_s27 = smov (!%p235_p3, %s1190_s27), 3  ;;  %v1433_v24 = vld [vmem:[%s1794_s1 + $0x70] sm:$0xff]   ;;  %v1437_v28 = vld [vmem:[%s1794_s1 + $0x78] sm:$0xff]   ;;  %v1447_v36 = vld [vmem:[%s1794_s1 + $0x140] sm:$0xff]  }
   0xe   : > { %1307 = vmatprep.subr.bf16.mxu1 %v1418_v9  ;;  %v1434_v25 = vld [vmem:[%s1794_s1 + $0xf0] sm:$0xff]   ;;  %s1398_s26 = smul.u32 36, %s1800_s27  ;;  %v1438_v29 = vld [vmem:[%s1794_s1 + $0xf8] sm:$0xff]   ;;  %v1448_v37 = vld [vmem:[%s1794_s1 + $0x100] sm:$0xff]  }
   0xf   : > { %v1435_v26 = vld [vmem:[%s1794_s1 + $0x30] sm:$0xff]   ;;  %v1439_v30 = vld [vmem:[%s1794_s1 + $0x38] sm:$0xff]   ;;  %v1449_v38 = vld [vmem:[%s1794_s1 + $0x1c0] sm:$0xff]  }
  0x10   : > { %1286 = vmatpush3.bf16.msra.mxu0 %v1419_v10  ;;  %v1436_v27 = vld [vmem:[%s1794_s1 + $0xb0] sm:$0xff]   ;;  %s1640_s12 = scalar_lea.vmem %s1793_s0, %s1398_s26  ;;  %v1440_v31 = vld [vmem:[%s1794_s1 + $0xb8] sm:$0xff]   ;;  %v1450_v39 = vld [vmem:[%s1794_s1 + $0x180] sm:$0xff]  }
  0x11   : > { %1308 = vmatpush3.bf16.msra.mxu1 %v1420_v11  ;;  %1287 = vmatprep.subr.bf16.mxu0 %v1421_v12  ;;  %v1441_v32 = vld [vmem:[%s1640_s12] ss:$36 sps:$4 sm:$0xff]   ;;  %v1444_v34 = vld [vmem:[%s1640_s12 + $0x8] ss:$36 sps:$4 sm:$0xff]   ;;  %v1455_v44 = vld [vmem:[%s1794_s1 + $0x150] sm:$0xff]  }
  0x12   : > { %1309 = vmatprep.subr.bf16.mxu1 %v1422_v13  ;;  %v1443_v33 = vld [vmem:[%s1640_s12 + $0x4] ss:$36 sps:$4 sm:$0xff]   ;;  %v1446_v35 = vld [vmem:[%s1640_s12 + $0xc] ss:$36 sps:$4 sm:$0xff]   ;;  %v1459_v48 = vld [vmem:[%s1794_s1 + $0x158] sm:$0xff]  }
  0x13   : > { %918 = vmatprep.mubr.bf16.mxu0 %v1443_v33  ;;  %959 = vmatprep.mubr.bf16.mxu1 %v1446_v35  ;;  %v1451_v40 = vld [vmem:[%s1794_s1 + $0x148] sm:$0xff]   ;;  %v1456_v45 = vld [vmem:[%s1794_s1 + $0x110] sm:$0xff]   ;;  %v1460_v49 = vld [vmem:[%s1794_s1 + $0x118] sm:$0xff]  }
  0x14   : > { %1288 = vmatpush3.bf16.msra.mxu0 %v1423_v14  ;;  %v1452_v41 = vld [vmem:[%s1794_s1 + $0x108] sm:$0xff]   ;;  %v1457_v46 = vld [vmem:[%s1794_s1 + $0x1d0] sm:$0xff]   ;;  %v1461_v50 = vld [vmem:[%s1794_s1 + $0x1d8] sm:$0xff]  }
  0x15   : > { %1310 = vmatpush3.bf16.msra.mxu1 %v1424_v15  ;;  %1289 = vmatprep.subr.bf16.mxu0 %v1425_v16  ;;  %v1453_v42 = vld [vmem:[%s1794_s1 + $0x1c8] sm:$0xff]   ;;  %v1458_v47 = vld [vmem:[%s1794_s1 + $0x190] sm:$0xff]   ;;  %v1462_v51 = vld [vmem:[%s1794_s1 + $0x198] sm:$0xff]  }
  0x16   : > { %1311 = vmatprep.subr.bf16.mxu1 %v1426_v17  ;;  %v1454_v43 = vld [vmem:[%s1794_s1 + $0x188] sm:$0xff]   ;;  %v1463_v52 = vld [vmem:[%s1794_s1 + $0x160] sm:$0xff]   ;;  %v1471_v60 = vld [vmem:[%s1794_s1 + $0x170] sm:$0xff]  }
  0x17   : > { %v1464_v53 = vld [vmem:[%s1794_s1 + $0x120] sm:$0xff]   ;;  %v1467_v56 = vld [vmem:[%s1794_s1 + $0x168] sm:$0xff]   ;;  %v1472_v61 = vld [vmem:[%s1794_s1 + $0x130] sm:$0xff]  }
  0x18   : > { %1290 = vmatpush3.bf16.msra.mxu0 %v1427_v18  ;;  %v1465_v54 = vld [vmem:[%s1794_s1 + $0x1e0] sm:$0xff]   ;;  %v1468_v57 = vld [vmem:[%s1794_s1 + $0x128] sm:$0xff]   ;;  %v1473_v62 = vld [vmem:[%s1794_s1 + $0x1f0] sm:$0xff]  }
  0x19   : > { %1312 = vmatpush3.bf16.msra.mxu1 %v1428_v19  ;;  %1291 = vmatprep.subr.bf16.mxu0 %v1429_v20  ;;  %v1466_v55 = vld [vmem:[%s1794_s1 + $0x1a0] sm:$0xff]   ;;  %v1469_v58 = vld [vmem:[%s1794_s1 + $0x1e8] sm:$0xff]   ;;  %v1474_v63 = vld [vmem:[%s1794_s1 + $0x1b0] sm:$0xff]  }
  0x1a   : > { %1313 = vmatprep.subr.bf16.mxu1 %v1430_v21  ;;  %v1470_v59 = vld [vmem:[%s1794_s1 + $0x1a8] sm:$0xff]   ;;  %v1475_v0 = vld [vmem:[%s1794_s1 + $0x178] sm:$0xff]   ;;  %v1478_v3 = vld [vmem:[%s1640_s12 + $0x10] ss:$36 sps:$4 sm:$0xff]  }
  0x1b   : > { %v1476_v1 = vld [vmem:[%s1794_s1 + $0x138] sm:$0xff]   ;;  %v1485_v9 = vld [vmem:[%s1794_s1 + $0x200] sm:$0xff]   ;;  %v1486_v10 = vld [vmem:[%s1794_s1 + $0x208] sm:$0xff]  }
  0x1c   : > { %1292 = vmatpush3.bf16.msra.mxu0 %v1431_v22  ;;  %v1477_v2 = vld [vmem:[%s1794_s1 + $0x1f8] sm:$0xff]   ;;  %v1487_v11 = vld [vmem:[%s1794_s1 + $0x210] sm:$0xff]   ;;  %v1489_v13 = vld [vmem:[%s1794_s1 + $0x220] sm:$0xff]  }
  0x1d   : > { %1314 = vmatpush3.bf16.msra.mxu1 %v1432_v23  ;;  %1293 = vmatprep.subr.bf16.mxu0 %v1433_v24  ;;  %v1480_v4 = vld [vmem:[%s1640_s12 + $0x14] ss:$36 sps:$4 sm:$0xff]   ;;  %v1484_v8 = vld [vmem:[%s1640_s12 + $0x1c] ss:$36 sps:$4 sm:$0xff]   ;;  %v1490_v14 = vld [vmem:[%s1794_s1 + $0x228] sm:$0xff]  }
  0x1e   : > { %1315 = vmatprep.subr.bf16.mxu1 %v1434_v25  ;;  %v1481_v5 = vld [vmem:[%s1794_s1 + $0x1b8] sm:$0xff]   ;;  %v1491_v15 = vld [vmem:[%s1794_s1 + $0x230] sm:$0xff]   ;;  %v1493_v17 = vld [vmem:[%s1640_s12 + $0x20] ss:$36 sps:$4 sm:$0xff]  }
  0x1f   : > { %v1482_v7 = vld [vmem:[%s1640_s12 + $0x18] ss:$36 sps:$4 sm:$0xff]   ;;  %s1193_s12 = sshll.u32 %s1800_s27, 3 }
  0x20   : > { %1294 = vmatpush3.bf16.msra.mxu0 %v1435_v26  ;;  %v1488_v12 = vld [vmem:[%s1794_s1 + $0x218] sm:$0xff]   ;;  %s245_s13 = scalar_lea.vmem %s1797_s4, %s1193_s12  ;;  %s251_s17 = scalar_lea.vmem %s1798_s5, %s1193_s12 }
  0x21   : > { %1316 = vmatpush3.bf16.msra.mxu1 %v1436_v27  ;;  %1295 = vmatprep.subr.bf16.mxu0 %v1437_v28  ;;  %v1492_v16 = vld [vmem:[%s1794_s1 + $0x238] sm:$0xff]  }
  0x22   : > { %1317 = vmatprep.subr.bf16.mxu1 %v1438_v29 }
  0x24   : > { %1296 = vmatpush3.bf16.msra.mxu0 %v1439_v30 }
  0x25   : > { %1318 = vmatpush3.bf16.msra.mxu1 %v1440_v31  ;;  %1325 = vmatprep.subr.bf16.mxu0 %v1447_v36 }
  0x26   : > { %1347 = vmatprep.subr.bf16.mxu1 %v1449_v38 }
  0x27   : > { %919 = vmatmul.mubr.bf16.vlgmr.msra.gmra.mrb[0].mxu0 %v1441_v32 }
  0x28   : > { %960 = vmatmul.mubr.bf16.vlgmr.msra.gmra.mrb[0].mxu1 %v1444_v34  ;;  %1326 = vmatpush3.bf16.msra.mxu0 %v1448_v37 }
  0x29   : > { %1348 = vmatpush3.bf16.msra.mxu1 %v1450_v39  ;;  %1327 = vmatprep.subr.bf16.mxu0 %v1451_v40 }
  0x2a   : > { %1349 = vmatprep.subr.bf16.mxu1 %v1453_v42  ;;  %1000 = vmatprep.mubr.bf16.mxu0 %v1480_v4 }
  0x2b   : > { %1041 = vmatprep.mubr.bf16.mxu1 %v1484_v8 }
  0x2c   : > { %1328 = vmatpush3.bf16.msra.mxu0 %v1452_v41 }
  0x2d   : > { %1350 = vmatpush3.bf16.msra.mxu1 %v1454_v43  ;;  %1329 = vmatprep.subr.bf16.mxu0 %v1455_v44 }
  0x2e   : > { %1351 = vmatprep.subr.bf16.mxu1 %v1457_v46 }
  0x30   : > { %1330 = vmatpush3.bf16.msra.mxu0 %v1456_v45 }
  0x31   : > { %1352 = vmatpush3.bf16.msra.mxu1 %v1458_v47  ;;  %1331 = vmatprep.subr.bf16.mxu0 %v1459_v48 }
  0x32   : > { %1353 = vmatprep.subr.bf16.mxu1 %v1461_v50 }
  0x34   : > { %1332 = vmatpush3.bf16.msra.mxu0 %v1460_v49  ;;  %v1277_v49 = vld [vmem:[%s1795_s2] ss:$0 sm:$0xff] }
  0x35   : > { %1354 = vmatpush3.bf16.msra.mxu1 %v1462_v51  ;;  %1333 = vmatprep.subr.bf16.mxu0 %v1463_v52  ;;  %v1278_v52 = vld [vmem:[%s1796_s3] ss:$0 sm:$0xff] }
  0x36   : > { %1355 = vmatprep.subr.bf16.mxu1 %v1465_v54 }
  0x38   : > { %1334 = vmatpush3.bf16.msra.mxu0 %v1464_v53 }
  0x39   : > { %1356 = vmatpush3.bf16.msra.mxu1 %v1466_v55  ;;  %1335 = vmatprep.subr.bf16.mxu0 %v1467_v56 }
  0x3a   : > { %1357 = vmatprep.subr.bf16.mxu1 %v1469_v58 }
  0x3c   : > { %1336 = vmatpush3.bf16.msra.mxu0 %v1468_v57  ;;  %v1109_v57 = vld [vmem:[%s245_s13] sm:$0xff] }
  0x3d   : > { %1358 = vmatpush3.bf16.msra.mxu1 %v1470_v59  ;;  %1337 = vmatprep.subr.bf16.mxu0 %v1471_v60  ;;  %v1110_v60 = vld [vmem:[%s245_s13 + $0x8] sm:$0xff] }
  0x3e   : > { %1359 = vmatprep.subr.bf16.mxu1 %v1473_v62 }
  0x40   : > { %1338 = vmatpush3.bf16.msra.mxu0 %v1472_v61 }
  0x41   : > { %1360 = vmatpush3.bf16.msra.mxu1 %v1474_v63  ;;  %1339 = vmatprep.subr.bf16.mxu0 %v1475_v0 }
  0x42   : > { %1361 = vmatprep.subr.bf16.mxu1 %v1477_v2 }
  0x44   : > { %1340 = vmatpush3.bf16.msra.mxu0 %v1476_v1 }
  0x45   : > { %1378 = vmatprep.subr.bf16.mxu0 %v1502_v6  ;;  %1362 = vmatpush3.bf16.msra.mxu1 %v1481_v5 }
  0x47   : > { %1001 = vmatmul.mubr.bf16.vlgmr.msra.gmra.mrb[4].mxu0 %v1478_v3 }
  0x48   : > { %1394 = vmatprep.mubr.msk.bf16.mxu0 %vm1503_vm0, %v1502_v6  ;;  %1379 = vmatpush3.bf16.msra.mxu0 %v1485_v9 }
  0x49   : > { %1042 = vmatmul.mubr.bf16.vlgmr.msra.gmra.mrb[4].mxu1 %v1482_v7  ;;  %1380 = vmatprep.subr.bf16.mxu0 %v1502_v6 }
  0x4c   : > { %1381 = vmatpush3.bf16.msra.mxu0 %v1486_v10 }
  0x4d   : > { %1382 = vmatprep.subr.bf16.mxu0 %v1502_v6 }
  0x50   : > { %1383 = vmatpush3.bf16.msra.mxu0 %v1487_v11 }
  0x51   : > { %1384 = vmatprep.subr.bf16.mxu0 %v1502_v6 }
  0x54   : > { %1385 = vmatpush3.bf16.msra.mxu0 %v1488_v12 }
  0x55   : > { %1386 = vmatprep.subr.bf16.mxu0 %v1502_v6 }
  0x58   : > { %1387 = vmatpush3.bf16.msra.mxu0 %v1489_v13 }
  0x59   : > { %1388 = vmatprep.subr.bf16.mxu0 %v1502_v6 }
  0x5c   : > { %1389 = vmatpush3.bf16.msra.mxu0 %v1490_v14 }
  0x5d   : > { %1390 = vmatprep.subr.bf16.mxu0 %v1502_v6 }
  0x60   : > { %1391 = vmatpush3.bf16.msra.mxu0 %v1491_v15 }
  0x61   : > { %1392 = vmatprep.subr.bf16.mxu0 %v1502_v6 }
  0x64   : > { %1393 = vmatpush3.bf16.msra.mxu0 %v1492_v16 }
  0x67   : > { %1395 = vmatmul.mubr.bf16.vlgmr.msra.gmra.mrb[8].mxu0 %v1493_v17 }
  0xfa   : > { %v1297_v18 = vpop.f32.mrb[0].mxu0 }
  0xfb   : > { %v1319_v19 = vpop.f32.mrb[0].mxu1  ;;  %v1298_v20 = vpop.f32.mrb[1].mxu0 }
  0xfc   : > { %v1299_v21 = vadd.f32 %v1298_v20, %v1297_v18  ;;  %v1320_v22 = vpop.f32.mrb[1].mxu1  ;;  %v1300_v23 = vpop.f32.mrb[2].mxu0 }
  0xfd   : > { %v1321_v24 = vadd.f32 %v1320_v22, %v1319_v19  ;;  %v1322_v25 = vpop.f32.mrb[2].mxu1  ;;  %v1301_v26 = vpop.f32.mrb[3].mxu0 }
  0xfe   : > { %v1302_v27 = vadd.f32 %v1301_v26, %v1300_v23  ;;  %v1323_v28 = vpop.f32.mrb[3].mxu1 }
  0xff   : > { %v962_v29 = vadd.f32 %v1321_v24, %v1299_v21  ;;  %v1324_v30 = vadd.f32 %v1323_v28, %v1322_v25 }
 0x101   : > { %v965_v31 = vadd.f32 %v1324_v30, %v1302_v27 }
 0x11a   : > { %v1341_v32 = vpop.f32.mrb[4].mxu0 }
 0x11b   : > { %v1342_v33 = vpop.f32.mrb[5].mxu0 }
 0x11c   : > { %v1343_v34 = vadd.f32 %v1342_v33, %v1341_v32  ;;  %v1344_v35 = vpop.f32.mrb[6].mxu0  ;;  %v1363_v36 = vpop.f32.mrb[4].mxu1 }
 0x11d   : > { %v1345_v37 = vpop.f32.mrb[7].mxu0  ;;  %v1364_v40 = vpop.f32.mrb[5].mxu1 }
 0x11e   : > { %v1003_v38 = vadd.f32 %v1343_v34, %v962_v29  ;;  %v1346_v39 = vadd.f32 %v1345_v37, %v1344_v35  ;;  %v1365_v41 = vadd.f32 %v1364_v40, %v1363_v36  ;;  %v1366_v42 = vpop.f32.mrb[6].mxu1 }
 0x11f   : > { %v1367_v44 = vpop.f32.mrb[7].mxu1 }
 0x120   : > { %v1006_v43 = vadd.f32 %v1346_v39, %v965_v31  ;;  %v1368_v45 = vadd.f32 %v1367_v44, %v1366_v42  ;;  %v1044_v46 = vadd.f32 %v1365_v41, %v1003_v38 }
 0x122   : > { %v1047_v47 = vadd.f32 %v1368_v45, %v1006_v43 }
 0x13a   : > { %v1084_v48 = vpop.f32.mrb[8].mxu0 }
 0x13b   : > { %v1085_v50 = vadd.f32 %v1084_v48, %v1044_v46  ;;  %v1396_v51 = vpop.f32.mrb[9].mxu0 }
 0x13c   : > { %v1087_v53 = vpop.f32.mrb[10].mxu0 }
 0x13d   : > { %v1098_v54 = vmul.f32 %v1277_v49, %v1085_v50  ;;  %v1088_v55 = vadd.f32 %v1087_v53, %v1047_v47  ;;  %v1397_v56 = vpop.f32.mrb[11].mxu0 }
 0x13f   : > { %v1107_v58 = vadd.f32 %v1278_v52, %v1098_v54  ;;  %v1099_v59 = vmul.f32 %v1277_v49, %v1088_v55 }
 0x141   : > { %v1111_v61 = vadd.f32 %v1109_v57, %v1107_v58  ;;  %v1108_v62 = vadd.f32 %v1278_v52, %v1099_v59 }
 0x143   : > { %v1113_v63 = vmax.f32 %v1111_v61, 0.0  ;;  %v1112_v0 = vadd.f32 %v1110_v60, %v1108_v62 }
 0x145   : > { %1115 = vst [vmem:[%s251_s17] sm:$0xff] %v1113_v63  ;;  %v1114_v1 = vmax.f32 %v1112_v0, 0.0 }
 0x147   : > { %1116 = vst [vmem:[%s251_s17 + $0x8] sm:$0xff] %v1114_v1 }
 0x148 PF: > { %s15_s18 = sadd.s32 1, %s1500_s18  }
 0x149   : > { %p12_p4 = scmp.ge.s32.totalorder %s15_s18, 4  }
 0x14b   :  { %14 = sbr.rel (!%p12_p4) target bundleno = 1 (0x1), region = 73 }

// kernel: net_forward.19
= control target key start
LH: loop header
LB: loop body
LE: loop exit
PB: predicated region body
PF: predicated region fallthrough
CT: control target
= control target key end

     0   :  { %10 = vsyncpa [#allocation3], 0  ;;  %s1988_s0 = inlined_call_operand.vmem [shape: bf16[32,1152], index: 0, kind: input, shape index: {}]   ;;  %s1989_s1 = inlined_call_operand.vmem [shape: bf16[1152,128], index: 1, kind: input, shape index: {}]   ;;  %s1990_s2 = inlined_call_operand.vmem [shape: f32[1,128], index: 2, kind: input, shape index: {}]   ;;  %s1991_s3 = inlined_call_operand.vmem [shape: f32[1,128], index: 3, kind: input, shape index: {}]   ;;  %s1992_s4 = inlined_call_operand.vmem [shape: f32[32,128], index: 4, kind: input, shape index: {}]   ;;  %s1993_s5 = inlined_call_operand.hbm [shape: f32[32,128], index: 5, kind: output, shape index: {}]  }
   0x1   :  { %12 = vsyncpa [#allocation3 + $0x1], 0  ;;  %s1646_s18 = smov 0   ;;  %s1648_s19 = smov 0  }
   0x2   :  { %s1650_s20 = smov 0   ;;  %s1652_s21 = smov 0  }
   0x3 LB: > { %s1667_s22 = sadd.s32 4294967295, %s1609_s21   ;;  %s1203_s23 = sadd.s32 4294967294, %s1609_s21   ;;  %s1609_s21 = sphi %s1652_s21, %s1999_s21   ;;  %s1605_s20 = sphi %s1650_s20, %s1998_s20   ;;  %s1601_s19 = sphi %s1648_s19, %s1997_s19   ;;  %s1597_s18 = sphi %s1646_s18, %s1996_s18  }
   0x4   : > { %s1671_s24 = sadd.s32 1, %s1609_s21   ;;  %s140_s25 = sadd.s32 1, %s1605_s20 }
   0x5   : > { %s137_s26 = ssub.s32 %s1609_s21, %s1671_s24  ;;  %p150_p0 = scmp.ne.s32.totalorder %s1605_s20, %s1601_s19 }
   0x6   : > { %p138_p1 = scmp.eq.s32.totalorder %s137_s26, 0  ;;  %p151_p2 = scmp.eq.s32.totalorder %s1667_s22, 1 }
   0x7   : > { %p156_p3 = scmp.ne.s32.totalorder %s1601_s19, %s1597_s18  ;;  %p157_p4 = scmp.eq.s32.totalorder %s1203_s23, 1 }
   0x8   : > { %s1682_s27 = scalar_select %p138_p1, %s1605_s20, %s140_s25  }
   0x9   : > { %p1684_p5 = por %p151_p2, %p150_p0  ;;  %p1688_p6 = por %p157_p4, %p156_p3 }
   0xa   : > { %p1206_p7 = scmp.ge.s32.totalorder %s1609_s21, 1  ;;  %p203_p8 = scmp.lt.s32.totalorder %s1609_s21, 3 }
   0xc   : > { %p204_p9 = pnand %p1206_p7, %p203_p8 }
   0xd   : > { %v1462_v0 = vld [vmem:[%s1989_s1 + $0x40] sm:$0xff] (!%p204_p9)   ;;  %v1466_v4 = vld [vmem:[%s1989_s1 + $0x48] sm:$0xff] (!%p204_p9)   ;;  %v1470_v8 = vld [vmem:[%s1989_s1 + $0x50] sm:$0xff] (!%p204_p9)   ;;  %s1208_s25 = sshll.u32 (!%p204_p9), %s1667_s22, 1  ;;  %vm1612_vm0 = vmmov (!%p204_p9), 0   ;;  %s1613_s9 = smov (!%p204_p9), [#allocation2]  }
   0xe   : > { %207 = sbr.rel (%p204_p9) target bundleno = 350 (0x15e), region = 40  ;;  %v1463_v1 = vld [vmem:[%s1989_s1 + $0xc0] sm:$0xff] (!%p204_p9)   ;;  %1301 = vmatprep.subr.bf16.mxu0 (!%p204_p9), %v1462_v0  ;;  %v1467_v5 = vld [vmem:[%s1989_s1 + $0xc8] sm:$0xff] (!%p204_p9)   ;;  %v1471_v9 = vld [vmem:[%s1989_s1 + $0xd0] sm:$0xff] (!%p204_p9)   ;;  %p238_p10 = scmp.lt.s32.totalorder (!%p204_p9), %s1208_s25, 3 }
   0xf   : > { %v1464_v2 = vld [vmem:[%s1989_s1] sm:$0xff] (!%p204_p9)   ;;  %1323 = vmatprep.subr.bf16.mxu1 (!%p204_p9), %v1463_v1  ;;  %v1468_v6 = vld [vmem:[%s1989_s1 + $0x8] sm:$0xff] (!%p204_p9)   ;;  %v1472_v10 = vld [vmem:[%s1989_s1 + $0x10] sm:$0xff] (!%p204_p9)   ;;  %s1551_s10 = sshll.u32 (!%p204_p9), %s1613_s9, 4  ;;  %s1552_s10 = int_to_ptr.vmem [resolvable:$false] %s1551_s10 }
  0x10   : > { %v1465_v3 = vld [vmem:[%s1989_s1 + $0x80] sm:$0xff] (!%p204_p9)   ;;  %1302 = vmatpush3.bf16.msra.mxu0 (!%p204_p9), %v1464_v2  ;;  %v1469_v7 = vld [vmem:[%s1989_s1 + $0x88] sm:$0xff] (!%p204_p9)   ;;  %v1473_v11 = vld [vmem:[%s1989_s1 + $0x90] sm:$0xff] (!%p204_p9)  }
  0x11   : > { %1324 = vmatpush3.bf16.msra.mxu1 (!%p204_p9), %v1465_v3  ;;  %1303 = vmatprep.subr.bf16.mxu0 (!%p204_p9), %v1466_v4  ;;  %v1474_v12 = vld [vmem:[%s1989_s1 + $0x58] sm:$0xff] (!%p204_p9)   ;;  %v1478_v16 = vld [vmem:[%s1989_s1 + $0x60] sm:$0xff] (!%p204_p9)   ;;  %v1482_v20 = vld [vmem:[%s1989_s1 + $0x68] sm:$0xff] (!%p204_p9)  }
  0x12   : > { %1325 = vmatprep.subr.bf16.mxu1 (!%p204_p9), %v1467_v5  ;;  %v1475_v13 = vld [vmem:[%s1989_s1 + $0xd8] sm:$0xff] (!%p204_p9)   ;;  %v1479_v17 = vld [vmem:[%s1989_s1 + $0xe0] sm:$0xff] (!%p204_p9)   ;;  %v1483_v21 = vld [vmem:[%s1989_s1 + $0xe8] sm:$0xff] (!%p204_p9)  }
  0x13   : > { %v1476_v14 = vld [vmem:[%s1989_s1 + $0x18] sm:$0xff] (!%p204_p9)   ;;  %v1480_v18 = vld [vmem:[%s1989_s1 + $0x20] sm:$0xff] (!%p204_p9)   ;;  %v1484_v22 = vld [vmem:[%s1989_s1 + $0x28] sm:$0xff] (!%p204_p9)  }
  0x14   : > { %1304 = vmatpush3.bf16.msra.mxu0 (!%p204_p9), %v1468_v6  ;;  %v1477_v15 = vld [vmem:[%s1989_s1 + $0x98] sm:$0xff] (!%p204_p9)   ;;  %v1481_v19 = vld [vmem:[%s1989_s1 + $0xa0] sm:$0xff] (!%p204_p9)   ;;  %v1485_v23 = vld [vmem:[%s1989_s1 + $0xa8] sm:$0xff] (!%p204_p9)   ;;  %v1611_v6 = vmov (!%p204_p9), 0.0  }
  0x15   : > { %1326 = vmatpush3.bf16.msra.mxu1 %v1469_v7  ;;  %1305 = vmatprep.subr.bf16.mxu0 %v1470_v8  ;;  %s2001_s25 = smov (!%p238_p10, %s1208_s25), 3  ;;  %v1486_v24 = vld [vmem:[%s1989_s1 + $0x70] sm:$0xff]   ;;  %v1490_v28 = vld [vmem:[%s1989_s1 + $0x78] sm:$0xff]   ;;  %v1500_v36 = vld [vmem:[%s1989_s1 + $0x140] sm:$0xff]  }
  0x16   : > { %1327 = vmatprep.subr.bf16.mxu1 %v1471_v9  ;;  %v1487_v25 = vld [vmem:[%s1989_s1 + $0xf0] sm:$0xff]   ;;  %s1418_s11 = smul.u32 36, %s2001_s25  ;;  %v1491_v29 = vld [vmem:[%s1989_s1 + $0xf8] sm:$0xff]   ;;  %v1501_v37 = vld [vmem:[%s1989_s1 + $0x100] sm:$0xff]   ;;  %s1211_s8 = sshll.u32 %s2001_s25, 3 }
  0x17   : > { %v1488_v26 = vld [vmem:[%s1989_s1 + $0x30] sm:$0xff]   ;;  %v1492_v30 = vld [vmem:[%s1989_s1 + $0x38] sm:$0xff]   ;;  %v1502_v38 = vld [vmem:[%s1989_s1 + $0x1c0] sm:$0xff]   ;;  %s248_s14 = scalar_lea.vmem %s1992_s4, %s1211_s8  ;;  %s1300_s25 = sshll.u32 %s1667_s22, 8 }
  0x18   : > { %1306 = vmatpush3.bf16.msra.mxu0 %v1472_v10  ;;  %v1489_v27 = vld [vmem:[%s1989_s1 + $0xb0] sm:$0xff]   ;;  %s1791_s7 = scalar_lea.vmem %s1988_s0, %s1418_s11  ;;  %v1493_v31 = vld [vmem:[%s1989_s1 + $0xb8] sm:$0xff]   ;;  %v1503_v39 = vld [vmem:[%s1989_s1 + $0x180] sm:$0xff]   ;;  %s1943_s6 = scalar_lea.hbm %s1993_s5, %s1300_s25 }
  0x19   : > { %1328 = vmatpush3.bf16.msra.mxu1 %v1473_v11  ;;  %1307 = vmatprep.subr.bf16.mxu0 %v1474_v12  ;;  %v1494_v32 = vld [vmem:[%s1791_s7] ss:$36 sps:$4 sm:$0xff]   ;;  %v1497_v34 = vld [vmem:[%s1791_s7 + $0x8] ss:$36 sps:$4 sm:$0xff]   ;;  %v1508_v44 = vld [vmem:[%s1989_s1 + $0x150] sm:$0xff]  }
  0x1a   : > { %1329 = vmatprep.subr.bf16.mxu1 %v1475_v13  ;;  %v1496_v33 = vld [vmem:[%s1791_s7 + $0x4] ss:$36 sps:$4 sm:$0xff]   ;;  %v1499_v35 = vld [vmem:[%s1791_s7 + $0xc] ss:$36 sps:$4 sm:$0xff]   ;;  %v1512_v48 = vld [vmem:[%s1989_s1 + $0x158] sm:$0xff]  }
  0x1b   : > { %916 = vmatprep.mubr.bf16.mxu0 %v1496_v33  ;;  %957 = vmatprep.mubr.bf16.mxu1 %v1499_v35  ;;  %v1504_v40 = vld [vmem:[%s1989_s1 + $0x148] sm:$0xff]   ;;  %v1509_v45 = vld [vmem:[%s1989_s1 + $0x110] sm:$0xff]   ;;  %v1513_v49 = vld [vmem:[%s1989_s1 + $0x118] sm:$0xff]  }
  0x1c   : > { %1308 = vmatpush3.bf16.msra.mxu0 %v1476_v14  ;;  %v1505_v41 = vld [vmem:[%s1989_s1 + $0x108] sm:$0xff]   ;;  %v1510_v46 = vld [vmem:[%s1989_s1 + $0x1d0] sm:$0xff]   ;;  %v1514_v50 = vld [vmem:[%s1989_s1 + $0x1d8] sm:$0xff]  }
  0x1d   : > { %1330 = vmatpush3.bf16.msra.mxu1 %v1477_v15  ;;  %1309 = vmatprep.subr.bf16.mxu0 %v1478_v16  ;;  %v1506_v42 = vld [vmem:[%s1989_s1 + $0x1c8] sm:$0xff]   ;;  %v1511_v47 = vld [vmem:[%s1989_s1 + $0x190] sm:$0xff]   ;;  %v1515_v51 = vld [vmem:[%s1989_s1 + $0x198] sm:$0xff]  }
  0x1e   : > { %1331 = vmatprep.subr.bf16.mxu1 %v1479_v17  ;;  %v1507_v43 = vld [vmem:[%s1989_s1 + $0x188] sm:$0xff]   ;;  %v1516_v52 = vld [vmem:[%s1989_s1 + $0x160] sm:$0xff]   ;;  %v1524_v60 = vld [vmem:[%s1989_s1 + $0x170] sm:$0xff]  }
  0x1f   : > { %v1517_v53 = vld [vmem:[%s1989_s1 + $0x120] sm:$0xff]   ;;  %v1520_v56 = vld [vmem:[%s1989_s1 + $0x168] sm:$0xff]   ;;  %v1525_v61 = vld [vmem:[%s1989_s1 + $0x130] sm:$0xff]  }
  0x20   : > { %1310 = vmatpush3.bf16.msra.mxu0 %v1480_v18  ;;  %v1518_v54 = vld [vmem:[%s1989_s1 + $0x1e0] sm:$0xff]   ;;  %v1521_v57 = vld [vmem:[%s1989_s1 + $0x128] sm:$0xff]   ;;  %v1526_v62 = vld [vmem:[%s1989_s1 + $0x1f0] sm:$0xff]  }
  0x21   : > { %1332 = vmatpush3.bf16.msra.mxu1 %v1481_v19  ;;  %1311 = vmatprep.subr.bf16.mxu0 %v1482_v20  ;;  %v1519_v55 = vld [vmem:[%s1989_s1 + $0x1a0] sm:$0xff]   ;;  %v1522_v58 = vld [vmem:[%s1989_s1 + $0x1e8] sm:$0xff]   ;;  %v1527_v63 = vld [vmem:[%s1989_s1 + $0x1b0] sm:$0xff]  }
  0x22   : > { %1333 = vmatprep.subr.bf16.mxu1 %v1483_v21  ;;  %v1523_v59 = vld [vmem:[%s1989_s1 + $0x1a8] sm:$0xff]   ;;  %v1528_v0 = vld [vmem:[%s1989_s1 + $0x178] sm:$0xff]   ;;  %v1531_v3 = vld [vmem:[%s1791_s7 + $0x10] ss:$36 sps:$4 sm:$0xff]  }
  0x23   : > { %v1529_v1 = vld [vmem:[%s1989_s1 + $0x138] sm:$0xff]   ;;  %v1538_v9 = vld [vmem:[%s1989_s1 + $0x200] sm:$0xff]   ;;  %v1539_v10 = vld [vmem:[%s1989_s1 + $0x208] sm:$0xff]  }
  0x24   : > { %1312 = vmatpush3.bf16.msra.mxu0 %v1484_v22  ;;  %v1530_v2 = vld [vmem:[%s1989_s1 + $0x1f8] sm:$0xff]   ;;  %v1540_v11 = vld [vmem:[%s1989_s1 + $0x210] sm:$0xff]   ;;  %v1542_v13 = vld [vmem:[%s1989_s1 + $0x220] sm:$0xff]  }
  0x25   : > { %1334 = vmatpush3.bf16.msra.mxu1 %v1485_v23  ;;  %1313 = vmatprep.subr.bf16.mxu0 %v1486_v24  ;;  %v1533_v4 = vld [vmem:[%s1791_s7 + $0x14] ss:$36 sps:$4 sm:$0xff]   ;;  %v1537_v8 = vld [vmem:[%s1791_s7 + $0x1c] ss:$36 sps:$4 sm:$0xff]   ;;  %v1543_v14 = vld [vmem:[%s1989_s1 + $0x228] sm:$0xff]  }
  0x26   : > { %1335 = vmatprep.subr.bf16.mxu1 %v1487_v25  ;;  %v1534_v5 = vld [vmem:[%s1989_s1 + $0x1b8] sm:$0xff]   ;;  %v1544_v15 = vld [vmem:[%s1989_s1 + $0x230] sm:$0xff]   ;;  %v1546_v17 = vld [vmem:[%s1791_s7 + $0x20] ss:$36 sps:$4 sm:$0xff]  }
  0x27   : > { %v1535_v7 = vld [vmem:[%s1791_s7 + $0x18] ss:$36 sps:$4 sm:$0xff]   ;;  %s234_s7 = sand.u32 1, %s1601_s19  }
  0x28   : > { %1314 = vmatpush3.bf16.msra.mxu0 %v1488_v26  ;;  %v1541_v12 = vld [vmem:[%s1989_s1 + $0x218] sm:$0xff]   ;;  %s1207_s12 = sshll.u32 %s234_s7, 4  ;;  %s1947_s8 = scalar_lea.sflag [#allocation3], %s234_s7 }
  0x29   : > { %1336 = vmatpush3.bf16.msra.mxu1 %v1489_v27  ;;  %1315 = vmatprep.subr.bf16.mxu0 %v1490_v28  ;;  %v1545_v16 = vld [vmem:[%s1989_s1 + $0x238] sm:$0xff]   ;;  %s236_s17 = scalar_lea.vmem [#allocation2], %s1207_s12  ;;  %s1553_s12 = scalar_lea.vmem %s1552_s10, 512 }
  0x2a   : > { %1337 = vmatprep.subr.bf16.mxu1 %v1491_v29  ;;  %s1129_s23 = sshll.u32 %s236_s17, 4  ;;  %s1945_s23 = int_to_ptr.vmem [resolvable:$true] %s1129_s23 }
  0x2b   : > { %s1547_s22 = scalar_lea.vmem %s1945_s23, 256  ;;  %p1554_p0 = scmp.lt.s32.totalorder %s1945_s23, %s1552_s10 }
  0x2c   : > { %1316 = vmatpush3.bf16.msra.mxu0 %v1492_v30  ;;  %p1548_p11 = scmp.ne.s32.totalorder %s1945_s23, %s1547_s22  ;;  %p1555_p1 = scmp.lt.s32.totalorder %s1553_s12, %s1547_s22 }
  0x2d   : > { %1338 = vmatpush3.bf16.msra.mxu1 %v1493_v31  ;;  %1345 = vmatprep.subr.bf16.mxu0 %v1500_v36 }
  0x2e   : > { %1367 = vmatprep.subr.bf16.mxu1 %v1502_v38  ;;  %p1549_p12 = pnand %p1548_p11, %p1684_p5  ;;  %p1556_p2 = por %p1555_p1, %p1554_p0 }
  0x2f   : > { %917 = vmatmul.mubr.bf16.vlgmr.msra.gmra.mrb[0].mxu0 %v1494_v32 }
  0x30   : > { %958 = vmatmul.mubr.bf16.vlgmr.msra.gmra.mrb[0].mxu1 %v1497_v34  ;;  %1346 = vmatpush3.bf16.msra.mxu0 %v1501_v37  ;;  %p1550_p13 = pneg %p1549_p12 }
  0x31   : > { %1368 = vmatpush3.bf16.msra.mxu1 %v1503_v39  ;;  %1347 = vmatprep.subr.bf16.mxu0 %v1504_v40 }
  0x32   : > { %1369 = vmatprep.subr.bf16.mxu1 %v1506_v42  ;;  %998 = vmatprep.mubr.bf16.mxu0 %v1533_v4  ;;  %p1557_p3 = pnand %p1556_p2, %p1550_p13 }
  0x33   : > { %1039 = vmatprep.mubr.bf16.mxu1 %v1537_v8 }
  0x34   : > { %1348 = vmatpush3.bf16.msra.mxu0 %v1505_v41 }
  0x35   : > { %1370 = vmatpush3.bf16.msra.mxu1 %v1507_v43  ;;  %1349 = vmatprep.subr.bf16.mxu0 %v1508_v44 }
  0x36   : > { %1371 = vmatprep.subr.bf16.mxu1 %v1510_v46 }
  0x38   : > { %1350 = vmatpush3.bf16.msra.mxu0 %v1509_v45 }
  0x39   : > { %1372 = vmatpush3.bf16.msra.mxu1 %v1511_v47  ;;  %1351 = vmatprep.subr.bf16.mxu0 %v1512_v48 }
  0x3a   : > { %1373 = vmatprep.subr.bf16.mxu1 %v1514_v50 }
  0x3c   : > { %1352 = vmatpush3.bf16.msra.mxu0 %v1513_v49  ;;  %v1293_v49 = vld [vmem:[%s1990_s2] ss:$0 sm:$0xff] }
  0x3d   : > { %1374 = vmatpush3.bf16.msra.mxu1 %v1515_v51  ;;  %1353 = vmatprep.subr.bf16.mxu0 %v1516_v52  ;;  %v1294_v52 = vld [vmem:[%s1991_s3] ss:$0 sm:$0xff] }
  0x3e   : > { %1375 = vmatprep.subr.bf16.mxu1 %v1518_v54 }
  0x40   : > { %1354 = vmatpush3.bf16.msra.mxu0 %v1517_v53 }
  0x41   : > { %1376 = vmatpush3.bf16.msra.mxu1 %v1519_v55  ;;  %1355 = vmatprep.subr.bf16.mxu0 %v1520_v56 }
  0x42   : > { %1377 = vmatprep.subr.bf16.mxu1 %v1522_v58 }
  0x44   : > { %1356 = vmatpush3.bf16.msra.mxu0 %v1521_v57  ;;  %v1107_v57 = vld [vmem:[%s248_s14] sm:$0xff] }
  0x45   : > { %1378 = vmatpush3.bf16.msra.mxu1 %v1523_v59  ;;  %1357 = vmatprep.subr.bf16.mxu0 %v1524_v60  ;;  %v1108_v60 = vld [vmem:[%s248_s14 + $0x8] sm:$0xff] }
  0x46   : > { %1379 = vmatprep.subr.bf16.mxu1 %v1526_v62 }
  0x48   : > { %1358 = vmatpush3.bf16.msra.mxu0 %v1525_v61 }
  0x49   : > { %1380 = vmatpush3.bf16.msra.mxu1 %v1527_v63  ;;  %1359 = vmatprep.subr.bf16.mxu0 %v1528_v0 }
  0x4a   : > { %1381 = vmatprep.subr.bf16.mxu1 %v1530_v2 }
  0x4c   : > { %1360 = vmatpush3.bf16.msra.mxu0 %v1529_v1 }
  0x4d   : > { %1398 = vmatprep.subr.bf16.mxu0 %v1611_v6  ;;  %1382 = vmatpush3.bf16.msra.mxu1 %v1534_v5 }
  0x4f   : > { %999 = vmatmul.mubr.bf16.vlgmr.msra.gmra.mrb[4].mxu0 %v1531_v3 }
  0x50   : > { %1414 = vmatprep.mubr.msk.bf16.mxu0 %vm1612_vm0, %v1611_v6  ;;  %1399 = vmatpush3.bf16.msra.mxu0 %v1538_v9 }
  0x51   : > { %1040 = vmatmul.mubr.bf16.vlgmr.msra.gmra.mrb[4].mxu1 %v1535_v7  ;;  %1400 = vmatprep.subr.bf16.mxu0 %v1611_v6 }
  0x54   : > { %1401 = vmatpush3.bf16.msra.mxu0 %v1539_v10 }
  0x55   : > { %1402 = vmatprep.subr.bf16.mxu0 %v1611_v6 }
  0x58   : > { %1403 = vmatpush3.bf16.msra.mxu0 %v1540_v11 }
  0x59   : > { %1404 = vmatprep.subr.bf16.mxu0 %v1611_v6 }
  0x5c   : > { %1405 = vmatpush3.bf16.msra.mxu0 %v1541_v12 }
  0x5d   : > { %1406 = vmatprep.subr.bf16.mxu0 %v1611_v6 }
  0x60   : > { %1407 = vmatpush3.bf16.msra.mxu0 %v1542_v13 }
  0x61   : > { %1408 = vmatprep.subr.bf16.mxu0 %v1611_v6 }
  0x64   : > { %1409 = vmatpush3.bf16.msra.mxu0 %v1543_v14 }
  0x65   : > { %1410 = vmatprep.subr.bf16.mxu0 %v1611_v6 }
  0x68   : > { %1411 = vmatpush3.bf16.msra.mxu0 %v1544_v15 }
  0x69   : > { %1412 = vmatprep.subr.bf16.mxu0 %v1611_v6 }
  0x6c   : > { %1413 = vmatpush3.bf16.msra.mxu0 %v1545_v16 }
  0x6f   : > { %1415 = vmatmul.mubr.bf16.vlgmr.msra.gmra.mrb[8].mxu0 %v1546_v17 }
 0x102   : > { %v1317_v18 = vpop.f32.mrb[0].mxu0 }
 0x103   : > { %v1339_v19 = vpop.f32.mrb[0].mxu1  ;;  %v1318_v20 = vpop.f32.mrb[1].mxu0 }
 0x104   : > { %v1319_v21 = vadd.f32 %v1318_v20, %v1317_v18  ;;  %v1340_v22 = vpop.f32.mrb[1].mxu1  ;;  %v1320_v23 = vpop.f32.mrb[2].mxu0 }
 0x105   : > { %v1341_v24 = vadd.f32 %v1340_v22, %v1339_v19  ;;  %v1342_v25 = vpop.f32.mrb[2].mxu1  ;;  %v1321_v26 = vpop.f32.mrb[3].mxu0 }
 0x106   : > { %v1322_v27 = vadd.f32 %v1321_v26, %v1320_v23  ;;  %v1343_v28 = vpop.f32.mrb[3].mxu1 }
 0x107   : > { %v960_v29 = vadd.f32 %v1341_v24, %v1319_v21  ;;  %v1344_v30 = vadd.f32 %v1343_v28, %v1342_v25 }
 0x109   : > { %v963_v31 = vadd.f32 %v1344_v30, %v1322_v27 }
 0x122   : > { %v1361_v32 = vpop.f32.mrb[4].mxu0 }
 0x123   : > { %v1362_v33 = vpop.f32.mrb[5].mxu0 }
 0x124   : > { %v1363_v34 = vadd.f32 %v1362_v33, %v1361_v32  ;;  %v1364_v35 = vpop.f32.mrb[6].mxu0  ;;  %v1383_v36 = vpop.f32.mrb[4].mxu1 }
 0x125   : > { %v1365_v37 = vpop.f32.mrb[7].mxu0  ;;  %v1384_v40 = vpop.f32.mrb[5].mxu1 }
 0x126   : > { %v1001_v38 = vadd.f32 %v1363_v34, %v960_v29  ;;  %v1366_v39 = vadd.f32 %v1365_v37, %v1364_v35  ;;  %v1385_v41 = vadd.f32 %v1384_v40, %v1383_v36  ;;  %v1386_v42 = vpop.f32.mrb[6].mxu1 }
 0x127   : > { %v1387_v44 = vpop.f32.mrb[7].mxu1 }
 0x128   : > { %v1004_v43 = vadd.f32 %v1366_v39, %v963_v31  ;;  %v1388_v45 = vadd.f32 %v1387_v44, %v1386_v42  ;;  %v1042_v46 = vadd.f32 %v1385_v41, %v1001_v38 }
 0x12a   : > { %v1045_v47 = vadd.f32 %v1388_v45, %v1004_v43 }
 0x142   : > { %v1082_v48 = vpop.f32.mrb[8].mxu0 }
 0x143   : > { %v1083_v50 = vadd.f32 %v1082_v48, %v1042_v46  ;;  %v1416_v51 = vpop.f32.mrb[9].mxu0 }
 0x144   : > { %v1085_v53 = vpop.f32.mrb[10].mxu0 }
 0x145   : > { %v1096_v54 = vmul.f32 %v1293_v49, %v1083_v50  ;;  %v1086_v55 = vadd.f32 %v1085_v53, %v1045_v47  ;;  %v1417_v56 = vpop.f32.mrb[11].mxu0 }
 0x147   : > { %v1105_v58 = vadd.f32 %v1294_v52, %v1096_v54  ;;  %v1097_v59 = vmul.f32 %v1293_v49, %v1086_v55 }
 0x149   : > { %v1109_v61 = vadd.f32 %v1107_v57, %v1105_v58  ;;  %v1106_v62 = vadd.f32 %v1294_v52, %v1097_v59 }
 0x14b   : > { %v1111_v63 = vmax.f32 %v1109_v61, 0.0  ;;  %v1110_v0 = vadd.f32 %v1108_v60, %v1106_v62 }
 0x14d   : > { %1113 = vst [vmem:[%s236_s17] sm:$0xff] %v1111_v63  ;;  %v1112_v1 = vmax.f32 %v1110_v0, 0.0 }
 0x14f   : > { %1114 = vst [vmem:[%s236_s17 + $0x8] sm:$0xff] %v1112_v1 }
 0x150   : > { %1560 = shalt.err (!%p1557_p3)
}
 0x151   : > { %s1561_s7 = scalar_lea.hbm %s1943_s6, 256  ;;  %s1565_s14 = scalar_lea.hbm %s1993_s5, 512 }
 0x152   : > { %p1562_p4 = scmp.ne.s32.totalorder %s1943_s6, %s1561_s7  ;;  %p1566_p9 = scmp.lt.u32.totalorder %s1943_s6, %s1993_s5 }
 0x153   : > { %p1567_p10 = scmp.lt.u32.totalorder %s1565_s14, %s1561_s7  ;;  %p1569_p12 = scmp.lt.u32.totalorder %s1561_s7, %s1943_s6 }
 0x154   : > { %p1563_p7 = pnand %p1562_p4, %p1684_p5 }
 0x155   : > { %p1568_p11 = por %p1567_p10, %p1566_p9 }
 0x156   : > { %p1564_p8 = pneg %p1563_p7 }
 0x157   : > { %p1570_p13 = por %p1569_p12, %p1568_p11 }
 0x159   : > { %p1571_p0 = pnand %p1570_p13, %p1564_p8 }
 0x15b   : > { %1574 = shalt.err (!%p1571_p0)
}
 0x15c   : > { %s1614_s25 = smov 128   ;;  %s1615_s17 = smov 8  }
 0x15d   : > { %1419 = dma.vmem_to_hbm [thread:$0]  (%p1684_p5), %s1945_s23, 256, %s1943_s6, %s1947_s8, %s1614_s25, %s1614_s25, %s1615_s17  }
 0x15e PF: > { %p1425_p1 = scmp.ge.s32.totalorder %s1609_s21, 2  ;;  %s1144_s26 = sand.u32 1, %s1597_s18  }
 0x15f   : > { %s1145_s30 = scalar_lea.sflag [#allocation3], %s1144_s26 }
 0x160   : > { %p1422_p2 = pnand %p1425_p1, %p1688_p6 }
 0x162   : > { %1592 = dma.done.wait (!%p1422_p2), %s1145_s30, 256  }
 0x163   : > { %1594 = vsyncadd (!%p1422_p2), %s1145_s30, 4294967040  ;;  %p15_p3 = scmp.ge.s32.totalorder %s1671_s24, 4   ;;  %s1996_s18 = smov %s1601_s19 }
 0x164   : > { %s1997_s19 = smov %s1605_s20  ;;  %s1998_s20 = smov %s1682_s27 }
 0x165   : > { %s1999_s21 = smov %s1671_s24  ;;  %17 = sbr.rel (!%p15_p3) target bundleno = 3 (0x3), region = 78 }
 0x16c   :  { %1150 = vsyncpa [#allocation3], 1 }
 0x16d   :  { %1152 = vsyncpa [#allocation3 + $0x1], 1 }

</bundles_post_ra>
